<compile_context>
chip_gen: v7x
topology: tpu7x:2x2x1
jax: 0.10.0
libtpu: 0.0.40
codegen_flags: <defaults>
</compile_context>

<pallas_src>
import functools

import jax
import jax.numpy as jnp
import numpy as np
from jax import lax
from jax.experimental import pallas as pl
from jax.experimental.pallas import tpu as pltpu

EPS = 1e-5


# ---------------------------------------------------------------------------
# In-kernel helpers
# ---------------------------------------------------------------------------
def _fill_padded(dst_ref, val, D, H):
    """Write `val` (D, H, L) into the interior of dst_ref (D+2, H+2, L) and zero the 1-voxel halo.

    The halo (2 d-pages + 2 h-row strips, a few KB) is re-zeroed every grid step instead of
    once under `pl.when(program_id == 0)`: scratch is per-TensorCore and uninitialised, and
    with a "parallel" batch axis a given core may never execute grid step 0.
    """
    L = dst_ref.shape[-1]
    dst_ref[0] = jnp.zeros((H + 2, L), jnp.float32)                      # d = 0 halo page
    dst_ref[D + 1] = jnp.zeros((H + 2, L), jnp.float32)                  # d = D+1 halo page
    dst_ref[1:D + 1, 0:1, :] = jnp.zeros((D, 1, L), jnp.float32)         # h = 0 halo rows
    dst_ref[1:D + 1, H + 1:H + 2, :] = jnp.zeros((D, 1, L), jnp.float32)  # h = H+1 halo rows
    dst_ref[1:D + 1, 1:H + 1, :] = val                                   # interior (full lanes)


def _conv_pass(src_ref, w_ref, D, H):
    """One 9-tap pass of a 3x3x3 'same' conv over a D/H-padded, W-unpadded activation slab.

    src_ref: (D+2, H+2, W*Cin) zero-haloed activations, lane layout (w, cin).
    w_ref:   (9, W*Cin, N) Toeplitz-along-W weights; N may concatenate several convs' outputs.
    Returns a (D*H, N) float32 accumulator.
    """
    L = src_ref.shape[-1]
    N = w_ref.shape[-1]
    acc = jnp.zeros((D * H, N), jnp.float32)
    for kd in range(3):
        for kh in range(3):
            slab = src_ref[kd:kd + D, kh:kh + H, :].reshape(D * H, L)
            acc = acc + jnp.dot(slab, w_ref[kd * 3 + kh],
                                preferred_element_type=jnp.float32)
    return acc


def _inorm_relu(acc, e_ref, et_ref, inv_n):
    """InstanceNorm3d(affine=False, eps=1e-5) + ReLU on a (D*H, W*Cout) slab, lane layout (w, c).

    One-pass stats (sum, sum-of-squares); the per-channel fold over the w-groups inside the lane
    axis and the broadcast back are each a single M=2 channel-selector matmul
    (e[l, c] = 1 iff l % Cout == c).  Applied as y = relu(acc * scale + shift).
    """
    stats = jnp.concatenate([jnp.sum(acc, axis=0, keepdims=True),
                             jnp.sum(acc * acc, axis=0, keepdims=True)], axis=0)  # (2, W*Cout)
    st_c = jnp.dot(stats, e_ref[...], preferred_element_type=jnp.float32) * inv_n  # (2, Cout)
    mean_c = st_c[0:1]
    var_c = jnp.maximum(st_c[1:2] - mean_c * mean_c, 0.0)   # clamp: one-pass var can go slightly negative
    rstd_c = lax.rsqrt(var_c + EPS)
    aff = jnp.concatenate([rstd_c, -mean_c * rstd_c], axis=0)                      # (2, Cout)
    aff_l = jnp.dot(aff, et_ref[...], preferred_element_type=jnp.float32)          # (2, W*Cout)
    return jnp.maximum(acc * aff_l[0:1] + aff_l[1:2], 0.0)   # ReLU (Dropout3d = identity)


def _rdb_kernel(x_ref,
                wx_ref, wx1_ref, wx2_ref,
                e2_ref, e2t_ref, e3_ref, e3t_ref,
                sw1_ref, sb1_ref, sw2t_ref, sb2_ref,
                o_ref,
                xpad_ref, x1pad_ref, x2pad_ref,
                *, D, H, W, C):
    C2 = C // 2
    N2 = W * C2                          # lanes per half-channel slab, e.g. 64
    inv_n = 1.0 / float(D * H * W)

    # ---- pad x (D/H halo only; W stays unpadded -> 128-lane dense) ----
    _fill_padded(xpad_ref, x_ref[0], D, H)

    # ---- pass 1 over x: conv1 + x-partials of conv2/conv3 (N = 2*W*C2 + W*C = 256) ----
    accx = _conv_pass(xpad_ref, wx_ref, D, H)
    x1 = _inorm_relu(accx[:, :N2], e2_ref, e2t_ref, inv_n)                       # (DH, W*C2)

    # ---- pass 2 over x1: x1-partials of conv2/conv3 (N = W*C2 + W*C = 192) ----
    _fill_padded(x1pad_ref, x1.reshape(D, H, N2), D, H)
    accx1 = _conv_pass(x1pad_ref, wx1_ref, D, H)
    x2 = _inorm_relu(accx[:, N2:2 * N2] + accx1[:, :N2], e2_ref, e2t_ref, inv_n)  # (DH, W*C2)

    # ---- pass 3 over x2: x2-partial of conv3 (N = W*C = 128) ----
    _fill_padded(x2pad_ref, x2.reshape(D, H, N2), D, H)
    accx2 = _conv_pass(x2pad_ref, wx2_ref, D, H)
    x3 = _inorm_relu(accx[:, 2 * N2:] + accx1[:, N2:] + accx2,
                     e3_ref, e3t_ref, inv_n)                                      # (DH, W*C)

    # ---- SEBlock: global avg pool -> Linear -> ReLU -> Linear -> Sigmoid -> scale ----
    pooled = jnp.dot(jnp.sum(x3, axis=0, keepdims=True), e3_ref[...],
                     preferred_element_type=jnp.float32) * inv_n                  # (1, C)
    h = jnp.maximum(jnp.sum(sw1_ref[...] * pooled, axis=1, keepdims=True)
                    + sb1_ref[...], 0.0)                                          # (Cr, 1); Dropout = id
    s = jax.nn.sigmoid(jnp.sum(sw2t_ref[...] * h, axis=0, keepdims=True)
                       + sb2_ref[...])                                            # (1, C)
    s_lanes = jnp.dot(s, e3t_ref[...], preferred_element_type=jnp.float32)        # (1, W*C)

    # lane-dense store: (D, H, W*C) with W*C = 128 (unmasked full-width vst)
    o_ref[0] = (x3 * s_lanes).reshape(D, H, W * C)


# ---------------------------------------------------------------------------
# Wrapper
# ---------------------------------------------------------------------------
def _const_spec(a):
    zeros = (0,) * a.ndim
    return pl.BlockSpec(a.shape, lambda b, z=zeros: z)


def residual_dense_block(x_ndhwc, kp):
    """Fused ResidualDenseBlock forward (inference). x_ndhwc: (B, D, H, W, C) float32."""
    B, D, H, W, C = x_ndhwc.shape
    C2 = C // 2
    x2d = x_ndhwc.reshape(B, D, H, W * C)

    in_arrays = [kp["wx"], kp["wx1"], kp["wx2"],
                 kp["e2"], kp["e2t"], kp["e3"], kp["e3t"],
                 kp["se_w1"], kp["se_b1"], kp["se_w2t"], kp["se_b2"]]

    kernel = functools.partial(_rdb_kernel, D=D, H=H, W=W, C=C)
    out = pl.pallas_call(
        kernel,
        out_shape=jax.ShapeDtypeStruct((B, D, H, W * C), jnp.float32),
        grid_spec=pltpu.PrefetchScalarGridSpec(
            num_scalar_prefetch=0,
            grid=(B,),
            # Constant index_maps: Pallas skips re-DMA of the packed weights across grid steps.
            in_specs=[pl.BlockSpec((1, D, H, W * C), lambda b: (b, 0, 0, 0))]
                     + [_const_spec(a) for a in in_arrays],
            out_specs=pl.BlockSpec((1, D, H, W * C), lambda b: (b, 0, 0, 0)),
            scratch_shapes=[
                pltpu.VMEM((D + 2, H + 2, W * C), jnp.float32),    # padded x   (128 lanes)
                pltpu.VMEM((D + 2, H + 2, W * C2), jnp.float32),   # padded x1  (64 lanes)
                pltpu.VMEM((D + 2, H + 2, W * C2), jnp.float32),   # padded x2  (64 lanes)
            ],
        ),
        # "parallel": multi-TC chips (v7x/v5p/v4) split the batch; no-op on single-TC v5e/v6e.
        compiler_params=pltpu.CompilerParams(
            dimension_semantics=("parallel",),
            vmem_limit_bytes=32 * 1024 * 1024,   # explicit; ~4 MiB actually used at this size
        ),
    )(x2d, *in_arrays)
    return out.reshape(B, D, H, W, C)


# ---------------------------------------------------------------------------
# Parameter generation + wrapper-side packing (unpadded-W Toeplitz, N-concatenated, selectors)
# ---------------------------------------------------------------------------
def make_params(key, C, reduction=16):
    """Weights in DHWIO layout (a PyTorch OIDHW Conv3d weight transposes by (2,3,4,1,0))."""
    C2 = C // 2
    Cr = max(C // reduction, 1)
    ks = jax.random.split(key, 10)

    def rnd(k, shape, scale):
        return (scale * jax.random.normal(k, shape)).astype(jnp.float32)

    return {
        "w1": rnd(ks[0], (3, 3, 3, C, C2), 0.1), "b1": rnd(ks[1], (C2,), 0.1),
        "w2": rnd(ks[2], (3, 3, 3, 3 * C2, C2), 0.1), "b2": rnd(ks[3], (C2,), 0.1),
        "w3": rnd(ks[4], (3, 3, 3, 2 * C, C), 0.1), "b3": rnd(ks[5], (C,), 0.1),
        "se_w1": rnd(ks[6], (Cr, C), 0.5), "se_b1": rnd(ks[7], (Cr,), 0.5),   # Linear(C, Cr)
        "se_w2": rnd(ks[8], (C, Cr), 0.5), "se_b2": rnd(ks[9], (C,), 0.5),    # Linear(Cr, C)
    }


def prepare_kernel_params(p, W):
    """Pack weights: Toeplitz along the UNPADDED W axis, N-concatenated per shared conv input."""
    C = p["w3"].shape[-1]
    C2 = C // 2

    def toeplitz(w):  # (3,3,3,Cin,Cout) -> (9, W*Cin, W*Cout); W halo folded away (hits only zeros)
        w = np.asarray(w, np.float32)
        Cin, Cout = w.shape[3], w.shape[4]
        wt = np.zeros((3, 3, W, Cin, W, Cout), np.float32)
        for kw in range(3):
            for wo in range(W):
                wi = wo + kw - 1
                if 0 <= wi < W:
                    wt[:, :, wi, :, wo, :] = w[:, :, kw, :, :]
        return wt.reshape(9, W * Cin, W * Cout)

    def selector(cout):      # (W*cout, cout): e[l, c] = 1 iff l % cout == c
        e = (np.arange(W * cout) % cout)[:, None] == np.arange(cout)[None, :]
        return e.astype(np.float32)

    w2 = np.asarray(p["w2"], np.float32)
    w3 = np.asarray(p["w3"], np.float32)
    # N-concatenated packs: one 9-tap pass per activation feeds every conv that reads it.
    wx = np.concatenate([toeplitz(p["w1"]),                  # conv1          -> cols [0, W*C2)
                         toeplitz(w2[:, :, :, :C, :]),       # conv2 x-part   -> cols [W*C2, 2*W*C2)
                         toeplitz(w3[:, :, :, :C, :])],      # conv3 x-part   -> cols [2*W*C2, :)
                        axis=-1)
    wx1 = np.concatenate([toeplitz(w2[:, :, :, C:, :]),          # conv2 x1-part -> cols [0, W*C2)
                          toeplitz(w3[:, :, :, C:C + C2, :])],   # conv3 x1-part -> cols [W*C2, :)
                         axis=-1)
    wx2 = toeplitz(w3[:, :, :, C + C2:, :])                      # conv3 x2-part
    # Conv biases are dropped: InstanceNorm(affine=False) cancels per-channel constants exactly.
    e2 = selector(C2)
    e3 = selector(C)
    return {
        "wx": jnp.asarray(wx), "wx1": jnp.asarray(wx1), "wx2": jnp.asarray(wx2),
        "e2": jnp.asarray(e2), "e2t": jnp.asarray(e2.T),
        "e3": jnp.asarray(e3), "e3t": jnp.asarray(e3.T),
        "se_w1": jnp.asarray(p["se_w1"]),                                    # (Cr, C)
        "se_b1": jnp.asarray(np.asarray(p["se_b1"]).reshape(-1, 1)),         # (Cr, 1)
        "se_w2t": jnp.asarray(np.asarray(p["se_w2"]).T),                     # (Cr, C)
        "se_b2": jnp.asarray(np.asarray(p["se_b2"]).reshape(1, -1)),         # (1, C)
    }


# ---------------------------------------------------------------------------
# Pure-JAX reference (sanity check)
# ---------------------------------------------------------------------------
def _conv_in_relu_ref(x, w, b):
    y = lax.conv_general_dilated(
        x, w, window_strides=(1, 1, 1),
        padding=((1, 1), (1, 1), (1, 1)),
        dimension_numbers=("NDHWC", "DHWIO", "NDHWC")) + b
    m = jnp.mean(y, axis=(1, 2, 3), keepdims=True)
    v = jnp.mean(jnp.square(y - m), axis=(1, 2, 3), keepdims=True)
    return jnp.maximum((y - m) * lax.rsqrt(v + EPS), 0.0)


def residual_dense_block_ref(x, p):
    x1 = _conv_in_relu_ref(x, p["w1"], p["b1"])
    x2 = _conv_in_relu_ref(jnp.concatenate([x, x1], axis=-1), p["w2"], p["b2"])
    x3 = _conv_in_relu_ref(jnp.concatenate([x, x1, x2], axis=-1), p["w3"], p["b3"])
    pooled = jnp.mean(x3, axis=(1, 2, 3))                                  # (B, C)
    h = jnp.maximum(pooled @ p["se_w1"].T + p["se_b1"], 0.0)
    s = jax.nn.sigmoid(h @ p["se_w2"].T + p["se_b2"])
    return x3 * s[:, None, None, None, :]


# ---------------------------------------------------------------------------
if __name__ == "__main__":
    B, C, D, H, W = 2, 16, 8, 8, 8      # channels=16 -> SE reduction 16 -> Cr=1; W*C = 128 (lane-dense)
    key = jax.random.PRNGKey(0)
    key_x, key_p = jax.random.split(key)

    params = make_params(key_p, C)

    # PyTorch-style NCDHW input, transposed once to NDHWC (channels-last) for the kernel.
    x_ncdhw = jax.random.normal(key_x, (B, C, D, H, W), dtype=jnp.float32)
    x_ndhwc = jnp.transpose(x_ncdhw, (0, 2, 3, 4, 1))

    kparams = prepare_kernel_params(params, W)
    out = jax.block_until_ready(residual_dense_block(x_ndhwc, kparams))

    ref = jax.block_until_ready(residual_dense_block_ref(x_ndhwc, params))
    np.testing.assert_allclose(np.asarray(out), np.asarray(ref), rtol=1e-3, atol=1e-3)

    print("KERNEL_OK")
</pallas_src>

<mosaic_0001>
module attributes {stable_mosaic.version = 11 : i64} {
  func.func @_rdb_kernel(%arg0: i32, %arg1: memref<1x8x8x128xf32, #tpu.memory_space<vmem>>, %arg2: memref<9x128x256xf32, #tpu.memory_space<vmem>>, %arg3: memref<9x64x192xf32, #tpu.memory_space<vmem>>, %arg4: memref<9x64x128xf32, #tpu.memory_space<vmem>>, %arg5: memref<64x8xf32, #tpu.memory_space<vmem>>, %arg6: memref<8x64xf32, #tpu.memory_space<vmem>>, %arg7: memref<128x16xf32, #tpu.memory_space<vmem>>, %arg8: memref<16x128xf32, #tpu.memory_space<vmem>>, %arg9: memref<1x16xf32, #tpu.memory_space<vmem>>, %arg10: memref<1x1xf32, #tpu.memory_space<vmem>>, %arg11: memref<1x16xf32, #tpu.memory_space<vmem>>, %arg12: memref<1x16xf32, #tpu.memory_space<vmem>>, %arg13: memref<1x8x8x128xf32, #tpu.memory_space<vmem>>, %arg14: memref<10x10x128xf32, #tpu.memory_space<vmem>>, %arg15: memref<10x10x64xf32, #tpu.memory_space<vmem>>, %arg16: memref<10x10x64xf32, #tpu.memory_space<vmem>>) attributes {dimension_semantics = [#tpu.dimension_semantics<parallel>], iteration_bounds = array<i64: 2>, scalar_prefetch = 0 : i64, scratch_operands = 3 : i64, tpu.core_type = #tpu.core_type<tc>, window_params = [{transform_indices = @transform_0, window_bounds = array<i64: 1, 8, 8, 128>}, {pipeline_mode = #tpu.pipeline_mode<synchronous>, transform_indices = @transform_1, window_bounds = array<i64: 9, 128, 256>}, {pipeline_mode = #tpu.pipeline_mode<synchronous>, transform_indices = @transform_2, window_bounds = array<i64: 9, 64, 192>}, {pipeline_mode = #tpu.pipeline_mode<synchronous>, transform_indices = @transform_3, window_bounds = array<i64: 9, 64, 128>}, {pipeline_mode = #tpu.pipeline_mode<synchronous>, transform_indices = @transform_4, window_bounds = array<i64: 64, 8>}, {pipeline_mode = #tpu.pipeline_mode<synchronous>, transform_indices = @transform_5, window_bounds = array<i64: 8, 64>}, {pipeline_mode = #tpu.pipeline_mode<synchronous>, transform_indices = @transform_6, window_bounds = array<i64: 128, 16>}, {pipeline_mode = #tpu.pipeline_mode<synchronous>, transform_indices = @transform_7, window_bounds = array<i64: 16, 128>}, {pipeline_mode = #tpu.pipeline_mode<synchronous>, transform_indices = @transform_8, window_bounds = array<i64: 1, 16>}, {pipeline_mode = #tpu.pipeline_mode<synchronous>, transform_indices = @transform_9, window_bounds = array<i64: 1, 1>}, {pipeline_mode = #tpu.pipeline_mode<synchronous>, transform_indices = @transform_10, window_bounds = array<i64: 1, 16>}, {pipeline_mode = #tpu.pipeline_mode<synchronous>, transform_indices = @transform_11, window_bounds = array<i64: 1, 16>}, {transform_indices = @transform_12, window_bounds = array<i64: 1, 8, 8, 128>}]} {
    %c0 = arith.constant 0 : index
    %c0_0 = arith.constant 0 : index
    %c0_1 = arith.constant 0 : index
    %c0_2 = arith.constant 0 : index
    %0 = vector.load %arg1[%c0, %c0_0, %c0_1, %c0_2] : memref<1x8x8x128xf32, #tpu.memory_space<vmem>>, vector<1x8x8x128xf32>
    %1 = vector.shape_cast %0 : vector<1x8x8x128xf32> to vector<8x8x128xf32>
    %cst = arith.constant 0.000000e+00 : f32
    %2 = vector.broadcast %cst : f32 to vector<10x128xf32>
    %c0_3 = arith.constant 0 : index
    %c0_4 = arith.constant 0 : index
    %c0_5 = arith.constant 0 : index
    %3 = vector.load %arg14[%c0_3, %c0_4, %c0_5] : memref<10x10x128xf32, #tpu.memory_space<vmem>>, vector<1x10x128xf32>
    %4 = vector.shape_cast %3 : vector<1x10x128xf32> to vector<10x128xf32>
    %5 = vector.shape_cast %2 : vector<10x128xf32> to vector<1x10x128xf32>
    tpu.vector_store %arg14[%c0_3, %c0_4, %c0_5], %5 {strides = array<i32>} : memref<10x10x128xf32, #tpu.memory_space<vmem>>, vector<1x10x128xf32>,
    %cst_6 = arith.constant 0.000000e+00 : f32
    %6 = vector.broadcast %cst_6 : f32 to vector<10x128xf32>
    %c9 = arith.constant 9 : index
    %c0_7 = arith.constant 0 : index
    %c0_8 = arith.constant 0 : index
    %7 = vector.load %arg14[%c9, %c0_7, %c0_8] : memref<10x10x128xf32, #tpu.memory_space<vmem>>, vector<1x10x128xf32>
    %8 = vector.shape_cast %7 : vector<1x10x128xf32> to vector<10x128xf32>
    %9 = vector.shape_cast %6 : vector<10x128xf32> to vector<1x10x128xf32>
    tpu.vector_store %arg14[%c9, %c0_7, %c0_8], %9 {strides = array<i32>} : memref<10x10x128xf32, #tpu.memory_space<vmem>>, vector<1x10x128xf32>,
    %cst_9 = arith.constant 0.000000e+00 : f32
    %10 = vector.broadcast %cst_9 : f32 to vector<8x1x128xf32>
    %c1 = arith.constant 1 : index
    %c0_10 = arith.constant 0 : index
    %c0_11 = arith.constant 0 : index
    %11 = vector.load %arg14[%c1, %c0_10, %c0_11] : memref<10x10x128xf32, #tpu.memory_space<vmem>>, vector<8x1x128xf32>
    tpu.vector_store %arg14[%c1, %c0_10, %c0_11], %10 {strides = array<i32>} : memref<10x10x128xf32, #tpu.memory_space<vmem>>, vector<8x1x128xf32>,
    %cst_12 = arith.constant 0.000000e+00 : f32
    %12 = vector.broadcast %cst_12 : f32 to vector<8x1x128xf32>
    %c1_13 = arith.constant 1 : index
    %c9_14 = arith.constant 9 : index
    %c0_15 = arith.constant 0 : index
    %13 = vector.load %arg14[%c1_13, %c9_14, %c0_15] : memref<10x10x128xf32, #tpu.memory_space<vmem>>, vector<8x1x128xf32>
    tpu.vector_store %arg14[%c1_13, %c9_14, %c0_15], %12 {strides = array<i32>} : memref<10x10x128xf32, #tpu.memory_space<vmem>>, vector<8x1x128xf32>,
    %c1_16 = arith.constant 1 : index
    %c1_17 = arith.constant 1 : index
    %c0_18 = arith.constant 0 : index
    %14 = vector.load %arg14[%c1_16, %c1_17, %c0_18] : memref<10x10x128xf32, #tpu.memory_space<vmem>>, vector<8x8x128xf32>
    tpu.vector_store %arg14[%c1_16, %c1_17, %c0_18], %1 {strides = array<i32>} : memref<10x10x128xf32, #tpu.memory_space<vmem>>, vector<8x8x128xf32>,
    %cst_19 = arith.constant 0.000000e+00 : f32
    %15 = vector.broadcast %cst_19 : f32 to vector<64x256xf32>
    %c0_20 = arith.constant 0 : index
    %c0_21 = arith.constant 0 : index
    %c0_22 = arith.constant 0 : index
    %16 = vector.load %arg14[%c0_20, %c0_21, %c0_22] : memref<10x10x128xf32, #tpu.memory_space<vmem>>, vector<8x8x128xf32>
    %17 = vector.shape_cast %16 : vector<8x8x128xf32> to vector<64x128xf32>
    %c0_23 = arith.constant 0 : index
    %c0_24 = arith.constant 0 : index
    %c0_25 = arith.constant 0 : index
    %18 = vector.load %arg2[%c0_23, %c0_24, %c0_25] : memref<9x128x256xf32, #tpu.memory_space<vmem>>, vector<1x128x256xf32>
    %19 = vector.shape_cast %18 : vector<1x128x256xf32> to vector<128x256xf32>
    %cst_26 = arith.constant dense<0.000000e+00> : vector<64x256xf32>
    %20 = tpu.matmul %17, %19, %cst_26 {dimension_numbers = #tpu.dot_dimension_numbers<[1], [0], [0], [1], [0, 0, 1, 1], [], []>} : vector<64x128xf32>, vector<128x256xf32>, vector<64x256xf32> -> vector<64x256xf32>
    %21 = arith.addf %15, %20 : vector<64x256xf32>
    %c0_27 = arith.constant 0 : index
    %c1_28 = arith.constant 1 : index
    %c0_29 = arith.constant 0 : index
    %22 = vector.load %arg14[%c0_27, %c1_28, %c0_29] : memref<10x10x128xf32, #tpu.memory_space<vmem>>, vector<8x8x128xf32>
    %23 = vector.shape_cast %22 : vector<8x8x128xf32> to vector<64x128xf32>
    %c1_30 = arith.constant 1 : index
    %c0_31 = arith.constant 0 : index
    %c0_32 = arith.constant 0 : index
    %24 = vector.load %arg2[%c1_30, %c0_31, %c0_32] : memref<9x128x256xf32, #tpu.memory_space<vmem>>, vector<1x128x256xf32>
    %25 = vector.shape_cast %24 : vector<1x128x256xf32> to vector<128x256xf32>
    %cst_33 = arith.constant dense<0.000000e+00> : vector<64x256xf32>
    %26 = tpu.matmul %23, %25, %cst_33 {dimension_numbers = #tpu.dot_dimension_numbers<[1], [0], [0], [1], [0, 0, 1, 1], [], []>} : vector<64x128xf32>, vector<128x256xf32>, vector<64x256xf32> -> vector<64x256xf32>
    %27 = arith.addf %21, %26 : vector<64x256xf32>
    %c0_34 = arith.constant 0 : index
    %c2 = arith.constant 2 : index
    %c0_35 = arith.constant 0 : index
    %28 = vector.load %arg14[%c0_34, %c2, %c0_35] : memref<10x10x128xf32, #tpu.memory_space<vmem>>, vector<8x8x128xf32>
    %29 = vector.shape_cast %28 : vector<8x8x128xf32> to vector<64x128xf32>
    %c2_36 = arith.constant 2 : index
    %c0_37 = arith.constant 0 : index
    %c0_38 = arith.constant 0 : index
    %30 = vector.load %arg2[%c2_36, %c0_37, %c0_38] : memref<9x128x256xf32, #tpu.memory_space<vmem>>, vector<1x128x256xf32>
    %31 = vector.shape_cast %30 : vector<1x128x256xf32> to vector<128x256xf32>
    %cst_39 = arith.constant dense<0.000000e+00> : vector<64x256xf32>
    %32 = tpu.matmul %29, %31, %cst_39 {dimension_numbers = #tpu.dot_dimension_numbers<[1], [0], [0], [1], [0, 0, 1, 1], [], []>} : vector<64x128xf32>, vector<128x256xf32>, vector<64x256xf32> -> vector<64x256xf32>
    %33 = arith.addf %27, %32 : vector<64x256xf32>
    %c1_40 = arith.constant 1 : index
    %c0_41 = arith.constant 0 : index
    %c0_42 = arith.constant 0 : index
    %34 = vector.load %arg14[%c1_40, %c0_41, %c0_42] : memref<10x10x128xf32, #tpu.memory_space<vmem>>, vector<8x8x128xf32>
    %35 = vector.shape_cast %34 : vector<8x8x128xf32> to vector<64x128xf32>
    %c3 = arith.constant 3 : index
    %c0_43 = arith.constant 0 : index
    %c0_44 = arith.constant 0 : index
    %36 = vector.load %arg2[%c3, %c0_43, %c0_44] : memref<9x128x256xf32, #tpu.memory_space<vmem>>, vector<1x128x256xf32>
    %37 = vector.shape_cast %36 : vector<1x128x256xf32> to vector<128x256xf32>
    %cst_45 = arith.constant dense<0.000000e+00> : vector<64x256xf32>
    %38 = tpu.matmul %35, %37, %cst_45 {dimension_numbers = #tpu.dot_dimension_numbers<[1], [0], [0], [1], [0, 0, 1, 1], [], []>} : vector<64x128xf32>, vector<128x256xf32>, vector<64x256xf32> -> vector<64x256xf32>
    %39 = arith.addf %33, %38 : vector<64x256xf32>
    %c1_46 = arith.constant 1 : index
    %c1_47 = arith.constant 1 : index
    %c0_48 = arith.constant 0 : index
    %40 = vector.load %arg14[%c1_46, %c1_47, %c0_48] : memref<10x10x128xf32, #tpu.memory_space<vmem>>, vector<8x8x128xf32>
    %41 = vector.shape_cast %40 : vector<8x8x128xf32> to vector<64x128xf32>
    %c4 = arith.constant 4 : index
    %c0_49 = arith.constant 0 : index
    %c0_50 = arith.constant 0 : index
    %42 = vector.load %arg2[%c4, %c0_49, %c0_50] : memref<9x128x256xf32, #tpu.memory_space<vmem>>, vector<1x128x256xf32>
    %43 = vector.shape_cast %42 : vector<1x128x256xf32> to vector<128x256xf32>
    %cst_51 = arith.constant dense<0.000000e+00> : vector<64x256xf32>
    %44 = tpu.matmul %41, %43, %cst_51 {dimension_numbers = #tpu.dot_dimension_numbers<[1], [0], [0], [1], [0, 0, 1, 1], [], []>} : vector<64x128xf32>, vector<128x256xf32>, vector<64x256xf32> -> vector<64x256xf32>
    %45 = arith.addf %39, %44 : vector<64x256xf32>
    %c1_52 = arith.constant 1 : index
    %c2_53 = arith.constant 2 : index
    %c0_54 = arith.constant 0 : index
    %46 = vector.load %arg14[%c1_52, %c2_53, %c0_54] : memref<10x10x128xf32, #tpu.memory_space<vmem>>, vector<8x8x128xf32>
    %47 = vector.shape_cast %46 : vector<8x8x128xf32> to vector<64x128xf32>
    %c5 = arith.constant 5 : index
    %c0_55 = arith.constant 0 : index
    %c0_56 = arith.constant 0 : index
    %48 = vector.load %arg2[%c5, %c0_55, %c0_56] : memref<9x128x256xf32, #tpu.memory_space<vmem>>, vector<1x128x256xf32>
    %49 = vector.shape_cast %48 : vector<1x128x256xf32> to vector<128x256xf32>
    %cst_57 = arith.constant dense<0.000000e+00> : vector<64x256xf32>
    %50 = tpu.matmul %47, %49, %cst_57 {dimension_numbers = #tpu.dot_dimension_numbers<[1], [0], [0], [1], [0, 0, 1, 1], [], []>} : vector<64x128xf32>, vector<128x256xf32>, vector<64x256xf32> -> vector<64x256xf32>
    %51 = arith.addf %45, %50 : vector<64x256xf32>
    %c2_58 = arith.constant 2 : index
    %c0_59 = arith.constant 0 : index
    %c0_60 = arith.constant 0 : index
    %52 = vector.load %arg14[%c2_58, %c0_59, %c0_60] : memref<10x10x128xf32, #tpu.memory_space<vmem>>, vector<8x8x128xf32>
    %53 = vector.shape_cast %52 : vector<8x8x128xf32> to vector<64x128xf32>
    %c6 = arith.constant 6 : index
    %c0_61 = arith.constant 0 : index
    %c0_62 = arith.constant 0 : index
    %54 = vector.load %arg2[%c6, %c0_61, %c0_62] : memref<9x128x256xf32, #tpu.memory_space<vmem>>, vector<1x128x256xf32>
    %55 = vector.shape_cast %54 : vector<1x128x256xf32> to vector<128x256xf32>
    %cst_63 = arith.constant dense<0.000000e+00> : vector<64x256xf32>
    %56 = tpu.matmul %53, %55, %cst_63 {dimension_numbers = #tpu.dot_dimension_numbers<[1], [0], [0], [1], [0, 0, 1, 1], [], []>} : vector<64x128xf32>, vector<128x256xf32>, vector<64x256xf32> -> vector<64x256xf32>
    %57 = arith.addf %51, %56 : vector<64x256xf32>
    %c2_64 = arith.constant 2 : index
    %c1_65 = arith.constant 1 : index
    %c0_66 = arith.constant 0 : index
    %58 = vector.load %arg14[%c2_64, %c1_65, %c0_66] : memref<10x10x128xf32, #tpu.memory_space<vmem>>, vector<8x8x128xf32>
    %59 = vector.shape_cast %58 : vector<8x8x128xf32> to vector<64x128xf32>
    %c7 = arith.constant 7 : index
    %c0_67 = arith.constant 0 : index
    %c0_68 = arith.constant 0 : index
    %60 = vector.load %arg2[%c7, %c0_67, %c0_68] : memref<9x128x256xf32, #tpu.memory_space<vmem>>, vector<1x128x256xf32>
    %61 = vector.shape_cast %60 : vector<1x128x256xf32> to vector<128x256xf32>
    %cst_69 = arith.constant dense<0.000000e+00> : vector<64x256xf32>
    %62 = tpu.matmul %59, %61, %cst_69 {dimension_numbers = #tpu.dot_dimension_numbers<[1], [0], [0], [1], [0, 0, 1, 1], [], []>} : vector<64x128xf32>, vector<128x256xf32>, vector<64x256xf32> -> vector<64x256xf32>
    %63 = arith.addf %57, %62 : vector<64x256xf32>
    %c2_70 = arith.constant 2 : index
    %c2_71 = arith.constant 2 : index
    %c0_72 = arith.constant 0 : index
    %64 = vector.load %arg14[%c2_70, %c2_71, %c0_72] : memref<10x10x128xf32, #tpu.memory_space<vmem>>, vector<8x8x128xf32>
    %65 = vector.shape_cast %64 : vector<8x8x128xf32> to vector<64x128xf32>
    %c8 = arith.constant 8 : index
    %c0_73 = arith.constant 0 : index
    %c0_74 = arith.constant 0 : index
    %66 = vector.load %arg2[%c8, %c0_73, %c0_74] : memref<9x128x256xf32, #tpu.memory_space<vmem>>, vector<1x128x256xf32>
    %67 = vector.shape_cast %66 : vector<1x128x256xf32> to vector<128x256xf32>
    %cst_75 = arith.constant dense<0.000000e+00> : vector<64x256xf32>
    %68 = tpu.matmul %65, %67, %cst_75 {dimension_numbers = #tpu.dot_dimension_numbers<[1], [0], [0], [1], [0, 0, 1, 1], [], []>} : vector<64x128xf32>, vector<128x256xf32>, vector<64x256xf32> -> vector<64x256xf32>
    %69 = arith.addf %63, %68 : vector<64x256xf32>
    %70 = vector.extract_strided_slice %69 {offsets = [0, 0], sizes = [64, 64], strides = [1, 1]} : vector<64x256xf32> to vector<64x64xf32>
    %cst_76 = arith.constant dense<0.000000e+00> : vector<64xf32>
    %71 = vector.multi_reduction <add>, %70, %cst_76 [0] : vector<64x64xf32> to vector<64xf32>
    %72 = vector.shape_cast %71 : vector<64xf32> to vector<1x64xf32>
    %73 = arith.mulf %70, %70 : vector<64x64xf32>
    %cst_77 = arith.constant dense<0.000000e+00> : vector<64xf32>
    %74 = vector.multi_reduction <add>, %73, %cst_77 [0] : vector<64x64xf32> to vector<64xf32>
    %75 = vector.shape_cast %74 : vector<64xf32> to vector<1x64xf32>
    %76 = tpu.concatenate %72, %75 in 0 : vector<1x64xf32>, vector<1x64xf32> -> vector<2x64xf32>
    %c0_78 = arith.constant 0 : index
    %c0_79 = arith.constant 0 : index
    %77 = vector.load %arg5[%c0_78, %c0_79] : memref<64x8xf32, #tpu.memory_space<vmem>>, vector<64x8xf32>
    %cst_80 = arith.constant dense<0.000000e+00> : vector<2x8xf32>
    %78 = tpu.matmul %76, %77, %cst_80 {dimension_numbers = #tpu.dot_dimension_numbers<[1], [0], [0], [1], [0, 0, 1, 1], [], []>} : vector<2x64xf32>, vector<64x8xf32>, vector<2x8xf32> -> vector<2x8xf32>
    %cst_81 = arith.constant 0.001953125 : f32
    %79 = vector.broadcast %cst_81 : f32 to vector<2x8xf32>
    %80 = arith.mulf %78, %79 : vector<2x8xf32>
    %81 = vector.extract_strided_slice %80 {offsets = [0, 0], sizes = [1, 8], strides = [1, 1]} : vector<2x8xf32> to vector<1x8xf32>
    %82 = vector.extract_strided_slice %80 {offsets = [1, 0], sizes = [1, 8], strides = [1, 1]} : vector<2x8xf32> to vector<1x8xf32>
    %83 = arith.mulf %81, %81 : vector<1x8xf32>
    %84 = arith.subf %82, %83 : vector<1x8xf32>
    %cst_82 = arith.constant 0.000000e+00 : f32
    %85 = vector.broadcast %cst_82 : f32 to vector<1x8xf32>
    %86 = arith.maximumf %84, %85 : vector<1x8xf32>
    %cst_83 = arith.constant 9.99999974E-6 : f32
    %87 = vector.broadcast %cst_83 : f32 to vector<1x8xf32>
    %88 = arith.addf %86, %87 : vector<1x8xf32>
    %89 = math.rsqrt %88 : vector<1x8xf32>
    %cst_84 = arith.constant 0.000000e+00 : f32
    %90 = vector.broadcast %cst_84 : f32 to vector<1x8xf32>
    %91 = arith.subf %90, %81 : vector<1x8xf32>
    %92 = arith.mulf %91, %89 : vector<1x8xf32>
    %93 = tpu.concatenate %89, %92 in 0 : vector<1x8xf32>, vector<1x8xf32> -> vector<2x8xf32>
    %c0_85 = arith.constant 0 : index
    %c0_86 = arith.constant 0 : index
    %94 = vector.load %arg6[%c0_85, %c0_86] : memref<8x64xf32, #tpu.memory_space<vmem>>, vector<8x64xf32>
    %cst_87 = arith.constant dense<0.000000e+00> : vector<2x64xf32>
    %95 = tpu.matmul %93, %94, %cst_87 {dimension_numbers = #tpu.dot_dimension_numbers<[1], [0], [0], [1], [0, 0, 1, 1], [], []>} : vector<2x8xf32>, vector<8x64xf32>, vector<2x64xf32> -> vector<2x64xf32>
    %96 = vector.extract_strided_slice %95 {offsets = [0, 0], sizes = [1, 64], strides = [1, 1]} : vector<2x64xf32> to vector<1x64xf32>
    %97 = vector.broadcast %96 : vector<1x64xf32> to vector<64x64xf32>
    %98 = arith.mulf %70, %97 : vector<64x64xf32>
    %99 = vector.extract_strided_slice %95 {offsets = [1, 0], sizes = [1, 64], strides = [1, 1]} : vector<2x64xf32> to vector<1x64xf32>
    %100 = vector.broadcast %99 : vector<1x64xf32> to vector<64x64xf32>
    %101 = arith.addf %98, %100 : vector<64x64xf32>
    %cst_88 = arith.constant 0.000000e+00 : f32
    %102 = vector.broadcast %cst_88 : f32 to vector<64x64xf32>
    %103 = arith.maximumf %101, %102 : vector<64x64xf32>
    %104 = vector.shape_cast %103 : vector<64x64xf32> to vector<8x8x64xf32>
    %cst_89 = arith.constant 0.000000e+00 : f32
    %105 = vector.broadcast %cst_89 : f32 to vector<10x64xf32>
    %c0_90 = arith.constant 0 : index
    %c0_91 = arith.constant 0 : index
    %c0_92 = arith.constant 0 : index
    %106 = vector.load %arg15[%c0_90, %c0_91, %c0_92] : memref<10x10x64xf32, #tpu.memory_space<vmem>>, vector<1x10x64xf32>
    %107 = vector.shape_cast %106 : vector<1x10x64xf32> to vector<10x64xf32>
    %108 = vector.shape_cast %105 : vector<10x64xf32> to vector<1x10x64xf32>
    tpu.vector_store %arg15[%c0_90, %c0_91, %c0_92], %108 {strides = array<i32>} : memref<10x10x64xf32, #tpu.memory_space<vmem>>, vector<1x10x64xf32>,
    %cst_93 = arith.constant 0.000000e+00 : f32
    %109 = vector.broadcast %cst_93 : f32 to vector<10x64xf32>
    %c9_94 = arith.constant 9 : index
    %c0_95 = arith.constant 0 : index
    %c0_96 = arith.constant 0 : index
    %110 = vector.load %arg15[%c9_94, %c0_95, %c0_96] : memref<10x10x64xf32, #tpu.memory_space<vmem>>, vector<1x10x64xf32>
    %111 = vector.shape_cast %110 : vector<1x10x64xf32> to vector<10x64xf32>
    %112 = vector.shape_cast %109 : vector<10x64xf32> to vector<1x10x64xf32>
    tpu.vector_store %arg15[%c9_94, %c0_95, %c0_96], %112 {strides = array<i32>} : memref<10x10x64xf32, #tpu.memory_space<vmem>>, vector<1x10x64xf32>,
    %cst_97 = arith.constant 0.000000e+00 : f32
    %113 = vector.broadcast %cst_97 : f32 to vector<8x1x64xf32>
    %c1_98 = arith.constant 1 : index
    %c0_99 = arith.constant 0 : index
    %c0_100 = arith.constant 0 : index
    %114 = vector.load %arg15[%c1_98, %c0_99, %c0_100] : memref<10x10x64xf32, #tpu.memory_space<vmem>>, vector<8x1x64xf32>
    tpu.vector_store %arg15[%c1_98, %c0_99, %c0_100], %113 {strides = array<i32>} : memref<10x10x64xf32, #tpu.memory_space<vmem>>, vector<8x1x64xf32>,
    %cst_101 = arith.constant 0.000000e+00 : f32
    %115 = vector.broadcast %cst_101 : f32 to vector<8x1x64xf32>
    %c1_102 = arith.constant 1 : index
    %c9_103 = arith.constant 9 : index
    %c0_104 = arith.constant 0 : index
    %116 = vector.load %arg15[%c1_102, %c9_103, %c0_104] : memref<10x10x64xf32, #tpu.memory_space<vmem>>, vector<8x1x64xf32>
    tpu.vector_store %arg15[%c1_102, %c9_103, %c0_104], %115 {strides = array<i32>} : memref<10x10x64xf32, #tpu.memory_space<vmem>>, vector<8x1x64xf32>,
    %c1_105 = arith.constant 1 : index
    %c1_106 = arith.constant 1 : index
    %c0_107 = arith.constant 0 : index
    %117 = vector.load %arg15[%c1_105, %c1_106, %c0_107] : memref<10x10x64xf32, #tpu.memory_space<vmem>>, vector<8x8x64xf32>
    tpu.vector_store %arg15[%c1_105, %c1_106, %c0_107], %104 {strides = array<i32>} : memref<10x10x64xf32, #tpu.memory_space<vmem>>, vector<8x8x64xf32>,
    %cst_108 = arith.constant 0.000000e+00 : f32
    %118 = vector.broadcast %cst_108 : f32 to vector<64x192xf32>
    %c0_109 = arith.constant 0 : index
    %c0_110 = arith.constant 0 : index
    %c0_111 = arith.constant 0 : index
    %119 = vector.load %arg15[%c0_109, %c0_110, %c0_111] : memref<10x10x64xf32, #tpu.memory_space<vmem>>, vector<8x8x64xf32>
    %120 = vector.shape_cast %119 : vector<8x8x64xf32> to vector<64x64xf32>
    %c0_112 = arith.constant 0 : index
    %c0_113 = arith.constant 0 : index
    %c0_114 = arith.constant 0 : index
    %121 = vector.load %arg3[%c0_112, %c0_113, %c0_114] : memref<9x64x192xf32, #tpu.memory_space<vmem>>, vector<1x64x192xf32>
    %122 = vector.shape_cast %121 : vector<1x64x192xf32> to vector<64x192xf32>
    %cst_115 = arith.constant dense<0.000000e+00> : vector<64x192xf32>
    %123 = tpu.matmul %120, %122, %cst_115 {dimension_numbers = #tpu.dot_dimension_numbers<[1], [0], [0], [1], [0, 0, 1, 1], [], []>} : vector<64x64xf32>, vector<64x192xf32>, vector<64x192xf32> -> vector<64x192xf32>
    %124 = arith.addf %118, %123 : vector<64x192xf32>
    %c0_116 = arith.constant 0 : index
    %c1_117 = arith.constant 1 : index
    %c0_118 = arith.constant 0 : index
    %125 = vector.load %arg15[%c0_116, %c1_117, %c0_118] : memref<10x10x64xf32, #tpu.memory_space<vmem>>, vector<8x8x64xf32>
    %126 = vector.shape_cast %125 : vector<8x8x64xf32> to vector<64x64xf32>
    %c1_119 = arith.constant 1 : index
    %c0_120 = arith.constant 0 : index
    %c0_121 = arith.constant 0 : index
    %127 = vector.load %arg3[%c1_119, %c0_120, %c0_121] : memref<9x64x192xf32, #tpu.memory_space<vmem>>, vector<1x64x192xf32>
    %128 = vector.shape_cast %127 : vector<1x64x192xf32> to vector<64x192xf32>
    %cst_122 = arith.constant dense<0.000000e+00> : vector<64x192xf32>
    %129 = tpu.matmul %126, %128, %cst_122 {dimension_numbers = #tpu.dot_dimension_numbers<[1], [0], [0], [1], [0, 0, 1, 1], [], []>} : vector<64x64xf32>, vector<64x192xf32>, vector<64x192xf32> -> vector<64x192xf32>
    %130 = arith.addf %124, %129 : vector<64x192xf32>
    %c0_123 = arith.constant 0 : index
    %c2_124 = arith.constant 2 : index
    %c0_125 = arith.constant 0 : index
    %131 = vector.load %arg15[%c0_123, %c2_124, %c0_125] : memref<10x10x64xf32, #tpu.memory_space<vmem>>, vector<8x8x64xf32>
    %132 = vector.shape_cast %131 : vector<8x8x64xf32> to vector<64x64xf32>
    %c2_126 = arith.constant 2 : index
    %c0_127 = arith.constant 0 : index
    %c0_128 = arith.constant 0 : index
    %133 = vector.load %arg3[%c2_126, %c0_127, %c0_128] : memref<9x64x192xf32, #tpu.memory_space<vmem>>, vector<1x64x192xf32>
    %134 = vector.shape_cast %133 : vector<1x64x192xf32> to vector<64x192xf32>
    %cst_129 = arith.constant dense<0.000000e+00> : vector<64x192xf32>
    %135 = tpu.matmul %132, %134, %cst_129 {dimension_numbers = #tpu.dot_dimension_numbers<[1], [0], [0], [1], [0, 0, 1, 1], [], []>} : vector<64x64xf32>, vector<64x192xf32>, vector<64x192xf32> -> vector<64x192xf32>
    %136 = arith.addf %130, %135 : vector<64x192xf32>
    %c1_130 = arith.constant 1 : index
    %c0_131 = arith.constant 0 : index
    %c0_132 = arith.constant 0 : index
    %137 = vector.load %arg15[%c1_130, %c0_131, %c0_132] : memref<10x10x64xf32, #tpu.memory_space<vmem>>, vector<8x8x64xf32>
    %138 = vector.shape_cast %137 : vector<8x8x64xf32> to vector<64x64xf32>
    %c3_133 = arith.constant 3 : index
    %c0_134 = arith.constant 0 : index
    %c0_135 = arith.constant 0 : index
    %139 = vector.load %arg3[%c3_133, %c0_134, %c0_135] : memref<9x64x192xf32, #tpu.memory_space<vmem>>, vector<1x64x192xf32>
    %140 = vector.shape_cast %139 : vector<1x64x192xf32> to vector<64x192xf32>
    %cst_136 = arith.constant dense<0.000000e+00> : vector<64x192xf32>
    %141 = tpu.matmul %138, %140, %cst_136 {dimension_numbers = #tpu.dot_dimension_numbers<[1], [0], [0], [1], [0, 0, 1, 1], [], []>} : vector<64x64xf32>, vector<64x192xf32>, vector<64x192xf32> -> vector<64x192xf32>
    %142 = arith.addf %136, %141 : vector<64x192xf32>
    %c1_137 = arith.constant 1 : index
    %c1_138 = arith.constant 1 : index
    %c0_139 = arith.constant 0 : index
    %143 = vector.load %arg15[%c1_137, %c1_138, %c0_139] : memref<10x10x64xf32, #tpu.memory_space<vmem>>, vector<8x8x64xf32>
    %144 = vector.shape_cast %143 : vector<8x8x64xf32> to vector<64x64xf32>
    %c4_140 = arith.constant 4 : index
    %c0_141 = arith.constant 0 : index
    %c0_142 = arith.constant 0 : index
    %145 = vector.load %arg3[%c4_140, %c0_141, %c0_142] : memref<9x64x192xf32, #tpu.memory_space<vmem>>, vector<1x64x192xf32>
    %146 = vector.shape_cast %145 : vector<1x64x192xf32> to vector<64x192xf32>
    %cst_143 = arith.constant dense<0.000000e+00> : vector<64x192xf32>
    %147 = tpu.matmul %144, %146, %cst_143 {dimension_numbers = #tpu.dot_dimension_numbers<[1], [0], [0], [1], [0, 0, 1, 1], [], []>} : vector<64x64xf32>, vector<64x192xf32>, vector<64x192xf32> -> vector<64x192xf32>
    %148 = arith.addf %142, %147 : vector<64x192xf32>
    %c1_144 = arith.constant 1 : index
    %c2_145 = arith.constant 2 : index
    %c0_146 = arith.constant 0 : index
    %149 = vector.load %arg15[%c1_144, %c2_145, %c0_146] : memref<10x10x64xf32, #tpu.memory_space<vmem>>, vector<8x8x64xf32>
    %150 = vector.shape_cast %149 : vector<8x8x64xf32> to vector<64x64xf32>
    %c5_147 = arith.constant 5 : index
    %c0_148 = arith.constant 0 : index
    %c0_149 = arith.constant 0 : index
    %151 = vector.load %arg3[%c5_147, %c0_148, %c0_149] : memref<9x64x192xf32, #tpu.memory_space<vmem>>, vector<1x64x192xf32>
    %152 = vector.shape_cast %151 : vector<1x64x192xf32> to vector<64x192xf32>
    %cst_150 = arith.constant dense<0.000000e+00> : vector<64x192xf32>
    %153 = tpu.matmul %150, %152, %cst_150 {dimension_numbers = #tpu.dot_dimension_numbers<[1], [0], [0], [1], [0, 0, 1, 1], [], []>} : vector<64x64xf32>, vector<64x192xf32>, vector<64x192xf32> -> vector<64x192xf32>
    %154 = arith.addf %148, %153 : vector<64x192xf32>
    %c2_151 = arith.constant 2 : index
    %c0_152 = arith.constant 0 : index
    %c0_153 = arith.constant 0 : index
    %155 = vector.load %arg15[%c2_151, %c0_152, %c0_153] : memref<10x10x64xf32, #tpu.memory_space<vmem>>, vector<8x8x64xf32>
    %156 = vector.shape_cast %155 : vector<8x8x64xf32> to vector<64x64xf32>
    %c6_154 = arith.constant 6 : index
    %c0_155 = arith.constant 0 : index
    %c0_156 = arith.constant 0 : index
    %157 = vector.load %arg3[%c6_154, %c0_155, %c0_156] : memref<9x64x192xf32, #tpu.memory_space<vmem>>, vector<1x64x192xf32>
    %158 = vector.shape_cast %157 : vector<1x64x192xf32> to vector<64x192xf32>
    %cst_157 = arith.constant dense<0.000000e+00> : vector<64x192xf32>
    %159 = tpu.matmul %156, %158, %cst_157 {dimension_numbers = #tpu.dot_dimension_numbers<[1], [0], [0], [1], [0, 0, 1, 1], [], []>} : vector<64x64xf32>, vector<64x192xf32>, vector<64x192xf32> -> vector<64x192xf32>
    %160 = arith.addf %154, %159 : vector<64x192xf32>
    %c2_158 = arith.constant 2 : index
    %c1_159 = arith.constant 1 : index
    %c0_160 = arith.constant 0 : index
    %161 = vector.load %arg15[%c2_158, %c1_159, %c0_160] : memref<10x10x64xf32, #tpu.memory_space<vmem>>, vector<8x8x64xf32>
    %162 = vector.shape_cast %161 : vector<8x8x64xf32> to vector<64x64xf32>
    %c7_161 = arith.constant 7 : index
    %c0_162 = arith.constant 0 : index
    %c0_163 = arith.constant 0 : index
    %163 = vector.load %arg3[%c7_161, %c0_162, %c0_163] : memref<9x64x192xf32, #tpu.memory_space<vmem>>, vector<1x64x192xf32>
    %164 = vector.shape_cast %163 : vector<1x64x192xf32> to vector<64x192xf32>
    %cst_164 = arith.constant dense<0.000000e+00> : vector<64x192xf32>
    %165 = tpu.matmul %162, %164, %cst_164 {dimension_numbers = #tpu.dot_dimension_numbers<[1], [0], [0], [1], [0, 0, 1, 1], [], []>} : vector<64x64xf32>, vector<64x192xf32>, vector<64x192xf32> -> vector<64x192xf32>
    %166 = arith.addf %160, %165 : vector<64x192xf32>
    %c2_165 = arith.constant 2 : index
    %c2_166 = arith.constant 2 : index
    %c0_167 = arith.constant 0 : index
    %167 = vector.load %arg15[%c2_165, %c2_166, %c0_167] : memref<10x10x64xf32, #tpu.memory_space<vmem>>, vector<8x8x64xf32>
    %168 = vector.shape_cast %167 : vector<8x8x64xf32> to vector<64x64xf32>
    %c8_168 = arith.constant 8 : index
    %c0_169 = arith.constant 0 : index
    %c0_170 = arith.constant 0 : index
    %169 = vector.load %arg3[%c8_168, %c0_169, %c0_170] : memref<9x64x192xf32, #tpu.memory_space<vmem>>, vector<1x64x192xf32>
    %170 = vector.shape_cast %169 : vector<1x64x192xf32> to vector<64x192xf32>
    %cst_171 = arith.constant dense<0.000000e+00> : vector<64x192xf32>
    %171 = tpu.matmul %168, %170, %cst_171 {dimension_numbers = #tpu.dot_dimension_numbers<[1], [0], [0], [1], [0, 0, 1, 1], [], []>} : vector<64x64xf32>, vector<64x192xf32>, vector<64x192xf32> -> vector<64x192xf32>
    %172 = arith.addf %166, %171 : vector<64x192xf32>
    %173 = vector.extract_strided_slice %69 {offsets = [0, 64], sizes = [64, 64], strides = [1, 1]} : vector<64x256xf32> to vector<64x64xf32>
    %174 = vector.extract_strided_slice %172 {offsets = [0, 0], sizes = [64, 64], strides = [1, 1]} : vector<64x192xf32> to vector<64x64xf32>
    %175 = arith.addf %173, %174 : vector<64x64xf32>
    %cst_172 = arith.constant dense<0.000000e+00> : vector<64xf32>
    %176 = vector.multi_reduction <add>, %175, %cst_172 [0] : vector<64x64xf32> to vector<64xf32>
    %177 = vector.shape_cast %176 : vector<64xf32> to vector<1x64xf32>
    %178 = arith.mulf %175, %175 : vector<64x64xf32>
    %cst_173 = arith.constant dense<0.000000e+00> : vector<64xf32>
    %179 = vector.multi_reduction <add>, %178, %cst_173 [0] : vector<64x64xf32> to vector<64xf32>
    %180 = vector.shape_cast %179 : vector<64xf32> to vector<1x64xf32>
    %181 = tpu.concatenate %177, %180 in 0 : vector<1x64xf32>, vector<1x64xf32> -> vector<2x64xf32>
    %c0_174 = arith.constant 0 : index
    %c0_175 = arith.constant 0 : index
    %182 = vector.load %arg5[%c0_174, %c0_175] : memref<64x8xf32, #tpu.memory_space<vmem>>, vector<64x8xf32>
    %cst_176 = arith.constant dense<0.000000e+00> : vector<2x8xf32>
    %183 = tpu.matmul %181, %182, %cst_176 {dimension_numbers = #tpu.dot_dimension_numbers<[1], [0], [0], [1], [0, 0, 1, 1], [], []>} : vector<2x64xf32>, vector<64x8xf32>, vector<2x8xf32> -> vector<2x8xf32>
    %cst_177 = arith.constant 0.001953125 : f32
    %184 = vector.broadcast %cst_177 : f32 to vector<2x8xf32>
    %185 = arith.mulf %183, %184 : vector<2x8xf32>
    %186 = vector.extract_strided_slice %185 {offsets = [0, 0], sizes = [1, 8], strides = [1, 1]} : vector<2x8xf32> to vector<1x8xf32>
    %187 = vector.extract_strided_slice %185 {offsets = [1, 0], sizes = [1, 8], strides = [1, 1]} : vector<2x8xf32> to vector<1x8xf32>
    %188 = arith.mulf %186, %186 : vector<1x8xf32>
    %189 = arith.subf %187, %188 : vector<1x8xf32>
    %cst_178 = arith.constant 0.000000e+00 : f32
    %190 = vector.broadcast %cst_178 : f32 to vector<1x8xf32>
    %191 = arith.maximumf %189, %190 : vector<1x8xf32>
    %cst_179 = arith.constant 9.99999974E-6 : f32
    %192 = vector.broadcast %cst_179 : f32 to vector<1x8xf32>
    %193 = arith.addf %191, %192 : vector<1x8xf32>
    %194 = math.rsqrt %193 : vector<1x8xf32>
    %cst_180 = arith.constant 0.000000e+00 : f32
    %195 = vector.broadcast %cst_180 : f32 to vector<1x8xf32>
    %196 = arith.subf %195, %186 : vector<1x8xf32>
    %197 = arith.mulf %196, %194 : vector<1x8xf32>
    %198 = tpu.concatenate %194, %197 in 0 : vector<1x8xf32>, vector<1x8xf32> -> vector<2x8xf32>
    %c0_181 = arith.constant 0 : index
    %c0_182 = arith.constant 0 : index
    %199 = vector.load %arg6[%c0_181, %c0_182] : memref<8x64xf32, #tpu.memory_space<vmem>>, vector<8x64xf32>
    %cst_183 = arith.constant dense<0.000000e+00> : vector<2x64xf32>
    %200 = tpu.matmul %198, %199, %cst_183 {dimension_numbers = #tpu.dot_dimension_numbers<[1], [0], [0], [1], [0, 0, 1, 1], [], []>} : vector<2x8xf32>, vector<8x64xf32>, vector<2x64xf32> -> vector<2x64xf32>
    %201 = vector.extract_strided_slice %200 {offsets = [0, 0], sizes = [1, 64], strides = [1, 1]} : vector<2x64xf32> to vector<1x64xf32>
    %202 = vector.broadcast %201 : vector<1x64xf32> to vector<64x64xf32>
    %203 = arith.mulf %175, %202 : vector<64x64xf32>
    %204 = vector.extract_strided_slice %200 {offsets = [1, 0], sizes = [1, 64], strides = [1, 1]} : vector<2x64xf32> to vector<1x64xf32>
    %205 = vector.broadcast %204 : vector<1x64xf32> to vector<64x64xf32>
    %206 = arith.addf %203, %205 : vector<64x64xf32>
    %cst_184 = arith.constant 0.000000e+00 : f32
    %207 = vector.broadcast %cst_184 : f32 to vector<64x64xf32>
    %208 = arith.maximumf %206, %207 : vector<64x64xf32>
    %209 = vector.shape_cast %208 : vector<64x64xf32> to vector<8x8x64xf32>
    %cst_185 = arith.constant 0.000000e+00 : f32
    %210 = vector.broadcast %cst_185 : f32 to vector<10x64xf32>
    %c0_186 = arith.constant 0 : index
    %c0_187 = arith.constant 0 : index
    %c0_188 = arith.constant 0 : index
    %211 = vector.load %arg16[%c0_186, %c0_187, %c0_188] : memref<10x10x64xf32, #tpu.memory_space<vmem>>, vector<1x10x64xf32>
    %212 = vector.shape_cast %211 : vector<1x10x64xf32> to vector<10x64xf32>
    %213 = vector.shape_cast %210 : vector<10x64xf32> to vector<1x10x64xf32>
    tpu.vector_store %arg16[%c0_186, %c0_187, %c0_188], %213 {strides = array<i32>} : memref<10x10x64xf32, #tpu.memory_space<vmem>>, vector<1x10x64xf32>,
    %cst_189 = arith.constant 0.000000e+00 : f32
    %214 = vector.broadcast %cst_189 : f32 to vector<10x64xf32>
    %c9_190 = arith.constant 9 : index
    %c0_191 = arith.constant 0 : index
    %c0_192 = arith.constant 0 : index
    %215 = vector.load %arg16[%c9_190, %c0_191, %c0_192] : memref<10x10x64xf32, #tpu.memory_space<vmem>>, vector<1x10x64xf32>
    %216 = vector.shape_cast %215 : vector<1x10x64xf32> to vector<10x64xf32>
    %217 = vector.shape_cast %214 : vector<10x64xf32> to vector<1x10x64xf32>
    tpu.vector_store %arg16[%c9_190, %c0_191, %c0_192], %217 {strides = array<i32>} : memref<10x10x64xf32, #tpu.memory_space<vmem>>, vector<1x10x64xf32>,
    %cst_193 = arith.constant 0.000000e+00 : f32
    %218 = vector.broadcast %cst_193 : f32 to vector<8x1x64xf32>
    %c1_194 = arith.constant 1 : index
    %c0_195 = arith.constant 0 : index
    %c0_196 = arith.constant 0 : index
    %219 = vector.load %arg16[%c1_194, %c0_195, %c0_196] : memref<10x10x64xf32, #tpu.memory_space<vmem>>, vector<8x1x64xf32>
    tpu.vector_store %arg16[%c1_194, %c0_195, %c0_196], %218 {strides = array<i32>} : memref<10x10x64xf32, #tpu.memory_space<vmem>>, vector<8x1x64xf32>,
    %cst_197 = arith.constant 0.000000e+00 : f32
    %220 = vector.broadcast %cst_197 : f32 to vector<8x1x64xf32>
    %c1_198 = arith.constant 1 : index
    %c9_199 = arith.constant 9 : index
    %c0_200 = arith.constant 0 : index
    %221 = vector.load %arg16[%c1_198, %c9_199, %c0_200] : memref<10x10x64xf32, #tpu.memory_space<vmem>>, vector<8x1x64xf32>
    tpu.vector_store %arg16[%c1_198, %c9_199, %c0_200], %220 {strides = array<i32>} : memref<10x10x64xf32, #tpu.memory_space<vmem>>, vector<8x1x64xf32>,
    %c1_201 = arith.constant 1 : index
    %c1_202 = arith.constant 1 : index
    %c0_203 = arith.constant 0 : index
    %222 = vector.load %arg16[%c1_201, %c1_202, %c0_203] : memref<10x10x64xf32, #tpu.memory_space<vmem>>, vector<8x8x64xf32>
    tpu.vector_store %arg16[%c1_201, %c1_202, %c0_203], %209 {strides = array<i32>} : memref<10x10x64xf32, #tpu.memory_space<vmem>>, vector<8x8x64xf32>,
    %cst_204 = arith.constant 0.000000e+00 : f32
    %223 = vector.broadcast %cst_204 : f32 to vector<64x128xf32>
    %c0_205 = arith.constant 0 : index
    %c0_206 = arith.constant 0 : index
    %c0_207 = arith.constant 0 : index
    %224 = vector.load %arg16[%c0_205, %c0_206, %c0_207] : memref<10x10x64xf32, #tpu.memory_space<vmem>>, vector<8x8x64xf32>
    %225 = vector.shape_cast %224 : vector<8x8x64xf32> to vector<64x64xf32>
    %c0_208 = arith.constant 0 : index
    %c0_209 = arith.constant 0 : index
    %c0_210 = arith.constant 0 : index
    %226 = vector.load %arg4[%c0_208, %c0_209, %c0_210] : memref<9x64x128xf32, #tpu.memory_space<vmem>>, vector<1x64x128xf32>
    %227 = vector.shape_cast %226 : vector<1x64x128xf32> to vector<64x128xf32>
    %cst_211 = arith.constant dense<0.000000e+00> : vector<64x128xf32>
    %228 = tpu.matmul %225, %227, %cst_211 {dimension_numbers = #tpu.dot_dimension_numbers<[1], [0], [0], [1], [0, 0, 1, 1], [], []>} : vector<64x64xf32>, vector<64x128xf32>, vector<64x128xf32> -> vector<64x128xf32>
    %229 = arith.addf %223, %228 : vector<64x128xf32>
    %c0_212 = arith.constant 0 : index
    %c1_213 = arith.constant 1 : index
    %c0_214 = arith.constant 0 : index
    %230 = vector.load %arg16[%c0_212, %c1_213, %c0_214] : memref<10x10x64xf32, #tpu.memory_space<vmem>>, vector<8x8x64xf32>
    %231 = vector.shape_cast %230 : vector<8x8x64xf32> to vector<64x64xf32>
    %c1_215 = arith.constant 1 : index
    %c0_216 = arith.constant 0 : index
    %c0_217 = arith.constant 0 : index
    %232 = vector.load %arg4[%c1_215, %c0_216, %c0_217] : memref<9x64x128xf32, #tpu.memory_space<vmem>>, vector<1x64x128xf32>
    %233 = vector.shape_cast %232 : vector<1x64x128xf32> to vector<64x128xf32>
    %cst_218 = arith.constant dense<0.000000e+00> : vector<64x128xf32>
    %234 = tpu.matmul %231, %233, %cst_218 {dimension_numbers = #tpu.dot_dimension_numbers<[1], [0], [0], [1], [0, 0, 1, 1], [], []>} : vector<64x64xf32>, vector<64x128xf32>, vector<64x128xf32> -> vector<64x128xf32>
    %235 = arith.addf %229, %234 : vector<64x128xf32>
    %c0_219 = arith.constant 0 : index
    %c2_220 = arith.constant 2 : index
    %c0_221 = arith.constant 0 : index
    %236 = vector.load %arg16[%c0_219, %c2_220, %c0_221] : memref<10x10x64xf32, #tpu.memory_space<vmem>>, vector<8x8x64xf32>
    %237 = vector.shape_cast %236 : vector<8x8x64xf32> to vector<64x64xf32>
    %c2_222 = arith.constant 2 : index
    %c0_223 = arith.constant 0 : index
    %c0_224 = arith.constant 0 : index
    %238 = vector.load %arg4[%c2_222, %c0_223, %c0_224] : memref<9x64x128xf32, #tpu.memory_space<vmem>>, vector<1x64x128xf32>
    %239 = vector.shape_cast %238 : vector<1x64x128xf32> to vector<64x128xf32>
    %cst_225 = arith.constant dense<0.000000e+00> : vector<64x128xf32>
    %240 = tpu.matmul %237, %239, %cst_225 {dimension_numbers = #tpu.dot_dimension_numbers<[1], [0], [0], [1], [0, 0, 1, 1], [], []>} : vector<64x64xf32>, vector<64x128xf32>, vector<64x128xf32> -> vector<64x128xf32>
    %241 = arith.addf %235, %240 : vector<64x128xf32>
    %c1_226 = arith.constant 1 : index
    %c0_227 = arith.constant 0 : index
    %c0_228 = arith.constant 0 : index
    %242 = vector.load %arg16[%c1_226, %c0_227, %c0_228] : memref<10x10x64xf32, #tpu.memory_space<vmem>>, vector<8x8x64xf32>
    %243 = vector.shape_cast %242 : vector<8x8x64xf32> to vector<64x64xf32>
    %c3_229 = arith.constant 3 : index
    %c0_230 = arith.constant 0 : index
    %c0_231 = arith.constant 0 : index
    %244 = vector.load %arg4[%c3_229, %c0_230, %c0_231] : memref<9x64x128xf32, #tpu.memory_space<vmem>>, vector<1x64x128xf32>
    %245 = vector.shape_cast %244 : vector<1x64x128xf32> to vector<64x128xf32>
    %cst_232 = arith.constant dense<0.000000e+00> : vector<64x128xf32>
    %246 = tpu.matmul %243, %245, %cst_232 {dimension_numbers = #tpu.dot_dimension_numbers<[1], [0], [0], [1], [0, 0, 1, 1], [], []>} : vector<64x64xf32>, vector<64x128xf32>, vector<64x128xf32> -> vector<64x128xf32>
    %247 = arith.addf %241, %246 : vector<64x128xf32>
    %c1_233 = arith.constant 1 : index
    %c1_234 = arith.constant 1 : index
    %c0_235 = arith.constant 0 : index
    %248 = vector.load %arg16[%c1_233, %c1_234, %c0_235] : memref<10x10x64xf32, #tpu.memory_space<vmem>>, vector<8x8x64xf32>
    %249 = vector.shape_cast %248 : vector<8x8x64xf32> to vector<64x64xf32>
    %c4_236 = arith.constant 4 : index
    %c0_237 = arith.constant 0 : index
    %c0_238 = arith.constant 0 : index
    %250 = vector.load %arg4[%c4_236, %c0_237, %c0_238] : memref<9x64x128xf32, #tpu.memory_space<vmem>>, vector<1x64x128xf32>
    %251 = vector.shape_cast %250 : vector<1x64x128xf32> to vector<64x128xf32>
    %cst_239 = arith.constant dense<0.000000e+00> : vector<64x128xf32>
    %252 = tpu.matmul %249, %251, %cst_239 {dimension_numbers = #tpu.dot_dimension_numbers<[1], [0], [0], [1], [0, 0, 1, 1], [], []>} : vector<64x64xf32>, vector<64x128xf32>, vector<64x128xf32> -> vector<64x128xf32>
    %253 = arith.addf %247, %252 : vector<64x128xf32>
    %c1_240 = arith.constant 1 : index
    %c2_241 = arith.constant 2 : index
    %c0_242 = arith.constant 0 : index
    %254 = vector.load %arg16[%c1_240, %c2_241, %c0_242] : memref<10x10x64xf32, #tpu.memory_space<vmem>>, vector<8x8x64xf32>
    %255 = vector.shape_cast %254 : vector<8x8x64xf32> to vector<64x64xf32>
    %c5_243 = arith.constant 5 : index
    %c0_244 = arith.constant 0 : index
    %c0_245 = arith.constant 0 : index
    %256 = vector.load %arg4[%c5_243, %c0_244, %c0_245] : memref<9x64x128xf32, #tpu.memory_space<vmem>>, vector<1x64x128xf32>
    %257 = vector.shape_cast %256 : vector<1x64x128xf32> to vector<64x128xf32>
    %cst_246 = arith.constant dense<0.000000e+00> : vector<64x128xf32>
    %258 = tpu.matmul %255, %257, %cst_246 {dimension_numbers = #tpu.dot_dimension_numbers<[1], [0], [0], [1], [0, 0, 1, 1], [], []>} : vector<64x64xf32>, vector<64x128xf32>, vector<64x128xf32> -> vector<64x128xf32>
    %259 = arith.addf %253, %258 : vector<64x128xf32>
    %c2_247 = arith.constant 2 : index
    %c0_248 = arith.constant 0 : index
    %c0_249 = arith.constant 0 : index
    %260 = vector.load %arg16[%c2_247, %c0_248, %c0_249] : memref<10x10x64xf32, #tpu.memory_space<vmem>>, vector<8x8x64xf32>
    %261 = vector.shape_cast %260 : vector<8x8x64xf32> to vector<64x64xf32>
    %c6_250 = arith.constant 6 : index
    %c0_251 = arith.constant 0 : index
    %c0_252 = arith.constant 0 : index
    %262 = vector.load %arg4[%c6_250, %c0_251, %c0_252] : memref<9x64x128xf32, #tpu.memory_space<vmem>>, vector<1x64x128xf32>
    %263 = vector.shape_cast %262 : vector<1x64x128xf32> to vector<64x128xf32>
    %cst_253 = arith.constant dense<0.000000e+00> : vector<64x128xf32>
    %264 = tpu.matmul %261, %263, %cst_253 {dimension_numbers = #tpu.dot_dimension_numbers<[1], [0], [0], [1], [0, 0, 1, 1], [], []>} : vector<64x64xf32>, vector<64x128xf32>, vector<64x128xf32> -> vector<64x128xf32>
    %265 = arith.addf %259, %264 : vector<64x128xf32>
    %c2_254 = arith.constant 2 : index
    %c1_255 = arith.constant 1 : index
    %c0_256 = arith.constant 0 : index
    %266 = vector.load %arg16[%c2_254, %c1_255, %c0_256] : memref<10x10x64xf32, #tpu.memory_space<vmem>>, vector<8x8x64xf32>
    %267 = vector.shape_cast %266 : vector<8x8x64xf32> to vector<64x64xf32>
    %c7_257 = arith.constant 7 : index
    %c0_258 = arith.constant 0 : index
    %c0_259 = arith.constant 0 : index
    %268 = vector.load %arg4[%c7_257, %c0_258, %c0_259] : memref<9x64x128xf32, #tpu.memory_space<vmem>>, vector<1x64x128xf32>
    %269 = vector.shape_cast %268 : vector<1x64x128xf32> to vector<64x128xf32>
    %cst_260 = arith.constant dense<0.000000e+00> : vector<64x128xf32>
    %270 = tpu.matmul %267, %269, %cst_260 {dimension_numbers = #tpu.dot_dimension_numbers<[1], [0], [0], [1], [0, 0, 1, 1], [], []>} : vector<64x64xf32>, vector<64x128xf32>, vector<64x128xf32> -> vector<64x128xf32>
    %271 = arith.addf %265, %270 : vector<64x128xf32>
    %c2_261 = arith.constant 2 : index
    %c2_262 = arith.constant 2 : index
    %c0_263 = arith.constant 0 : index
    %272 = vector.load %arg16[%c2_261, %c2_262, %c0_263] : memref<10x10x64xf32, #tpu.memory_space<vmem>>, vector<8x8x64xf32>
    %273 = vector.shape_cast %272 : vector<8x8x64xf32> to vector<64x64xf32>
    %c8_264 = arith.constant 8 : index
    %c0_265 = arith.constant 0 : index
    %c0_266 = arith.constant 0 : index
    %274 = vector.load %arg4[%c8_264, %c0_265, %c0_266] : memref<9x64x128xf32, #tpu.memory_space<vmem>>, vector<1x64x128xf32>
    %275 = vector.shape_cast %274 : vector<1x64x128xf32> to vector<64x128xf32>
    %cst_267 = arith.constant dense<0.000000e+00> : vector<64x128xf32>
    %276 = tpu.matmul %273, %275, %cst_267 {dimension_numbers = #tpu.dot_dimension_numbers<[1], [0], [0], [1], [0, 0, 1, 1], [], []>} : vector<64x64xf32>, vector<64x128xf32>, vector<64x128xf32> -> vector<64x128xf32>
    %277 = arith.addf %271, %276 : vector<64x128xf32>
    %278 = vector.extract_strided_slice %69 {offsets = [0, 128], sizes = [64, 128], strides = [1, 1]} : vector<64x256xf32> to vector<64x128xf32>
    %279 = vector.extract_strided_slice %172 {offsets = [0, 64], sizes = [64, 128], strides = [1, 1]} : vector<64x192xf32> to vector<64x128xf32>
    %280 = arith.addf %278, %279 : vector<64x128xf32>
    %281 = arith.addf %280, %277 : vector<64x128xf32>
    %cst_268 = arith.constant dense<0.000000e+00> : vector<128xf32>
    %282 = vector.multi_reduction <add>, %281, %cst_268 [0] : vector<64x128xf32> to vector<128xf32>
    %283 = vector.shape_cast %282 : vector<128xf32> to vector<1x128xf32>
    %284 = arith.mulf %281, %281 : vector<64x128xf32>
    %cst_269 = arith.constant dense<0.000000e+00> : vector<128xf32>
    %285 = vector.multi_reduction <add>, %284, %cst_269 [0] : vector<64x128xf32> to vector<128xf32>
    %286 = vector.shape_cast %285 : vector<128xf32> to vector<1x128xf32>
    %287 = tpu.concatenate %283, %286 in 0 : vector<1x128xf32>, vector<1x128xf32> -> vector<2x128xf32>
    %c0_270 = arith.constant 0 : index
    %c0_271 = arith.constant 0 : index
    %288 = vector.load %arg7[%c0_270, %c0_271] : memref<128x16xf32, #tpu.memory_space<vmem>>, vector<128x16xf32>
    %cst_272 = arith.constant dense<0.000000e+00> : vector<2x16xf32>
    %289 = tpu.matmul %287, %288, %cst_272 {dimension_numbers = #tpu.dot_dimension_numbers<[1], [0], [0], [1], [0, 0, 1, 1], [], []>} : vector<2x128xf32>, vector<128x16xf32>, vector<2x16xf32> -> vector<2x16xf32>
    %cst_273 = arith.constant 0.001953125 : f32
    %290 = vector.broadcast %cst_273 : f32 to vector<2x16xf32>
    %291 = arith.mulf %289, %290 : vector<2x16xf32>
    %292 = vector.extract_strided_slice %291 {offsets = [0, 0], sizes = [1, 16], strides = [1, 1]} : vector<2x16xf32> to vector<1x16xf32>
    %293 = vector.extract_strided_slice %291 {offsets = [1, 0], sizes = [1, 16], strides = [1, 1]} : vector<2x16xf32> to vector<1x16xf32>
    %294 = arith.mulf %292, %292 : vector<1x16xf32>
    %295 = arith.subf %293, %294 : vector<1x16xf32>
    %cst_274 = arith.constant 0.000000e+00 : f32
    %296 = vector.broadcast %cst_274 : f32 to vector<1x16xf32>
    %297 = arith.maximumf %295, %296 : vector<1x16xf32>
    %cst_275 = arith.constant 9.99999974E-6 : f32
    %298 = vector.broadcast %cst_275 : f32 to vector<1x16xf32>
    %299 = arith.addf %297, %298 : vector<1x16xf32>
    %300 = math.rsqrt %299 : vector<1x16xf32>
    %cst_276 = arith.constant 0.000000e+00 : f32
    %301 = vector.broadcast %cst_276 : f32 to vector<1x16xf32>
    %302 = arith.subf %301, %292 : vector<1x16xf32>
    %303 = arith.mulf %302, %300 : vector<1x16xf32>
    %304 = tpu.concatenate %300, %303 in 0 : vector<1x16xf32>, vector<1x16xf32> -> vector<2x16xf32>
    %c0_277 = arith.constant 0 : index
    %c0_278 = arith.constant 0 : index
    %305 = vector.load %arg8[%c0_277, %c0_278] : memref<16x128xf32, #tpu.memory_space<vmem>>, vector<16x128xf32>
    %cst_279 = arith.constant dense<0.000000e+00> : vector<2x128xf32>
    %306 = tpu.matmul %304, %305, %cst_279 {dimension_numbers = #tpu.dot_dimension_numbers<[1], [0], [0], [1], [0, 0, 1, 1], [], []>} : vector<2x16xf32>, vector<16x128xf32>, vector<2x128xf32> -> vector<2x128xf32>
    %307 = vector.extract_strided_slice %306 {offsets = [0, 0], sizes = [1, 128], strides = [1, 1]} : vector<2x128xf32> to vector<1x128xf32>
    %308 = vector.broadcast %307 : vector<1x128xf32> to vector<64x128xf32>
    %309 = arith.mulf %281, %308 : vector<64x128xf32>
    %310 = vector.extract_strided_slice %306 {offsets = [1, 0], sizes = [1, 128], strides = [1, 1]} : vector<2x128xf32> to vector<1x128xf32>
    %311 = vector.broadcast %310 : vector<1x128xf32> to vector<64x128xf32>
    %312 = arith.addf %309, %311 : vector<64x128xf32>
    %cst_280 = arith.constant 0.000000e+00 : f32
    %313 = vector.broadcast %cst_280 : f32 to vector<64x128xf32>
    %314 = arith.maximumf %312, %313 : vector<64x128xf32>
    %cst_281 = arith.constant dense<0.000000e+00> : vector<128xf32>
    %315 = vector.multi_reduction <add>, %314, %cst_281 [0] : vector<64x128xf32> to vector<128xf32>
    %316 = vector.shape_cast %315 : vector<128xf32> to vector<1x128xf32>
    %c0_282 = arith.constant 0 : index
    %c0_283 = arith.constant 0 : index
    %317 = vector.load %arg7[%c0_282, %c0_283] : memref<128x16xf32, #tpu.memory_space<vmem>>, vector<128x16xf32>
    %cst_284 = arith.constant dense<0.000000e+00> : vector<1x16xf32>
    %318 = tpu.matmul %316, %317, %cst_284 {dimension_numbers = #tpu.dot_dimension_numbers<[1], [0], [0], [1], [0, 0, 1, 1], [], []>} : vector<1x128xf32>, vector<128x16xf32>, vector<1x16xf32> -> vector<1x16xf32>
    %cst_285 = arith.constant 0.001953125 : f32
    %319 = vector.broadcast %cst_285 : f32 to vector<1x16xf32>
    %320 = arith.mulf %318, %319 : vector<1x16xf32>
    %c0_286 = arith.constant 0 : index
    %c0_287 = arith.constant 0 : index
    %321 = vector.load %arg9[%c0_286, %c0_287] : memref<1x16xf32, #tpu.memory_space<vmem>>, vector<1x16xf32>
    %322 = arith.mulf %321, %320 : vector<1x16xf32>
    %cst_288 = arith.constant dense<0.000000e+00> : vector<1xf32>
    %323 = vector.multi_reduction <add>, %322, %cst_288 [1] : vector<1x16xf32> to vector<1xf32>
    %324 = vector.shape_cast %323 : vector<1xf32> to vector<1x1xf32>
    %c0_289 = arith.constant 0 : index
    %c0_290 = arith.constant 0 : index
    %325 = vector.load %arg10[%c0_289, %c0_290] : memref<1x1xf32, #tpu.memory_space<vmem>>, vector<1x1xf32>
    %326 = arith.addf %324, %325 : vector<1x1xf32>
    %cst_291 = arith.constant 0.000000e+00 : f32
    %327 = vector.broadcast %cst_291 : f32 to vector<1x1xf32>
    %328 = arith.maximumf %326, %327 : vector<1x1xf32>
    %c0_292 = arith.constant 0 : index
    %c0_293 = arith.constant 0 : index
    %329 = vector.load %arg11[%c0_292, %c0_293] : memref<1x16xf32, #tpu.memory_space<vmem>>, vector<1x16xf32>
    %330 = vector.broadcast %328 : vector<1x1xf32> to vector<1x16xf32>
    %331 = arith.mulf %329, %330 : vector<1x16xf32>
    %cst_294 = arith.constant dense<0.000000e+00> : vector<16xf32>
    %332 = vector.multi_reduction <add>, %331, %cst_294 [0] : vector<1x16xf32> to vector<16xf32>
    %333 = vector.shape_cast %332 : vector<16xf32> to vector<1x16xf32>
    %c0_295 = arith.constant 0 : index
    %c0_296 = arith.constant 0 : index
    %334 = vector.load %arg12[%c0_295, %c0_296] : memref<1x16xf32, #tpu.memory_space<vmem>>, vector<1x16xf32>
    %335 = arith.addf %333, %334 : vector<1x16xf32>
    %336 = arith.negf %335 : vector<1x16xf32>
    %337 = math.exp %336 : vector<1x16xf32>
    %cst_297 = arith.constant 1.000000e+00 : f32
    %338 = vector.broadcast %cst_297 : f32 to vector<1x16xf32>
    %339 = arith.addf %338, %337 : vector<1x16xf32>
    %340 = arith.divf %338, %339 : vector<1x16xf32>
    %c0_298 = arith.constant 0 : index
    %c0_299 = arith.constant 0 : index
    %341 = vector.load %arg8[%c0_298, %c0_299] : memref<16x128xf32, #tpu.memory_space<vmem>>, vector<16x128xf32>
    %cst_300 = arith.constant dense<0.000000e+00> : vector<1x128xf32>
    %342 = tpu.matmul %340, %341, %cst_300 {dimension_numbers = #tpu.dot_dimension_numbers<[1], [0], [0], [1], [0, 0, 1, 1], [], []>} : vector<1x16xf32>, vector<16x128xf32>, vector<1x128xf32> -> vector<1x128xf32>
    %343 = vector.broadcast %342 : vector<1x128xf32> to vector<64x128xf32>
    %344 = arith.mulf %314, %343 : vector<64x128xf32>
    %345 = vector.shape_cast %344 : vector<64x128xf32> to vector<8x8x128xf32>
    %c0_301 = arith.constant 0 : index
    %c0_302 = arith.constant 0 : index
    %c0_303 = arith.constant 0 : index
    %c0_304 = arith.constant 0 : index
    %346 = vector.load %arg13[%c0_301, %c0_302, %c0_303, %c0_304] : memref<1x8x8x128xf32, #tpu.memory_space<vmem>>, vector<1x8x8x128xf32>
    %347 = vector.shape_cast %346 : vector<1x8x8x128xf32> to vector<8x8x128xf32>
    %348 = vector.shape_cast %345 : vector<8x8x128xf32> to vector<1x8x8x128xf32>
    tpu.vector_store %arg13[%c0_301, %c0_302, %c0_303, %c0_304], %348 {strides = array<i32>} : memref<1x8x8x128xf32, #tpu.memory_space<vmem>>, vector<1x8x8x128xf32>,
    return
  }
  func.func @transform_0(%arg0: i32) -> (i32, i32, i32, i32) {
    %c0_i32 = arith.constant 0 : i32
    %c0_i32_0 = arith.constant 0 : i32
    %c0_i32_1 = arith.constant 0 : i32
    %c0_i32_2 = arith.constant 0 : i32
    return %arg0, %c0_i32, %c0_i32_0, %c0_i32_1 : i32, i32, i32, i32
  }
  func.func @transform_1(%arg0: i32) -> (i32, i32, i32) {
    %c0_i32 = arith.constant 0 : i32
    %c0_i32_0 = arith.constant 0 : i32
    %c0_i32_1 = arith.constant 0 : i32
    %c0_i32_2 = arith.constant 0 : i32
    return %c0_i32, %c0_i32_0, %c0_i32_1 : i32, i32, i32
  }
  func.func @transform_2(%arg0: i32) -> (i32, i32, i32) {
    %c0_i32 = arith.constant 0 : i32
    %c0_i32_0 = arith.constant 0 : i32
    %c0_i32_1 = arith.constant 0 : i32
    %c0_i32_2 = arith.constant 0 : i32
    return %c0_i32, %c0_i32_0, %c0_i32_1 : i32, i32, i32
  }
  func.func @transform_3(%arg0: i32) -> (i32, i32, i32) {
    %c0_i32 = arith.constant 0 : i32
    %c0_i32_0 = arith.constant 0 : i32
    %c0_i32_1 = arith.constant 0 : i32
    %c0_i32_2 = arith.constant 0 : i32
    return %c0_i32, %c0_i32_0, %c0_i32_1 : i32, i32, i32
  }
  func.func @transform_4(%arg0: i32) -> (i32, i32) {
    %c0_i32 = arith.constant 0 : i32
    %c0_i32_0 = arith.constant 0 : i32
    %c0_i32_1 = arith.constant 0 : i32
    return %c0_i32, %c0_i32_0 : i32, i32
  }
  func.func @transform_5(%arg0: i32) -> (i32, i32) {
    %c0_i32 = arith.constant 0 : i32
    %c0_i32_0 = arith.constant 0 : i32
    %c0_i32_1 = arith.constant 0 : i32
    return %c0_i32, %c0_i32_0 : i32, i32
  }
  func.func @transform_6(%arg0: i32) -> (i32, i32) {
    %c0_i32 = arith.constant 0 : i32
    %c0_i32_0 = arith.constant 0 : i32
    %c0_i32_1 = arith.constant 0 : i32
    return %c0_i32, %c0_i32_0 : i32, i32
  }
  func.func @transform_7(%arg0: i32) -> (i32, i32) {
    %c0_i32 = arith.constant 0 : i32
    %c0_i32_0 = arith.constant 0 : i32
    %c0_i32_1 = arith.constant 0 : i32
    return %c0_i32, %c0_i32_0 : i32, i32
  }
  func.func @transform_8(%arg0: i32) -> (i32, i32) {
    %c0_i32 = arith.constant 0 : i32
    %c0_i32_0 = arith.constant 0 : i32
    %c0_i32_1 = arith.constant 0 : i32
    return %c0_i32, %c0_i32_0 : i32, i32
  }
  func.func @transform_9(%arg0: i32) -> (i32, i32) {
    %c0_i32 = arith.constant 0 : i32
    %c0_i32_0 = arith.constant 0 : i32
    %c0_i32_1 = arith.constant 0 : i32
    return %c0_i32, %c0_i32_0 : i32, i32
  }
  func.func @transform_10(%arg0: i32) -> (i32, i32) {
    %c0_i32 = arith.constant 0 : i32
    %c0_i32_0 = arith.constant 0 : i32
    %c0_i32_1 = arith.constant 0 : i32
    return %c0_i32, %c0_i32_0 : i32, i32
  }
  func.func @transform_11(%arg0: i32) -> (i32, i32) {
    %c0_i32 = arith.constant 0 : i32
    %c0_i32_0 = arith.constant 0 : i32
    %c0_i32_1 = arith.constant 0 : i32
    return %c0_i32, %c0_i32_0 : i32, i32
  }
  func.func @transform_12(%arg0: i32) -> (i32, i32, i32, i32) {
    %c0_i32 = arith.constant 0 : i32
    %c0_i32_0 = arith.constant 0 : i32
    %c0_i32_1 = arith.constant 0 : i32
    %c0_i32_2 = arith.constant 0 : i32
    return %arg0, %c0_i32, %c0_i32_0, %c0_i32_1 : i32, i32, i32, i32
  }
}

</mosaic_0001>

<bundles_post_ra>
// kernel: tpu_custom_call.1
= control target key start
LH: loop header
LB: loop body
LE: loop exit
PB: predicated region body
PF: predicated region fallthrough
CT: control target
= control target key end

     0   :  { %s10347_s0 = inlined_call_operand.hbm [shape: f32[2,8,8,128], index: 0, kind: input, shape index: {}]   ;;  %s10348_s1 = inlined_call_operand.hbm [shape: f32[9,128,256], index: 1, kind: input, shape index: {}]   ;;  %s10349_s2 = inlined_call_operand.hbm [shape: f32[9,64,192], index: 2, kind: input, shape index: {}]   ;;  %s10350_s3 = inlined_call_operand.hbm [shape: f32[9,64,128], index: 3, kind: input, shape index: {}]   ;;  %s10351_s4 = inlined_call_operand.vmem [shape: f32[64,8], index: 4, kind: input, shape index: {}]   ;;  %s10352_s5 = inlined_call_operand.hbm [shape: f32[8,64], index: 5, kind: input, shape index: {}]   ;;  %s10353_s6 = inlined_call_operand.vmem [shape: f32[128,16], index: 6, kind: input, shape index: {}]   ;;  %s10354_s7 = inlined_call_operand.hbm [shape: f32[16,128], index: 7, kind: input, shape index: {}]   ;;  %s10355_s8 = inlined_call_operand.hbm [shape: f32[1,16], index: 8, kind: input, shape index: {}]   ;;  %s10356_s9 = inlined_call_operand.<no memory space> [shape: f32[1,1], index: 9, kind: input, shape index: {}]   ;;  %s10357_s10 = inlined_call_operand.hbm [shape: f32[1,16], index: 10, kind: input, shape index: {}]   ;;  %s10358_s11 = inlined_call_operand.hbm [shape: f32[1,16], index: 11, kind: input, shape index: {}]   ;;  %s10359_s12 = inlined_call_operand.hbm [shape: f32[2,8,8,128], index: 12, kind: output, shape index: {}]  }
   0x1   :  { %10370 = sst [smem:[#allocation28_spill]] %s10348_s1  ;;  %v17_v0 = vstv %s10356_s9 }
   0x2   :  { %10371 = sst [smem:[#allocation29_spill]] %s10351_s4  ;;  %18 = vst [vmem:[#allocation5] sm:$0x1] %v17_v0 }
   0x3   :  { %10372 = sst [smem:[#allocation30_spill]] %s10353_s6 }
   0x4   :  { %10373 = sst [smem:[#allocation31_spill]] %s10359_s12 }
   0x5   :  { %19 = vsyncpa [#allocation7], 0 }
   0x6   :  { %21 = vsyncpa [#allocation7 + $0x1], 0 }
   0x7   :  { %22 = vsyncpa [#allocation10], 0 }
   0x8   :  { %23 = vsyncpa [#allocation13], 0 }
   0x9   :  { %24 = vsyncpa [#allocation16], 0 }
   0xa   :  { %25 = vsyncpa [#allocation19], 0 }
   0xb   :  { %26 = vsyncpa [#allocation8], 0 }
   0xc   :  { %28 = vsyncpa [#allocation8 + $0x1], 0  ;;  %s8674_s23 = smov 0   ;;  %s8676_s24 = smov 0  }
   0xd   :  { %s8678_s25 = smov 0   ;;  %s8680_s26 = smov 0  }
   0xe LB: > { %s8585_s9 = smov [#allocation9]   ;;  %s8695_s28 = sadd.s32 4294967295, %s8583_s26   ;;  %s8583_s26 = sphi %s8680_s26, %s10406_s26   ;;  %s8579_s25 = sphi %s8678_s25, %s10405_s25   ;;  %s8575_s24 = sphi %s8676_s24, %s10404_s24   ;;  %s8571_s23 = sphi %s8674_s23, %s10403_s23  }
   0xf   : > { %s334_s27 = sshll.u32 %s8585_s9, 4  ;;  %p6347_p0 = scmp.ge.s32.totalorder %s8583_s26, 1  ;;  %s8700_s27 = int_to_ptr.vmem [resolvable:$true] %s334_s27 }
  0x10   : > { %p10364_p1 = scmp.eq.s32.totalorder %s8695_s28, 0  ;;  %p322_p2 = scmp.lt.s32.totalorder %s8583_s26, 3 }
  0x11   : > { %s8586_s30 = smov [#allocation12]   ;;  %s8587_s15 = smov [#allocation15]  }
  0x12   : > { %p8702_p3 = pnand %p6347_p0, %p322_p2  ;;  %s360_s13 = sshll.u32 %s8586_s30, 4  ;;  %s8715_s13 = int_to_ptr.vmem [resolvable:$true] %s360_s13 }
  0x13   : > { %s8717_s16 = sshll.u32 %s8587_s15, 4  ;;  %s10376_s1 = sld [smem:[#allocation28_spill]]  ;;  %s391_s16 = int_to_ptr.vmem [resolvable:$true] %s8717_s16 }
  0x14   : > { %s10374_s29 = scalar_select %p8702_p3, 1, 0 }
  0x15   : > { %p8129_p5 = pneg %p8702_p3 }
  0x17   : > { %p8711_p6 = pnand %p8129_p5, %p10364_p1 }
  0x19   : > { %s8247_s19 = scalar_lea.hbm %s10376_s1, 36864  ;;  %p8727_p8 = pneg %p8711_p6 }
  0x1a   : > { %p8248_p7 = scmp.ne.s32.totalorder %s10376_s1, %s8247_s19  ;;  %p8254_p11 = scmp.lt.u32.totalorder %s8247_s19, %s10376_s1 }
  0x1c   : > { %p8250_p9 = pnand %p8727_p8, %p8248_p7 }
  0x1e   : > { %p8251_p10 = pneg %p8250_p9 }
  0x20   : > { %p8256_p12 = pnand %p8254_p11, %p8251_p10 }
  0x22   : > { %8259 = shalt.err (!%p8256_p12)
}
  0x23   : > { %s8260_s15 = scalar_lea.vmem %s8700_s27, 36864  ;;  %p8268_p5 = scmp.lt.s32.totalorder %s8700_s27, %s8700_s27 }
  0x24   : > { %p8261_p13 = scmp.ne.s32.totalorder %s8700_s27, %s8260_s15  ;;  %p8269_p4 = scmp.lt.s32.totalorder %s8260_s15, %s8260_s15 }
  0x26   : > { %p8263_p0 = pnand %p8261_p13, %p8727_p8  ;;  %p8270_p7 = por %p8269_p4, %p8268_p5 }
  0x28   : > { %p8264_p2 = pneg %p8263_p0 }
  0x2a   : > { %p8271_p9 = pnand %p8270_p7, %p8264_p2 }
  0x2c   : > { %8274 = shalt.err (!%p8271_p9)
}
  0x2d   : > { %s10363_s17 = smov 256   ;;  %s10366_s18 = smov 16  }
  0x2e   : > { %8132 = dma.hbm_to_vmem [thread:$0]  (!%p8711_p6), %s10376_s1, 36864, %s8700_s27, [#allocation10], %s10363_s17, %s10363_s17, %s10366_s18  }
  0x2f   : > { %s8275_s30 = scalar_lea.hbm %s10350_s3, 9216 }
  0x30   : > { %p8276_p4 = scmp.ne.s32.totalorder %s10350_s3, %s8275_s30  ;;  %p8282_p12 = scmp.lt.u32.totalorder %s8275_s30, %s10350_s3 }
  0x32   : > { %p8278_p10 = pnand %p8276_p4, %p8727_p8 }
  0x34   : > { %p8279_p11 = pneg %p8278_p10 }
  0x36   : > { %p8284_p13 = pnand %p8282_p12, %p8279_p11 }
  0x38   : > { %8287 = shalt.err (!%p8284_p13)
}
  0x39   : > { %s8288_s27 = scalar_lea.vmem %s8715_s13, 9216  ;;  %p8296_p7 = scmp.lt.s32.totalorder %s8715_s13, %s8715_s13 }
  0x3a   : > { %p8289_p0 = scmp.ne.s32.totalorder %s8715_s13, %s8288_s27  ;;  %p8297_p9 = scmp.lt.s32.totalorder %s8288_s27, %s8288_s27 }
  0x3c   : > { %p8291_p2 = pnand %p8289_p0, %p8727_p8  ;;  %p8298_p4 = por %p8297_p9, %p8296_p7 }
  0x3e   : > { %p8292_p5 = pneg %p8291_p2 }
  0x40   : > { %p8299_p10 = pnand %p8298_p4, %p8292_p5 }
  0x42   : > { %8302 = shalt.err (!%p8299_p10)
}
  0x43   : > { %s10367_s12 = smov 128   ;;  %s10368_s4 = smov 8  }
  0x44   : > { %8138 = dma.hbm_to_vmem [thread:$0]  (!%p8711_p6), %s10350_s3, 9216, %s8715_s13, [#allocation13], %s10367_s12, %s10367_s12, %s10368_s4  }
  0x45   : > { %s8303_s9 = scalar_lea.hbm %s10354_s7, 256 }
  0x46   : > { %p8304_p11 = scmp.ne.s32.totalorder %s10354_s7, %s8303_s9  ;;  %p8310_p0 = scmp.lt.u32.totalorder %s8303_s9, %s10354_s7 }
  0x48   : > { %p8306_p12 = pnand %p8304_p11, %p8727_p8 }
  0x4a   : > { %p8307_p13 = pneg %p8306_p12 }
  0x4c   : > { %p8312_p2 = pnand %p8310_p0, %p8307_p13 }
  0x4e   : > { %8315 = shalt.err (!%p8312_p2)
}
  0x4f   : > { %s8316_s6 = scalar_lea.vmem %s391_s16, 256  ;;  %p8324_p4 = scmp.lt.s32.totalorder %s391_s16, %s391_s16 }
  0x50   : > { %p8317_p5 = scmp.ne.s32.totalorder %s391_s16, %s8316_s6  ;;  %p8325_p10 = scmp.lt.s32.totalorder %s8316_s6, %s8316_s6 }
  0x52   : > { %p8319_p7 = pnand %p8317_p5, %p8727_p8  ;;  %p8326_p1 = por %p8325_p10, %p8324_p4 }
  0x54   : > { %p8320_p9 = pneg %p8319_p7 }
  0x56   : > { %p8327_p3 = pnand %p8326_p1, %p8320_p9 }
  0x58   : > { %8330 = shalt.err (!%p8327_p3)
}
  0x59   : > { %8144 = dma.hbm_to_vmem [thread:$0]  (!%p8711_p6), %s10354_s7, 256, %s391_s16, [#allocation16], %s10367_s12, %s10367_s12, %s10368_s4  }
  0x5a   : > { %s8592_s19 = smov [#allocation18]   ;;  %s8593_s21 = smov [#allocation11]  }
  0x5b   : > { %s418_s20 = sshll.u32 %s8592_s19, 4  ;;  %s347_s9 = sshll.u32 %s8593_s21, 4  ;;  %s419_s20 = int_to_ptr.vmem [resolvable:$true] %s418_s20  ;;  %s348_s9 = int_to_ptr.vmem [resolvable:$true] %s347_s9 }
  0x5c   : > { %s8331_s27 = scalar_lea.hbm %s10357_s10, 16 }
  0x5d   : > { %p8332_p1 = scmp.ne.s32.totalorder %s10357_s10, %s8331_s27  ;;  %p8338_p12 = scmp.lt.u32.totalorder %s8331_s27, %s10357_s10 }
  0x5f   : > { %p8334_p3 = pnand %p8332_p1, %p8727_p8 }
  0x61   : > { %p8335_p11 = pneg %p8334_p3 }
  0x63   : > { %p8340_p13 = pnand %p8338_p12, %p8335_p11 }
  0x65   : > { %8343 = shalt.err (!%p8340_p13)
}
  0x66   : > { %s8344_s16 = scalar_lea.vmem %s419_s20, 16  ;;  %s8351_s17 = scalar_lea.vmem %s419_s20, 32 }
  0x67   : > { %p8345_p0 = scmp.ne.s32.totalorder %s419_s20, %s8344_s16  ;;  %p8352_p7 = scmp.lt.s32.totalorder %s419_s20, %s419_s20 }
  0x68   : > { %p8353_p9 = scmp.lt.s32.totalorder %s8351_s17, %s8344_s16 }
  0x69   : > { %p8347_p2 = pnand %p8345_p0, %p8727_p8 }
  0x6a   : > { %p8354_p4 = por %p8353_p9, %p8352_p7 }
  0x6b   : > { %p8348_p5 = pneg %p8347_p2 }
  0x6d   : > { %p8355_p10 = pnand %p8354_p4, %p8348_p5 }
  0x6f   : > { %8358 = shalt.err (!%p8355_p10)
}
  0x70   : > { %8150 = dma.hbm_to_vmem [thread:$0]  (!%p8711_p6), %s10357_s10, 16, %s419_s20, [#allocation19]  }
  0x71   : > { %s8359_s30 = scalar_lea.hbm %s10349_s2, 18432 }
  0x72   : > { %p8360_p1 = scmp.ne.s32.totalorder %s10349_s2, %s8359_s30  ;;  %p8366_p12 = scmp.lt.u32.totalorder %s8359_s30, %s10349_s2 }
  0x74   : > { %p8362_p3 = pnand %p8360_p1, %p8727_p8 }
  0x76   : > { %p8363_p11 = pneg %p8362_p3 }
  0x78   : > { %p8368_p13 = pnand %p8366_p12, %p8363_p11 }
  0x7a   : > { %8371 = shalt.err (!%p8368_p13)
}
  0x7b   : > { %s8372_s16 = scalar_lea.vmem %s348_s9, 18432  ;;  %p8380_p7 = scmp.lt.s32.totalorder %s348_s9, %s348_s9 }
  0x7c   : > { %p8373_p0 = scmp.ne.s32.totalorder %s348_s9, %s8372_s16  ;;  %p8381_p9 = scmp.lt.s32.totalorder %s8372_s16, %s8372_s16 }
  0x7e   : > { %p8375_p2 = pnand %p8373_p0, %p8727_p8  ;;  %p8382_p4 = por %p8381_p9, %p8380_p7 }
  0x80   : > { %p8376_p5 = pneg %p8375_p2 }
  0x82   : > { %p8383_p10 = pnand %p8382_p4, %p8376_p5 }
  0x84   : > { %8386 = shalt.err (!%p8383_p10)
}
  0x85   : > { %s10378_s20 = smov 16   ;;  %s10379_s17 = smov 256  }
  0x86   : > { %8135 = dma.hbm_to_vmem [thread:$0]  (!%p8711_p6), %s10349_s2, 18432, %s348_s9, [#allocation10], %s10379_s17, %s10379_s17, %s10378_s20  }
  0x87   : > { %s8594_s1 = smov [#allocation14]   ;;  %s8595_s30 = smov [#allocation17]  }
  0x88   : > { %s377_s21 = sshll.u32 %s8594_s1, 4  ;;  %s404_s15 = sshll.u32 %s8595_s30, 4  ;;  %s378_s21 = int_to_ptr.vmem [resolvable:$true] %s377_s21  ;;  %s405_s15 = int_to_ptr.vmem [resolvable:$true] %s404_s15 }
  0x89   : > { %s8387_s13 = scalar_lea.hbm %s10352_s5, 128 }
  0x8a   : > { %p8388_p1 = scmp.ne.s32.totalorder %s10352_s5, %s8387_s13  ;;  %p8394_p12 = scmp.lt.u32.totalorder %s8387_s13, %s10352_s5 }
  0x8c   : > { %p8390_p3 = pnand %p8388_p1, %p8727_p8 }
  0x8e   : > { %p8391_p11 = pneg %p8390_p3 }
  0x90   : > { %p8396_p13 = pnand %p8394_p12, %p8391_p11 }
  0x92   : > { %8399 = shalt.err (!%p8396_p13)
}
  0x93   : > { %s8400_s9 = scalar_lea.vmem %s378_s21, 128  ;;  %p8408_p7 = scmp.lt.s32.totalorder %s378_s21, %s378_s21 }
  0x94   : > { %p8401_p0 = scmp.ne.s32.totalorder %s378_s21, %s8400_s9  ;;  %p8409_p9 = scmp.lt.s32.totalorder %s8400_s9, %s8400_s9 }
  0x96   : > { %p8403_p2 = pnand %p8401_p0, %p8727_p8  ;;  %p8410_p4 = por %p8409_p9, %p8408_p7 }
  0x98   : > { %p8404_p5 = pneg %p8403_p2 }
  0x9a   : > { %p8411_p10 = pnand %p8410_p4, %p8404_p5 }
  0x9c   : > { %8414 = shalt.err (!%p8411_p10)
}
  0x9d   : > { %8141 = dma.hbm_to_vmem [thread:$0]  (!%p8711_p6), %s10352_s5, 128, %s378_s21, [#allocation13]  }
  0x9e   : > { %s8415_s19 = scalar_lea.hbm %s10355_s8, 16 }
  0x9f   : > { %p8416_p1 = scmp.ne.s32.totalorder %s10355_s8, %s8415_s19  ;;  %p8422_p12 = scmp.lt.u32.totalorder %s8415_s19, %s10355_s8 }
  0xa1   : > { %p8418_p3 = pnand %p8416_p1, %p8727_p8 }
  0xa3   : > { %p8419_p11 = pneg %p8418_p3 }
  0xa5   : > { %p8424_p13 = pnand %p8422_p12, %p8419_p11 }
  0xa7   : > { %8427 = shalt.err (!%p8424_p13)
}
  0xa8   : > { %s8428_s13 = scalar_lea.vmem %s405_s15, 16  ;;  %s8435_s21 = scalar_lea.vmem %s405_s15, 32 }
  0xa9   : > { %p8429_p0 = scmp.ne.s32.totalorder %s405_s15, %s8428_s13  ;;  %p8436_p7 = scmp.lt.s32.totalorder %s405_s15, %s405_s15 }
  0xaa   : > { %p8437_p9 = scmp.lt.s32.totalorder %s8435_s21, %s8428_s13 }
  0xab   : > { %p8431_p2 = pnand %p8429_p0, %p8727_p8 }
  0xac   : > { %p8438_p4 = por %p8437_p9, %p8436_p7 }
  0xad   : > { %p8432_p5 = pneg %p8431_p2 }
  0xaf   : > { %p8439_p10 = pnand %p8438_p4, %p8432_p5 }
  0xb1   : > { %8442 = shalt.err (!%p8439_p10)
}
  0xb2   : > { %8147 = dma.hbm_to_vmem [thread:$0]  (!%p8711_p6), %s10355_s8, 16, %s405_s15, [#allocation16]  }
  0xb3   : > { %s8596_s9 = smov [#allocation20]   ;;  %s8443_s17 = scalar_lea.hbm %s10358_s11, 16 }
  0xb4   : > { %s429_s12 = sshll.u32 %s8596_s9, 4  ;;  %p8444_p1 = scmp.ne.s32.totalorder %s10358_s11, %s8443_s17  ;;  %s430_s12 = int_to_ptr.vmem [resolvable:$true] %s429_s12 }
  0xb5   : > { %p8450_p12 = scmp.lt.u32.totalorder %s8443_s17, %s10358_s11 }
  0xb6   : > { %p8446_p3 = pnand %p8444_p1, %p8727_p8 }
  0xb8   : > { %p8447_p11 = pneg %p8446_p3 }
  0xba   : > { %p8452_p13 = pnand %p8450_p12, %p8447_p11 }
  0xbc   : > { %8455 = shalt.err (!%p8452_p13)
}
  0xbd   : > { %s8456_s15 = scalar_lea.vmem %s430_s12, 16  ;;  %s8463_s6 = scalar_lea.vmem %s430_s12, 32 }
  0xbe   : > { %p8457_p0 = scmp.ne.s32.totalorder %s430_s12, %s8456_s15  ;;  %p8464_p7 = scmp.lt.s32.totalorder %s430_s12, %s430_s12 }
  0xbf   : > { %p8465_p9 = scmp.lt.s32.totalorder %s8463_s6, %s8456_s15 }
  0xc0   : > { %p8459_p2 = pnand %p8457_p0, %p8727_p8 }
  0xc1   : > { %p8466_p4 = por %p8465_p9, %p8464_p7 }
  0xc2   : > { %p8460_p5 = pneg %p8459_p2 }
  0xc4   : > { %p8467_p10 = pnand %p8466_p4, %p8460_p5 }
  0xc6   : > { %8470 = shalt.err (!%p8467_p10)
}
  0xc7   : > { %8153 = dma.hbm_to_vmem [thread:$0]  (!%p8711_p6), %s10358_s11, 16, %s430_s12, [#allocation19]  }
  0xc8   : > { %s6346_s22 = sadd.s32 4294967294, %s8583_s26   ;;  %s8894_s14 = sadd.s32 1, %s8583_s26  }
  0xc9   : > { %s38_s16 = ssub.s32 %s8583_s26, %s8894_s14  ;;  %s41_s18 = sadd.s32 1, %s8579_s25 }
  0xca   : > { %p39_p8 = scmp.eq.s32.totalorder %s38_s16, 0  ;;  %p48_p1 = scmp.ne.s32.totalorder %s8579_s25, %s8575_s24 }
  0xcb   : > { %p49_p3 = scmp.eq.s32.totalorder %s8583_s26, 0  ;;  %p54_p11 = scmp.ne.s32.totalorder %s8575_s24, %s8571_s23 }
  0xcc   : > { %s8905_s9 = scalar_select %p39_p8, %s8579_s25, %s41_s18  }
  0xcd   : > { %p8907_p12 = por %p49_p3, %p48_p1  ;;  %p10381_p13 = scmp.eq.s32.totalorder %s8695_s28, 0 }
  0xce   : > { %p309_p0 = scmp.eq.s32.totalorder %s8695_s28, 1  ;;  %p315_p2 = scmp.eq.s32.totalorder %s6346_s22, 1 }
  0xcf   : > { %p8913_p6 = por %p10381_p13, %p54_p11  ;;  %p8170_p5 = scmp.lt.s32.totalorder %s8583_s26, 2 }
  0xd0   : > { %s440_s4 = sand.u32 1, %s8579_s25   ;;  %p8920_p7 = por %p309_p0, %p48_p1 }
  0xd1   : > { %p8924_p9 = por %p315_p2, %p54_p11  ;;  %s6357_s1 = sshll.u32 %s440_s4, 6 }
  0xd2   : > { %s10383_s17 = scalar_select %p8920_p7, 1, 0 }
  0xd3   : > { %s10384_s19 = scalar_select %p8924_p9, 1, 0 }
  0xd4   : > { %s6527_s30 = sshll.u32 %s8583_s26, 10  ;;  %s444_s13 = scalar_lea.vmem [#allocation6], %s6357_s1 }
  0xd5   : > { %s8932_s6 = scalar_lea.hbm %s10347_s0, %s6527_s30  ;;  %s451_s21 = sshll.u32 %s444_s13, 4  ;;  %s8934_s21 = int_to_ptr.vmem [resolvable:$true] %s451_s21 }
  0xd6   : > { %p8938_p4 = pnand %p8170_p5, %p8907_p12  ;;  %s8942_s16 = scalar_lea.sflag [#allocation7], %s440_s4 }
  0xd7   : > { %s8471_s18 = scalar_lea.hbm %s8932_s6, 1024  ;;  %s8476_s20 = scalar_lea.hbm %s10347_s0, 2048 }
  0xd8   : > { %p8472_p10 = scmp.ne.s32.totalorder %s8932_s6, %s8471_s18  ;;  %p8473_p8 = pneg %p8938_p4 }
  0xd9   : > { %p8477_p11 = scmp.lt.u32.totalorder %s8932_s6, %s10347_s0  ;;  %p8478_p12 = scmp.lt.u32.totalorder %s8476_s20, %s8471_s18 }
  0xda   : > { %p8474_p1 = pnand %p8473_p8, %p8472_p10  ;;  %p8480_p0 = scmp.lt.u32.totalorder %s8471_s18, %s8932_s6 }
  0xdb   : > { %p8479_p13 = por %p8478_p12, %p8477_p11 }
  0xdc   : > { %p8475_p3 = pneg %p8474_p1 }
  0xdd   : > { %p8481_p2 = por %p8480_p0, %p8479_p13 }
  0xdf   : > { %p8482_p5 = pnand %p8481_p2, %p8475_p3 }
  0xe1   : > { %8485 = shalt.err (!%p8482_p5)
}
  0xe2   : > { %s8486_s4 = scalar_lea.vmem %s8934_s21, 1024  ;;  %s8597_s13 = smov [#allocation6]  }
  0xe3   : > { %p8487_p10 = scmp.ne.s32.totalorder %s8934_s21, %s8486_s4  ;;  %s8491_s1 = sshll.u32 %s8597_s13, 4  ;;  %s8492_s1 = int_to_ptr.vmem [resolvable:$false] %s8491_s1 }
  0xe4   : > { %s8493_s30 = scalar_lea.vmem %s8492_s1, 2048  ;;  %p8494_p7 = scmp.lt.s32.totalorder %s8934_s21, %s8492_s1 }
  0xe5   : > { %p8489_p1 = pnand %p8487_p10, %p8473_p8  ;;  %p8495_p11 = scmp.lt.s32.totalorder %s8493_s30, %s8486_s4 }
  0xe7   : > { %p8490_p9 = pneg %p8489_p1  ;;  %p8496_p12 = por %p8495_p11, %p8494_p7 }
  0xe9   : > { %p8497_p13 = pnand %p8496_p12, %p8490_p9 }
  0xeb   : > { %8500 = shalt.err (!%p8497_p13)
}
  0xec   : > { %s10386_s18 = smov 8   ;;  %s10387_s20 = smov 128  }
  0xed   : > { %8157 = dma.hbm_to_vmem [thread:$0]  (!%p8938_p4), %s8932_s6, 1024, %s8934_s21, %s8942_s16, %s10387_s20, %s10387_s20, %s10386_s18  }
  0xee   : > { %p10388_p8 = scmp.ne.s32.totalorder %s10374_s29, 0 }
  0xef   : > { %s8976_s27 = sand.u32 (!%p10388_p8), 1, %s8575_s24  }
  0xf0   : > { %463 = sbr.rel (%p10388_p8) target bundleno = 4310 (0x10d6), region = 68  ;;  %s6361_s15 = sshll.u32 (!%p10388_p8), %s8976_s27, 6 }
  0xf1   : > { %s466_s4 = scalar_lea.sflag (!%p10388_p8), [#allocation7], %s8976_s27  ;;  %s8982_s22 = scalar_lea.vmem (!%p10388_p8), [#allocation6], %s6361_s15 }
  0xf7   : > { %8546 = dma.done.wait (%p8913_p6), %s466_s4, 1024  }
  0xf8   : > { %8548 = vsyncadd (%p8913_p6), %s466_s4, 4294966272  ;;  %p10389_p7 = scmp.eq.s32.totalorder %s8695_s28, 0 }
  0xfa   : > { %8550 = dma.done.wait (%p10389_p7), [#allocation10], 55296   ;;  %p10390_p9 = pmov %p10389_p7 }
  0xfb   : > { %p10391_p4 = pmov %p10389_p7 }
  0xfc   : > { %8552 = vsyncadd (%p10390_p9), [#allocation10], 4294912000 }
  0xfd   : > { %8554 = dma.done.wait (%p10391_p4), [#allocation13], 9344   ;;  %p10392_p3 = pmov %p10391_p4 }
  0xff   : > { %8556 = vsyncadd (%p10392_p3), [#allocation13], 4294957952  ;;  %p10393_p0 = pmov %p10392_p3 }
 0x101   : > { %8558 = dma.done.wait (%p10393_p0), [#allocation16], 272   ;;  %p10394_p2 = pmov %p10393_p0 }
 0x102   : > { %p10395_p6 = pmov %p10393_p0 }
 0x103   : > { %8560 = vsyncadd (%p10394_p2), [#allocation16], 4294967024 }
 0x104   : > { %8562 = dma.done.wait (%p10395_p6), [#allocation19], 32   ;;  %p10396_p5 = pmov %p10393_p0 }
 0x105   : > { %v8598_v1 = vmov 0.0   ;;  %v630_v2 = vld [vmem:[#allocation9 + $0x108] sm:$0xff]  ;;  %v632_v3 = vld [vmem:[#allocation9 + $0x118] sm:$0xff]  ;;  %v629_v4 = vld [vmem:[#allocation9 + $0x100] sm:$0xff]  ;;  %vm2078_vm0 = vcmask 523264   ;;  %s10397_s6 = sld [smem:[#allocation29_spill]] }
 0x106   : > { %8564 = vsyncadd (%p10396_p5), [#allocation19], 4294967264  ;;  %725 = vmatprep.mubr.f32.mxu0 %v8598_v1  ;;  %550 = vst [vmem:[#allocation2] sm:$0xff] %v8598_v1  ;;  %v7119_v5 = vpack.c.bf16 %v632_v3, %v630_v2  ;;  %v631_v6 = vld [vmem:[#allocation9 + $0x110] sm:$0xff]  ;;  %v634_v7 = vld [vmem:[#allocation9 + $0x128] sm:$0xff]  ;;  %vm8600_vm1 = vmmov 0  }
 0x107   : > { %551 = vst [vmem:[#allocation2 + $0x8] sm:$0x3] %v8598_v1  ;;  %553 = vst [vmem:[#allocation2 + $0x90] sm:$0xff] %v8598_v1  ;;  %v636_v8 = vld [vmem:[#allocation9 + $0x138] sm:$0xff]  ;;  %v7121_v9 = vpack.c.bf16 %v631_v6, %v629_v4  ;;  %v633_v11 = vld [vmem:[#allocation9 + $0x120] sm:$0xff]  ;;  %vm2129_vm2 = vcmask 1040384  }
 0x108   : > { %554 = vst [vmem:[#allocation2 + $0x98] sm:$0x3] %v8598_v1  ;;  %556 = vst [vmem:[#allocation2 + $0x10] sm:$0x1] %v8598_v1  ;;  %v7123_v10 = vpack.c.bf16 %v636_v8, %v634_v7  ;;  %v635_v12 = vld [vmem:[#allocation9 + $0x130] sm:$0xff]  ;;  %v638_v13 = vld [vmem:[#allocation9 + $0x148] sm:$0xff]  ;;  %7120 = vmatprep.subr.bf16.mxu0 %v7119_v5 }
 0x109   : > { %557 = vst [vmem:[#allocation2 + $0x20] sm:$0x1] %v8598_v1  ;;  %558 = vst [vmem:[#allocation2 + $0x30] sm:$0x1] %v8598_v1  ;;  %v640_v14 = vld [vmem:[#allocation9 + $0x158] sm:$0xff]  ;;  %7122 = vmatpush1.bf16.msra.mxu0 %v7121_v9  ;;  %v7125_v15 = vpack.c.bf16 %v635_v12, %v633_v11  ;;  %v637_v17 = vld [vmem:[#allocation9 + $0x140] sm:$0xff] }
 0x10a   : > { %559 = vst [vmem:[#allocation2 + $0x40] sm:$0x1] %v8598_v1  ;;  %560 = vst [vmem:[#allocation2 + $0x50] sm:$0x1] %v8598_v1  ;;  %7124 = vmatprep.subr.bf16.mxu0 %v7123_v10  ;;  %v7127_v16 = vpack.c.bf16 %v640_v14, %v638_v13  ;;  %v639_v18 = vld [vmem:[#allocation9 + $0x150] sm:$0xff]  ;;  %v642_v19 = vld [vmem:[#allocation9 + $0x168] sm:$0xff] }
 0x10b   : > { %561 = vst [vmem:[#allocation2 + $0x60] sm:$0x1] %v8598_v1  ;;  %562 = vst [vmem:[#allocation2 + $0x70] sm:$0x1] %v8598_v1  ;;  %v644_v20 = vld [vmem:[#allocation9 + $0x178] sm:$0xff]  ;;  %v7129_v21 = vpack.c.bf16 %v639_v18, %v637_v17  ;;  %v641_v23 = vld [vmem:[#allocation9 + $0x160] sm:$0xff] }
 0x10c   : > { %563 = vst [vmem:[#allocation2 + $0x80] sm:$0x1] %v8598_v1  ;;  %564 = vst [vmem:[#allocation2 + $0x19] sm:$0x1] %v8598_v1  ;;  %v7131_v22 = vpack.c.bf16 %v644_v20, %v642_v19  ;;  %v643_v24 = vld [vmem:[#allocation9 + $0x170] sm:$0xff]  ;;  %v646_v25 = vld [vmem:[#allocation9 + $0x188] sm:$0xff] }
 0x10d   : > { %565 = vst [vmem:[#allocation2 + $0x29] sm:$0x1] %v8598_v1  ;;  %566 = vst [vmem:[#allocation2 + $0x39] sm:$0x1] %v8598_v1  ;;  %7126 = vmatpush1.bf16.msra.mxu0 %v7125_v15  ;;  %v648_v26 = vld [vmem:[#allocation9 + $0x198] sm:$0xff]  ;;  %v7133_v27 = vpack.c.bf16 %v643_v24, %v641_v23  ;;  %v9026_v28 = vld [vmem:[%s8982_s22] sm:$0xff] }
 0x10e   : > { %567 = vst [vmem:[#allocation2 + $0x49] sm:$0x1] %v8598_v1  ;;  %568 = vst [vmem:[#allocation2 + $0x59] sm:$0x1] %v8598_v1  ;;  %7128 = vmatprep.subr.bf16.mxu0 %v7127_v16  ;;  %v7135_v29 = vpack.c.bf16 %v648_v26, %v646_v25  ;;  %v645_v30 = vld [vmem:[#allocation9 + $0x180] sm:$0xff]  ;;  %v647_v31 = vld [vmem:[#allocation9 + $0x190] sm:$0xff] }
 0x10f   : > { %569 = vst [vmem:[#allocation2 + $0x69] sm:$0x1] %v8598_v1  ;;  %570 = vst [vmem:[#allocation2 + $0x79] sm:$0x1] %v8598_v1  ;;  %v650_v32 = vld [vmem:[#allocation9 + $0x1a8] sm:$0xff]  ;;  %v652_v33 = vld [vmem:[#allocation9 + $0x1b8] sm:$0xff]  ;;  %v7137_v36 = vpack.c.bf16 %v647_v31, %v645_v30 }
 0x110   : > { %571 = vst [vmem:[#allocation2 + $0x89] sm:$0x1] %v8598_v1  ;;  %572 = vst [vmem:[#allocation2 + $0x11] sm:$0xff] %v9026_v28  ;;  %v9030_v34 = vld [vmem:[%s8982_s22 + $0x8] sm:$0xff]  ;;  %v9034_v35 = vld [vmem:[%s8982_s22 + $0x10] sm:$0xff]  ;;  %v7139_v37 = vpack.c.bf16 %v652_v33, %v650_v32  ;;  %vm2231_vm3 = vcmask 64512  }
 0x111   : > { %7130 = vmatpush1.bf16.msra.mxu0 %v7129_v21  ;;  %573 = vst [vmem:[#allocation2 + $0x21] sm:$0xff] %v9030_v34  ;;  %574 = vst [vmem:[#allocation2 + $0x31] sm:$0xff] %v9034_v35  ;;  %v649_v38 = vld [vmem:[#allocation9 + $0x1a0] sm:$0xff]  ;;  %v651_v39 = vld [vmem:[#allocation9 + $0x1b0] sm:$0xff]  ;;  %vm2338_vm4 = vcmask 517120   ;;  %vm2344_vm5 = vcmask 516096  }
 0x112   : > { %7132 = vmatprep.subr.bf16.mxu0 %v7131_v22  ;;  %v9038_v40 = vld [vmem:[%s8982_s22 + $0x18] sm:$0xff]  ;;  %v654_v41 = vld [vmem:[#allocation9 + $0x1c8] sm:$0xff]  ;;  %v9042_v43 = vld [vmem:[%s8982_s22 + $0x20] sm:$0xff]  ;;  %v7141_v44 = vpack.c.bf16 %v651_v39, %v649_v38  ;;  %s8601_s1 = smov 64   ;;  %vm3979_vm6 = vcmask 1048064   ;;  %s10398_s21 = sld [smem:[#allocation30_spill]] }
 0x113   : > { %v656_v42 = vld [vmem:[#allocation9 + $0x1d8] sm:$0xff]  ;;  %575 = vst [vmem:[#allocation2 + $0x41] sm:$0xff] %v9038_v40  ;;  %576 = vst [vmem:[#allocation2 + $0x51] sm:$0xff] %v9042_v43  ;;  %v9046_v45 = vld [vmem:[%s8982_s22 + $0x28] sm:$0xff]  ;;  %vm5875_vm7 = vcmask 130048   ;;  %vm6067_vm8 = vcmask 122880  }
 0x114   : > { %v7143_v46 = vpack.c.bf16 %v656_v42, %v654_v41  ;;  %v653_v47 = vld [vmem:[#allocation9 + $0x1c0] sm:$0xff]  ;;  %v655_v48 = vld [vmem:[#allocation9 + $0x1d0] sm:$0xff]  ;;  %577 = vst [vmem:[#allocation2 + $0x61] sm:$0xff] %v9046_v45  ;;  %v658_v49 = vld [vmem:[#allocation9 + $0x1e8] sm:$0xff]  ;;  %s6528_s16 = sshll.u32 %s8695_s28, 10  ;;  %s541_s13 = scalar_lea.vmem [#allocation21], %s6361_s15 }
 0x115   : > { %7134 = vmatpush1.bf16.msra.mxu0 %v7133_v27  ;;  %v660_v50 = vld [vmem:[#allocation9 + $0x1f8] sm:$0xff]  ;;  %v9050_v51 = vld [vmem:[%s8982_s22 + $0x30] sm:$0xff]  ;;  %v7145_v52 = vpack.c.bf16 %v655_v48, %v653_v47  ;;  %v657_v54 = vld [vmem:[#allocation9 + $0x1e0] sm:$0xff]  ;;  %s6197_s30 = sshll.u32 %s541_s13, 4  ;;  %s10399_s4 = sld [smem:[#allocation31_spill]]  ;;  %s10303_s30 = int_to_ptr.vmem [resolvable:$true] %s6197_s30 }
 0x116   : > { %7136 = vmatprep.subr.bf16.mxu0 %v7135_v29  ;;  %578 = vst [vmem:[#allocation2 + $0x71] sm:$0xff] %v9050_v51  ;;  %v7147_v53 = vpack.c.bf16 %v660_v50, %v658_v49  ;;  %v659_v55 = vld [vmem:[#allocation9 + $0x1f0] sm:$0xff]  ;;  %v589_v56 = vld [vmem:[#allocation9 + $0x8] sm:$0xff]  ;;  %v591_v57 = vld [vmem:[#allocation9 + $0x18] sm:$0xff]  ;;  %s6184_s28 = scalar_lea.sflag [#allocation8], %s8976_s27  ;;  %s8501_s15 = scalar_lea.vmem %s10303_s30, 1024 }
 0x117   : > { %v7149_v58 = vpack.c.bf16 %v659_v55, %v657_v54  ;;  %v7151_v59 = vpack.c.bf16 %v591_v57, %v589_v56  ;;  %v588_v60 = vld [vmem:[#allocation9] sm:$0xff]  ;;  %v590_v61 = vld [vmem:[#allocation9 + $0x10] sm:$0xff]  ;;  %v593_v62 = vld [vmem:[#allocation9 + $0x28] sm:$0xff]  ;;  %p8502_p10 = scmp.ne.s32.totalorder %s10303_s30, %s8501_s15  ;;  %p10400_p1 = scmp.ne.s32.totalorder %s10383_s17, 0 }
 0x118   : > { %v595_v63 = vld [vmem:[#allocation9 + $0x38] sm:$0xff]  ;;  %v620_v0 = vld [vmem:[#allocation2 + $0x1] sm:$0xff]  ;;  %v7153_v2 = vpack.c.bf16 %v590_v61, %v588_v60  ;;  %v594_v5 = vld [vmem:[#allocation9 + $0x30] sm:$0xff]  ;;  %s8603_s29 = smov [#allocation21]  }
 0x119   : > { %7138 = vmatpush1.bf16.msra.mxu0 %v7137_v36  ;;  %v7155_v3 = vpack.c.bf16 %v595_v63, %v593_v62  ;;  %v592_v4 = vld [vmem:[#allocation9 + $0x20] sm:$0xff]  ;;  %v597_v6 = vld [vmem:[#allocation9 + $0x48] sm:$0xff]  ;;  %v599_v7 = vld [vmem:[#allocation9 + $0x58] sm:$0xff]  ;;  %p8503_p11 = pnand %p8502_p10, %p10400_p1 }
 0x11a   : > { %7140 = vmatprep.subr.bf16.mxu0 %v7139_v37  ;;  %v7157_v8 = vpack.c.bf16 %v594_v5, %v592_v4  ;;  %v7159_v9 = vpack.c.bf16 %v599_v7, %v597_v6  ;;  %v596_v10 = vld [vmem:[#allocation9 + $0x40] sm:$0xff]  ;;  %v598_v11 = vld [vmem:[#allocation9 + $0x50] sm:$0xff]  ;;  %v601_v12 = vld [vmem:[#allocation9 + $0x68] sm:$0xff] }
 0x11b   : > { %v603_v13 = vld [vmem:[#allocation9 + $0x78] sm:$0xff]  ;;  %v7161_v14 = vpack.c.bf16 %v598_v11, %v596_v10  ;;  %v600_v16 = vld [vmem:[#allocation9 + $0x60] sm:$0xff]  ;;  %v602_v17 = vld [vmem:[#allocation9 + $0x70] sm:$0xff]  ;;  %p8504_p12 = pneg %p8503_p11 }
 0x11c   : > { %v7163_v15 = vpack.c.bf16 %v603_v13, %v601_v12  ;;  %v605_v18 = vld [vmem:[#allocation9 + $0x88] sm:$0xff]  ;;  %v607_v19 = vld [vmem:[#allocation9 + $0x98] sm:$0xff]  ;;  %v7165_v20 = vpack.c.bf16 %v602_v17, %v600_v16  ;;  %v604_v22 = vld [vmem:[#allocation9 + $0x80] sm:$0xff] }
 0x11d   : > { %7142 = vmatpush1.bf16.msra.mxu0 %v7141_v44  ;;  %v7167_v21 = vpack.c.bf16 %v607_v19, %v605_v18  ;;  %v606_v23 = vld [vmem:[#allocation9 + $0x90] sm:$0xff]  ;;  %v609_v24 = vld [vmem:[#allocation9 + $0xa8] sm:$0xff]  ;;  %v611_v25 = vld [vmem:[#allocation9 + $0xb8] sm:$0xff] }
 0x11e   : > { %7144 = vmatprep.subr.bf16.mxu0 %v7143_v46  ;;  %v7169_v26 = vpack.c.bf16 %v606_v23, %v604_v22  ;;  %v7171_v27 = vpack.c.bf16 %v611_v25, %v609_v24  ;;  %v608_v29 = vld [vmem:[#allocation9 + $0xa0] sm:$0xff]  ;;  %v610_v30 = vld [vmem:[#allocation9 + $0xb0] sm:$0xff]  ;;  %v613_v31 = vld [vmem:[#allocation9 + $0xc8] sm:$0xff] }
 0x11f   : > { %v615_v32 = vld [vmem:[#allocation9 + $0xd8] sm:$0xff]  ;;  %v7173_v33 = vpack.c.bf16 %v610_v30, %v608_v29  ;;  %v612_v37 = vld [vmem:[#allocation9 + $0xc0] sm:$0xff]  ;;  %v614_v38 = vld [vmem:[#allocation9 + $0xd0] sm:$0xff] }
 0x120   : > { %v7175_v36 = vpack.c.bf16 %v615_v32, %v613_v31  ;;  %v617_v39 = vld [vmem:[#allocation9 + $0xe8] sm:$0xff]  ;;  %v619_v41 = vld [vmem:[#allocation9 + $0xf8] sm:$0xff]  ;;  %v7177_v42 = vpack.c.bf16 %v614_v38, %v612_v37  ;;  %v616_v46 = vld [vmem:[#allocation9 + $0xe0] sm:$0xff] }
 0x121   : > { %7146 = vmatpush1.bf16.msra.mxu0 %v7145_v52  ;;  %v7179_v44 = vpack.c.bf16 %v619_v41, %v617_v39  ;;  %v618_v47 = vld [vmem:[#allocation9 + $0xf0] sm:$0xff]  ;;  %v897_v48 = vld [vmem:[#allocation9 + $0x208] sm:$0xff]  ;;  %v899_v49 = vld [vmem:[#allocation9 + $0x218] sm:$0xff] }
 0x122   : > { %7148 = vmatprep.subr.bf16.mxu0 %v7147_v53  ;;  %v9066_v50 = vld [vmem:[%s8982_s22 + $0x38] sm:$0xff]  ;;  %v7181_v52 = vpack.c.bf16 %v618_v47, %v616_v46  ;;  %v7183_v53 = vpack.c.bf16 %v899_v49, %v897_v48  ;;  %v896_v54 = vld [vmem:[#allocation9 + $0x200] sm:$0xff]  ;;  %v898_v55 = vld [vmem:[#allocation9 + $0x210] sm:$0xff]  ;;  %s10301_s22 = scalar_lea.hbm %s10399_s4, %s6528_s16 }
 0x123   : > { %579 = vst [vmem:[#allocation2 + $0x81] sm:$0xff] %v9066_v50  ;;  %v901_v56 = vld [vmem:[#allocation9 + $0x228] sm:$0xff]  ;;  %v903_v57 = vld [vmem:[#allocation9 + $0x238] sm:$0xff]  ;;  %v900_v60 = vld [vmem:[#allocation9 + $0x220] sm:$0xff] }
 0x124   : > { %v902_v61 = vld [vmem:[#allocation9 + $0x230] sm:$0xff]  ;;  %v905_v62 = vld [vmem:[#allocation9 + $0x248] sm:$0xff]  ;;  %v907_v63 = vld [vmem:[#allocation9 + $0x258] sm:$0xff] }
 0x125   : > { %7150 = vmatpush1.bf16.msra.mxu0 %v7149_v58  ;;  %v7185_v58 = vpack.c.bf16 %v898_v55, %v896_v54  ;;  %v904_v4 = vld [vmem:[#allocation9 + $0x240] sm:$0xff]  ;;  %v906_v5 = vld [vmem:[#allocation9 + $0x250] sm:$0xff]  ;;  %v909_v6 = vld [vmem:[#allocation9 + $0x268] sm:$0xff] }
 0x126   : > { %7152 = vmatprep.subr.bf16.mxu0 %v7151_v59  ;;  %v7187_v59 = vpack.c.bf16 %v903_v57, %v901_v56  ;;  %v911_v7 = vld [vmem:[#allocation9 + $0x278] sm:$0xff]  ;;  %v908_v11 = vld [vmem:[#allocation9 + $0x260] sm:$0xff]  ;;  %v910_v12 = vld [vmem:[#allocation9 + $0x270] sm:$0xff] }
 0x127   : > { %v7195_v10 = vpack.c.bf16 %v911_v7, %v909_v6  ;;  %v913_v13 = vld [vmem:[#allocation9 + $0x288] sm:$0xff]  ;;  %v7197_v16 = vpack.c.bf16 %v910_v12, %v908_v11  ;;  %v912_v18 = vld [vmem:[#allocation9 + $0x280] sm:$0xff]  ;;  %v914_v19 = vld [vmem:[#allocation9 + $0x290] sm:$0xff] }
 0x128   : > { %726 = vmatmul.mubr.f32.vlgmr.msra.gmra.mrb[0].mxu0 %v620_v0  ;;  %v9074_v0 = vld [vmem:[#allocation2 + $0x10] sm:$0xff]  ;;  %v9086_v22 = vld [vmem:[#allocation2 + $0x40] sm:$0xff]  ;;  %v7201_v23 = vpack.c.bf16 %v914_v19, %v912_v18 }
 0x129   : > { %7154 = vmatpush1.bf16.msra.mxu0 %v7153_v2  ;;  %731 = vmatprep.mubr.f32.mxu0 %v8598_v1  ;;  %v7189_v2 = vpack.c.bf16 %v902_v61, %v900_v60  ;;  %v916_v25 = vld [vmem:[#allocation9 + $0x2a0] sm:$0xff]  ;;  %v923_v29 = vld [vmem:[#allocation9 + $0x2d8] sm:$0xff]  ;;  %v9090_v30 = vld [vmem:[#allocation2 + $0x50] sm:$0xff] }
 0x12a   : > { %7156 = vmatprep.subr.bf16.mxu0 %v7155_v3  ;;  %v7191_v3 = vpack.c.bf16 %v907_v63, %v905_v62  ;;  %v925_v37 = vld [vmem:[#allocation9 + $0x2e8] sm:$0xff]  ;;  %v927_v38 = vld [vmem:[#allocation9 + $0x2f8] sm:$0xff]  ;;  %v926_v46 = vld [vmem:[#allocation9 + $0x2f0] sm:$0xff] }
 0x12b   : > { %v9094_v39 = vld [vmem:[#allocation2 + $0x60] sm:$0xff]  ;;  %v1067_v47 = vld [vmem:[#allocation9 + $0x308] sm:$0xff]  ;;  %v1068_v55 = vld [vmem:[#allocation9 + $0x310] sm:$0xff] }
 0x12c   : > { %732 = vmatmul.mubr.f32.gmra.mrb[2].mxu0 %v9026_v28  ;;  %v1069_v48 = vld [vmem:[#allocation9 + $0x318] sm:$0xff]  ;;  %v9098_v49 = vld [vmem:[#allocation2 + $0x70] sm:$0xff]  ;;  %v1066_v54 = vld [vmem:[#allocation9 + $0x300] sm:$0xff] }
 0x12d   : > { %7158 = vmatpush1.bf16.msra.mxu0 %v7157_v8  ;;  %737 = vmatprep.mubr.f32.mxu0 %v8598_v1  ;;  %v9078_v8 = vld [vmem:[#allocation2 + $0x20] sm:$0xff]  ;;  %v1071_v56 = vld [vmem:[#allocation9 + $0x328] sm:$0xff]  ;;  %v1072_v62 = vld [vmem:[#allocation9 + $0x330] sm:$0xff] }
 0x12e   : > { %7160 = vmatprep.subr.bf16.mxu0 %v7159_v9  ;;  %v7193_v9 = vpack.c.bf16 %v906_v5, %v904_v4  ;;  %v1073_v57 = vld [vmem:[#allocation9 + $0x338] sm:$0xff]  ;;  %v1070_v61 = vld [vmem:[#allocation9 + $0x320] sm:$0xff]  ;;  %v1075_v63 = vld [vmem:[#allocation9 + $0x348] sm:$0xff] }
 0x12f   : > { %v7219_v60 = vpack.c.bf16 %v1073_v57, %v1071_v56  ;;  %v7221_v4 = vpack.c.bf16 %v1072_v62, %v1070_v61  ;;  %v1074_v6 = vld [vmem:[#allocation9 + $0x340] sm:$0xff]  ;;  %v1076_v7 = vld [vmem:[#allocation9 + $0x350] sm:$0xff]  ;;  %v1085_v18 = vld [vmem:[#allocation9 + $0x398] sm:$0xff] }
 0x130   : > { %738 = vmatmul.mubr.f32.gmra.mrb[4].mxu0 %v9030_v34  ;;  %v9107_v11 = vld [vmem:[#allocation2 + $0x22] sm:$0xff]  ;;  %v7225_v12 = vpack.c.bf16 %v1076_v7, %v1074_v6  ;;  %v9111_v19 = vld [vmem:[#allocation2 + $0x32] sm:$0xff] }
 0x131   : > { %7162 = vmatpush1.bf16.msra.mxu0 %v7161_v14  ;;  %743 = vmatprep.mubr.f32.mxu0 %v8598_v1  ;;  %v915_v14 = vld [vmem:[#allocation9 + $0x298] sm:$0xff]  ;;  %v1096_v56 = vld [vmem:[#allocation9 + $0x3f0] sm:$0xff]  ;;  %v1237_v57 = vld [vmem:[#allocation9 + $0x408] sm:$0xff] }
 0x132   : > { %7164 = vmatprep.subr.bf16.mxu0 %v7163_v15  ;;  %v9082_v15 = vld [vmem:[#allocation2 + $0x30] sm:$0xff]  ;;  %v7199_v17 = vpack.c.bf16 %v915_v14, %v913_v13  ;;  %v1078_v14 = vld [vmem:[#allocation9 + $0x360] sm:$0xff] }
 0x133   : > { %v1236_v62 = vld [vmem:[#allocation9 + $0x400] sm:$0xff] }
 0x134   : > { %744 = vmatmul.mubr.f32.gmra.mrb[6].mxu0 %v9034_v35  ;;  %v1240_v7 = vld [vmem:[#allocation9 + $0x420] sm:$0xff] }
 0x135   : > { %7166 = vmatpush1.bf16.msra.mxu0 %v7165_v20  ;;  %749 = vmatprep.mubr.f32.mxu0 %v8598_v1  ;;  %v917_v20 = vld [vmem:[#allocation9 + $0x2a8] sm:$0xff] }
 0x136   : > { %7168 = vmatprep.subr.bf16.mxu0 %v7167_v21  ;;  %v919_v21 = vld [vmem:[#allocation9 + $0x2b8] sm:$0xff] }
 0x137   : > { %v7203_v24 = vpack.c.bf16 %v919_v21, %v917_v20 }
 0x138   : > { %750 = vmatmul.mubr.f32.gmra.mrb[8].mxu0 %v9038_v40 }
 0x139   : > { %7170 = vmatpush1.bf16.msra.mxu0 %v7169_v26  ;;  %755 = vmatprep.mubr.f32.mxu0 %v8598_v1  ;;  %v918_v26 = vld [vmem:[#allocation9 + $0x2b0] sm:$0xff] }
 0x13a   : > { %7172 = vmatprep.subr.bf16.mxu0 %v7171_v27  ;;  %v921_v27 = vld [vmem:[#allocation9 + $0x2c8] sm:$0xff]  ;;  %v7205_v31 = vpack.c.bf16 %v918_v26, %v916_v25  ;;  %v1089_v26 = vld [vmem:[#allocation9 + $0x3b8] sm:$0xff] }
 0x13b   : > { %v7207_v32 = vpack.c.bf16 %v923_v29, %v921_v27  ;;  %v1087_v25 = vld [vmem:[#allocation9 + $0x3a8] sm:$0xff] }
 0x13c   : > { %756 = vmatmul.mubr.f32.gmra.mrb[10].mxu0 %v9042_v43  ;;  %v9115_v27 = vld [vmem:[#allocation2 + $0x42] sm:$0xff] }
 0x13d   : > { %7174 = vmatpush1.bf16.msra.mxu0 %v7173_v33  ;;  %761 = vmatprep.mubr.f32.mxu0 %v8598_v1  ;;  %v920_v33 = vld [vmem:[#allocation9 + $0x2c0] sm:$0xff] }
 0x13e   : > { %7176 = vmatprep.subr.bf16.mxu0 %v7175_v36  ;;  %v922_v36 = vld [vmem:[#allocation9 + $0x2d0] sm:$0xff] }
 0x13f   : > { %v7209_v41 = vpack.c.bf16 %v922_v36, %v920_v33  ;;  %v1088_v33 = vld [vmem:[#allocation9 + $0x3b0] sm:$0xff]  ;;  %v1091_v36 = vld [vmem:[#allocation9 + $0x3c8] sm:$0xff] }
 0x140   : > { %762 = vmatmul.mubr.f32.gmra.mrb[12].mxu0 %v9046_v45 }
 0x141   : > { %7178 = vmatpush1.bf16.msra.mxu0 %v7177_v42  ;;  %767 = vmatprep.mubr.f32.mxu0 %v8598_v1  ;;  %v7211_v42 = vpack.c.bf16 %v927_v38, %v925_v37  ;;  %v1093_v37 = vld [vmem:[#allocation9 + $0x3d8] sm:$0xff] }
 0x142   : > { %7180 = vmatprep.subr.bf16.mxu0 %v7179_v44  ;;  %v924_v44 = vld [vmem:[#allocation9 + $0x2e0] sm:$0xff]  ;;  %v9119_v38 = vld [vmem:[#allocation2 + $0x52] sm:$0xff] }
 0x144   : > { %768 = vmatmul.mubr.f32.gmra.mrb[14].mxu0 %v9050_v51 }
 0x145   : > { %7182 = vmatpush1.bf16.msra.mxu0 %v7181_v52  ;;  %838 = vmatprep.mubr.f32.mxu0 %v8598_v1  ;;  %v7213_v52 = vpack.c.bf16 %v926_v46, %v924_v44  ;;  %v1090_v44 = vld [vmem:[#allocation9 + $0x3c0] sm:$0xff]  ;;  %v1092_v46 = vld [vmem:[#allocation9 + $0x3d0] sm:$0xff] }
 0x146   : > { %7184 = vmatprep.subr.bf16.mxu0 %v7183_v53  ;;  %v7215_v53 = vpack.c.bf16 %v1069_v48, %v1067_v47  ;;  %v1095_v47 = vld [vmem:[#allocation9 + $0x3e8] sm:$0xff]  ;;  %v1097_v48 = vld [vmem:[#allocation9 + $0x3f8] sm:$0xff] }
 0x148   : > { %839 = vmatmul.mubr.f32.vlgmr.msra.gmra.mrb[0].mxu0 %v8598_v1 }
 0x149   : > { %7186 = vmatpush1.bf16.msra.mxu0 %v7185_v58  ;;  %844 = vmatprep.mubr.f32.mxu0 %v8598_v1  ;;  %v887_v58 = vld [vmem:[#allocation2 + $0x2] sm:$0xff] }
 0x14a   : > { %7188 = vmatprep.subr.bf16.mxu0 %v7187_v59  ;;  %v7217_v59 = vpack.c.bf16 %v1068_v55, %v1066_v54  ;;  %v7243_v54 = vpack.c.bf16 %v1097_v48, %v1095_v47  ;;  %v1094_v55 = vld [vmem:[#allocation9 + $0x3e0] sm:$0xff]  ;;  %v1261_v47 = vld [vmem:[#allocation9 + $0x4c8] sm:$0xff]  ;;  %v1263_v48 = vld [vmem:[#allocation9 + $0x4d8] sm:$0xff] }
 0x14c   : > { %845 = vmatmul.mubr.f32.gmra.mrb[2].mxu0 %v9074_v0 }
 0x14d   : > { %7190 = vmatpush1.bf16.msra.mxu0 %v7189_v2  ;;  %850 = vmatprep.mubr.f32.mxu0 %v8598_v1  ;;  %v1077_v2 = vld [vmem:[#allocation9 + $0x358] sm:$0xff] }
 0x14e   : > { %7192 = vmatprep.subr.bf16.mxu0 %v7191_v3  ;;  %v9103_v3 = vld [vmem:[#allocation2 + $0x12] sm:$0xff]  ;;  %v7223_v5 = vpack.c.bf16 %v1077_v2, %v1075_v63  ;;  %v1241_v2 = vld [vmem:[#allocation9 + $0x428] sm:$0xff] }
 0x14f   : > { %v1238_v63 = vld [vmem:[#allocation9 + $0x410] sm:$0xff] }
 0x150   : > { %851 = vmatmul.mubr.f32.gmra.mrb[4].mxu0 %v9078_v8 }
 0x151   : > { %7194 = vmatpush1.bf16.msra.mxu0 %v7193_v9  ;;  %856 = vmatprep.mubr.f32.mxu0 %v8598_v1  ;;  %v1079_v9 = vld [vmem:[#allocation9 + $0x368] sm:$0xff] }
 0x152   : > { %7196 = vmatprep.subr.bf16.mxu0 %v7195_v10  ;;  %v1081_v10 = vld [vmem:[#allocation9 + $0x378] sm:$0xff] }
 0x153   : > { %v7227_v13 = vpack.c.bf16 %v1081_v10, %v1079_v9  ;;  %v1242_v9 = vld [vmem:[#allocation9 + $0x430] sm:$0xff]  ;;  %v1245_v10 = vld [vmem:[#allocation9 + $0x448] sm:$0xff] }
 0x154   : > { %857 = vmatmul.mubr.f32.gmra.mrb[6].mxu0 %v9082_v15 }
 0x155   : > { %7198 = vmatpush1.bf16.msra.mxu0 %v7197_v16  ;;  %862 = vmatprep.mubr.f32.mxu0 %v8598_v1  ;;  %v1080_v16 = vld [vmem:[#allocation9 + $0x370] sm:$0xff] }
 0x156   : > { %7200 = vmatprep.subr.bf16.mxu0 %v7199_v17  ;;  %v1083_v17 = vld [vmem:[#allocation9 + $0x388] sm:$0xff]  ;;  %v7229_v20 = vpack.c.bf16 %v1080_v16, %v1078_v14  ;;  %v1244_v16 = vld [vmem:[#allocation9 + $0x440] sm:$0xff] }
 0x157   : > { %v7231_v21 = vpack.c.bf16 %v1085_v18, %v1083_v17  ;;  %v1246_v17 = vld [vmem:[#allocation9 + $0x450] sm:$0xff]  ;;  %v1249_v18 = vld [vmem:[#allocation9 + $0x468] sm:$0xff] }
 0x158   : > { %863 = vmatmul.mubr.f32.gmra.mrb[8].mxu0 %v9086_v22 }
 0x159   : > { %7202 = vmatpush1.bf16.msra.mxu0 %v7201_v23  ;;  %868 = vmatprep.mubr.f32.mxu0 %v8598_v1  ;;  %v1082_v23 = vld [vmem:[#allocation9 + $0x380] sm:$0xff] }
 0x15a   : > { %7204 = vmatprep.subr.bf16.mxu0 %v7203_v24  ;;  %v1084_v24 = vld [vmem:[#allocation9 + $0x390] sm:$0xff] }
 0x15b   : > { %v7233_v29 = vpack.c.bf16 %v1084_v24, %v1082_v23  ;;  %v1248_v24 = vld [vmem:[#allocation9 + $0x460] sm:$0xff] }
 0x15c   : > { %869 = vmatmul.mubr.f32.gmra.mrb[10].mxu0 %v9090_v30 }
 0x15d   : > { %7206 = vmatpush1.bf16.msra.mxu0 %v7205_v31  ;;  %874 = vmatprep.mubr.f32.mxu0 %v8598_v1  ;;  %v7235_v31 = vpack.c.bf16 %v1089_v26, %v1087_v25  ;;  %v1253_v25 = vld [vmem:[#allocation9 + $0x488] sm:$0xff]  ;;  %v1255_v26 = vld [vmem:[#allocation9 + $0x498] sm:$0xff] }
 0x15e   : > { %7208 = vmatprep.subr.bf16.mxu0 %v7207_v32  ;;  %v1086_v32 = vld [vmem:[#allocation9 + $0x3a0] sm:$0xff] }
 0x160   : > { %875 = vmatmul.mubr.f32.gmra.mrb[12].mxu0 %v9094_v39 }
 0x161   : > { %7210 = vmatpush1.bf16.msra.mxu0 %v7209_v41  ;;  %880 = vmatprep.mubr.f32.mxu0 %v8598_v1  ;;  %v7237_v41 = vpack.c.bf16 %v1088_v33, %v1086_v32  ;;  %v1252_v32 = vld [vmem:[#allocation9 + $0x480] sm:$0xff]  ;;  %v1254_v33 = vld [vmem:[#allocation9 + $0x490] sm:$0xff] }
 0x162   : > { %7212 = vmatprep.subr.bf16.mxu0 %v7211_v42  ;;  %v7239_v42 = vpack.c.bf16 %v1093_v37, %v1091_v36  ;;  %v1257_v36 = vld [vmem:[#allocation9 + $0x4a8] sm:$0xff]  ;;  %v1259_v37 = vld [vmem:[#allocation9 + $0x4b8] sm:$0xff] }
 0x164   : > { %881 = vmatmul.mubr.f32.gmra.mrb[14].mxu0 %v9098_v49 }
 0x165   : > { %7214 = vmatpush1.bf16.msra.mxu0 %v7213_v52  ;;  %992 = vmatprep.mubr.f32.mxu0 %v8598_v1  ;;  %v9123_v52 = vld [vmem:[#allocation2 + $0x62] sm:$0xff] }
 0x166   : > { %7216 = vmatprep.subr.bf16.mxu0 %v7215_v53  ;;  %v7241_v53 = vpack.c.bf16 %v1092_v46, %v1090_v44  ;;  %v1256_v44 = vld [vmem:[#allocation9 + $0x4a0] sm:$0xff]  ;;  %v1258_v46 = vld [vmem:[#allocation9 + $0x4b0] sm:$0xff] }
 0x168   : > { %993 = vmatmul.mubr.f32.vlgmr.msra.gmra.mrb[0].mxu0 %v887_v58  ;;  %v1239_v58 = vld [vmem:[#allocation9 + $0x418] sm:$0xff] }
 0x169   : > { %7218 = vmatpush1.bf16.msra.mxu0 %v7217_v59  ;;  %998 = vmatprep.mubr.f32.mxu0 %v8598_v1  ;;  %v9127_v59 = vld [vmem:[#allocation2 + $0x72] sm:$0xff]  ;;  %v7247_v61 = vpack.c.bf16 %v1239_v58, %v1237_v57  ;;  %v1265_v57 = vld [vmem:[#allocation9 + $0x4e8] sm:$0xff] }
 0x16a   : > { %7220 = vmatprep.subr.bf16.mxu0 %v7219_v60  ;;  %v7245_v60 = vpack.c.bf16 %v1096_v56, %v1094_v55  ;;  %v1260_v55 = vld [vmem:[#allocation9 + $0x4c0] sm:$0xff]  ;;  %v1262_v56 = vld [vmem:[#allocation9 + $0x4d0] sm:$0xff]  ;;  %v1267_v58 = vld [vmem:[#allocation9 + $0x4f8] sm:$0xff] }
 0x16c   : > { %999 = vmatmul.mubr.f32.gmra.mrb[2].mxu0 %v9103_v3 }
 0x16d   : > { %7222 = vmatpush1.bf16.msra.mxu0 %v7221_v4  ;;  %1004 = vmatprep.mubr.f32.mxu0 %v8598_v1  ;;  %v1243_v4 = vld [vmem:[#allocation9 + $0x438] sm:$0xff] }
 0x16e   : > { %7224 = vmatprep.subr.bf16.mxu0 %v7223_v5  ;;  %v7249_v5 = vpack.c.bf16 %v1238_v63, %v1236_v62  ;;  %v7251_v6 = vpack.c.bf16 %v1243_v4, %v1241_v2  ;;  %v1264_v62 = vld [vmem:[#allocation9 + $0x4e0] sm:$0xff]  ;;  %v1266_v63 = vld [vmem:[#allocation9 + $0x4f0] sm:$0xff]  ;;  %v1407_v2 = vld [vmem:[#allocation9 + $0x508] sm:$0xff] }
 0x16f   : > { %v1409_v4 = vld [vmem:[#allocation9 + $0x518] sm:$0xff] }
 0x170   : > { %1005 = vmatmul.mubr.f32.gmra.mrb[4].mxu0 %v9107_v11 }
 0x171   : > { %7226 = vmatpush1.bf16.msra.mxu0 %v7225_v12  ;;  %1010 = vmatprep.mubr.f32.mxu0 %v8598_v1  ;;  %v1247_v12 = vld [vmem:[#allocation9 + $0x458] sm:$0xff] }
 0x172   : > { %7228 = vmatprep.subr.bf16.mxu0 %v7227_v13  ;;  %v7253_v13 = vpack.c.bf16 %v1242_v9, %v1240_v7  ;;  %v7255_v14 = vpack.c.bf16 %v1247_v12, %v1245_v10  ;;  %v7279_v7 = vpack.c.bf16 %v1409_v4, %v1407_v2  ;;  %v1406_v9 = vld [vmem:[#allocation9 + $0x500] sm:$0xff]  ;;  %v1408_v10 = vld [vmem:[#allocation9 + $0x510] sm:$0xff]  ;;  %v1411_v12 = vld [vmem:[#allocation9 + $0x528] sm:$0xff] }
 0x173   : > { %v1434_v4 = vld [vmem:[#allocation9 + $0x5e0] sm:$0xff] }
 0x174   : > { %1011 = vmatmul.mubr.f32.gmra.mrb[6].mxu0 %v9111_v19 }
 0x175   : > { %7230 = vmatpush1.bf16.msra.mxu0 %v7229_v20  ;;  %1016 = vmatprep.mubr.f32.mxu0 %v8598_v1  ;;  %v1251_v20 = vld [vmem:[#allocation9 + $0x478] sm:$0xff] }
 0x176   : > { %7232 = vmatprep.subr.bf16.mxu0 %v7231_v21  ;;  %v7257_v21 = vpack.c.bf16 %v1246_v17, %v1244_v16  ;;  %v7259_v23 = vpack.c.bf16 %v1251_v20, %v1249_v18  ;;  %v1410_v17 = vld [vmem:[#allocation9 + $0x520] sm:$0xff]  ;;  %v1412_v18 = vld [vmem:[#allocation9 + $0x530] sm:$0xff]  ;;  %v1415_v20 = vld [vmem:[#allocation9 + $0x548] sm:$0xff] }
 0x178   : > { %1017 = vmatmul.mubr.f32.gmra.mrb[8].mxu0 %v9115_v27 }
 0x179   : > { %7234 = vmatpush1.bf16.msra.mxu0 %v7233_v29  ;;  %1022 = vmatprep.mubr.f32.mxu0 %v8598_v1 }
 0x17a   : > { %7236 = vmatprep.subr.bf16.mxu0 %v7235_v31  ;;  %v7263_v31 = vpack.c.bf16 %v1255_v26, %v1253_v25  ;;  %v1416_v25 = vld [vmem:[#allocation9 + $0x550] sm:$0xff]  ;;  %v1419_v26 = vld [vmem:[#allocation9 + $0x568] sm:$0xff] }
 0x17c   : > { %1023 = vmatmul.mubr.f32.gmra.mrb[10].mxu0 %v9119_v38 }
 0x17d   : > { %7238 = vmatpush1.bf16.msra.mxu0 %v7237_v41  ;;  %1028 = vmatprep.mubr.f32.mxu0 %v8598_v1  ;;  %v7265_v41 = vpack.c.bf16 %v1254_v33, %v1252_v32  ;;  %v1418_v33 = vld [vmem:[#allocation9 + $0x560] sm:$0xff] }
 0x17e   : > { %7240 = vmatprep.subr.bf16.mxu0 %v7239_v42  ;;  %v7267_v42 = vpack.c.bf16 %v1259_v37, %v1257_v36  ;;  %v1423_v36 = vld [vmem:[#allocation9 + $0x588] sm:$0xff]  ;;  %v1425_v37 = vld [vmem:[#allocation9 + $0x598] sm:$0xff] }
 0x180   : > { %1029 = vmatmul.mubr.f32.gmra.mrb[12].mxu0 %v9123_v52 }
 0x181   : > { %7242 = vmatpush1.bf16.msra.mxu0 %v7241_v53  ;;  %1034 = vmatprep.mubr.f32.mxu0 %v8598_v1  ;;  %v7269_v53 = vpack.c.bf16 %v1258_v46, %v1256_v44  ;;  %v1422_v44 = vld [vmem:[#allocation9 + $0x580] sm:$0xff]  ;;  %v1427_v46 = vld [vmem:[#allocation9 + $0x5a8] sm:$0xff] }
 0x182   : > { %7244 = vmatprep.subr.bf16.mxu0 %v7243_v54  ;;  %v7271_v54 = vpack.c.bf16 %v1263_v48, %v1261_v47  ;;  %v1429_v47 = vld [vmem:[#allocation9 + $0x5b8] sm:$0xff] }
 0x184   : > { %1035 = vmatmul.mubr.f32.gmra.mrb[14].mxu0 %v9127_v59 }
 0x185   : > { %7246 = vmatpush1.bf16.msra.mxu0 %v7245_v60  ;;  %1162 = vmatprep.mubr.f32.mxu0 %v8598_v1  ;;  %v7273_v60 = vpack.c.bf16 %v1262_v56, %v1260_v55  ;;  %v1431_v55 = vld [vmem:[#allocation9 + $0x5c8] sm:$0xff]  ;;  %v1433_v56 = vld [vmem:[#allocation9 + $0x5d8] sm:$0xff] }
 0x186   : > { %7248 = vmatprep.subr.bf16.mxu0 %v7247_v61  ;;  %v7275_v61 = vpack.c.bf16 %v1267_v58, %v1265_v57  ;;  %v7303_v58 = vpack.c.bf16 %v1433_v56, %v1431_v55 }
 0x188   : > { %1163 = vmatmul.mubr.f32.vlgmr.msra.gmra.mrb[0].mxu0 %v9074_v0  ;;  %v1250_v0 = vld [vmem:[#allocation9 + $0x470] sm:$0xff] }
 0x189   : > { %7250 = vmatpush1.bf16.msra.mxu0 %v7249_v5  ;;  %1168 = vmatprep.mubr.f32.mxu0 %v8598_v1  ;;  %v7261_v29 = vpack.c.bf16 %v1250_v0, %v1248_v24  ;;  %v9145_v5 = vld [vmem:[#allocation2 + $0x80] sm:$0xff] }
 0x18a   : > { %7252 = vmatprep.subr.bf16.mxu0 %v7251_v6  ;;  %v7277_v6 = vpack.c.bf16 %v1266_v63, %v1264_v62  ;;  %v1414_v0 = vld [vmem:[#allocation9 + $0x540] sm:$0xff]  ;;  %v1437_v62 = vld [vmem:[#allocation9 + $0x5f8] sm:$0xff] }
 0x18c   : > { %1169 = vmatmul.mubr.f32.gmra.mrb[2].mxu0 %v9078_v8 }
 0x18d   : > { %7254 = vmatpush1.bf16.msra.mxu0 %v7253_v13  ;;  %1174 = vmatprep.mubr.f32.mxu0 %v8598_v1  ;;  %v1413_v13 = vld [vmem:[#allocation9 + $0x538] sm:$0xff] }
 0x18e   : > { %7256 = vmatprep.subr.bf16.mxu0 %v7255_v14  ;;  %v7281_v14 = vpack.c.bf16 %v1408_v10, %v1406_v9  ;;  %v7283_v16 = vpack.c.bf16 %v1413_v13, %v1411_v12  ;;  %v9162_v9 = vld [vmem:[#allocation2] sm:$0xff]  ;;  %v1579_v13 = vld [vmem:[#allocation9 + $0x610] sm:$0xff] }
 0x18f   : > { %v1577_v12 = vld [vmem:[#allocation9 + $0x600] sm:$0xff]  ;;  %2337 = vst.msk [vmem:[#allocation3] sm:$0xff] %vm2078_vm0, %v9162_v9  ;;  %2341 = vst.msk [vmem:[#allocation3 + $0x90] sm:$0xff] %vm2078_vm0, %v9162_v9  ;;  %6751 = vmatprep.mubr.msk.f32.mxu1 %vm8600_vm1, %v9162_v9 }
 0x190   : > { %1175 = vmatmul.mubr.f32.gmra.mrb[4].mxu0 %v9082_v15  ;;  %4246 = vst.msk [vmem:[#allocation4] sm:$0xff] %vm2078_vm0, %v9162_v9  ;;  %4249 = vst.msk [vmem:[#allocation4 + $0x90] sm:$0xff] %vm2078_vm0, %v9162_v9 }
 0x191   : > { %7258 = vmatpush1.bf16.msra.mxu0 %v7257_v21  ;;  %1180 = vmatprep.mubr.f32.mxu0 %v8598_v1  ;;  %v1417_v21 = vld [vmem:[#allocation9 + $0x558] sm:$0xff]  ;;  %2339 = vst.msk [vmem:[#allocation3 + $0x8] sm:$0x3] %vm2338_vm4, %v9162_v9  ;;  %2342 = vst.msk [vmem:[#allocation3 + $0x98] sm:$0x3] %vm2338_vm4, %v9162_v9 }
 0x192   : > { %7260 = vmatprep.subr.bf16.mxu0 %v7259_v23  ;;  %v7285_v23 = vpack.c.bf16 %v1412_v18, %v1410_v17  ;;  %v7287_v24 = vpack.c.bf16 %v1417_v21, %v1415_v20  ;;  %v1581_v17 = vld [vmem:[#allocation9 + $0x620] sm:$0xff]  ;;  %v1583_v18 = vld [vmem:[#allocation9 + $0x630] sm:$0xff]  ;;  %v1586_v20 = vld [vmem:[#allocation9 + $0x648] sm:$0xff]  ;;  %4247 = vst.msk [vmem:[#allocation4 + $0x8] sm:$0x3] %vm2338_vm4, %v9162_v9 }
 0x193   : > { %v1588_v21 = vld [vmem:[#allocation9 + $0x658] sm:$0xff]  ;;  %4250 = vst.msk [vmem:[#allocation4 + $0x98] sm:$0x3] %vm2338_vm4, %v9162_v9 }
 0x194   : > { %1181 = vmatmul.mubr.f32.gmra.mrb[6].mxu0 %v9086_v22  ;;  %2345 = vst.msk [vmem:[#allocation3 + $0x10] sm:$0x1] %vm2344_vm5, %v9162_v9  ;;  %2346 = vst.msk [vmem:[#allocation3 + $0x20] sm:$0x1] %vm2344_vm5, %v9162_v9 }
 0x195   : > { %7262 = vmatpush1.bf16.msra.mxu0 %v7261_v29  ;;  %1186 = vmatprep.mubr.f32.mxu0 %v8598_v1  ;;  %v1421_v29 = vld [vmem:[#allocation9 + $0x578] sm:$0xff]  ;;  %2347 = vst.msk [vmem:[#allocation3 + $0x30] sm:$0x1] %vm2344_vm5, %v9162_v9  ;;  %2348 = vst.msk [vmem:[#allocation3 + $0x40] sm:$0x1] %vm2344_vm5, %v9162_v9 }
 0x196   : > { %7264 = vmatprep.subr.bf16.mxu0 %v7263_v31  ;;  %v7289_v31 = vpack.c.bf16 %v1416_v25, %v1414_v0  ;;  %v7291_v32 = vpack.c.bf16 %v1421_v29, %v1419_v26  ;;  %v1585_v0 = vld [vmem:[#allocation9 + $0x640] sm:$0xff]  ;;  %v1590_v25 = vld [vmem:[#allocation9 + $0x668] sm:$0xff]  ;;  %v1592_v26 = vld [vmem:[#allocation9 + $0x678] sm:$0xff]  ;;  %2349 = vst.msk [vmem:[#allocation3 + $0x50] sm:$0x1] %vm2344_vm5, %v9162_v9 }
 0x197   : > { %2350 = vst.msk [vmem:[#allocation3 + $0x60] sm:$0x1] %vm2344_vm5, %v9162_v9  ;;  %2351 = vst.msk [vmem:[#allocation3 + $0x70] sm:$0x1] %vm2344_vm5, %v9162_v9 }
 0x198   : > { %1187 = vmatmul.mubr.f32.gmra.mrb[8].mxu0 %v9090_v30  ;;  %2352 = vst.msk [vmem:[#allocation3 + $0x80] sm:$0x1] %vm2344_vm5, %v9162_v9  ;;  %2353 = vst.msk [vmem:[#allocation3 + $0x19] sm:$0x1] %vm2344_vm5, %v9162_v9 }
 0x199   : > { %7266 = vmatpush1.bf16.msra.mxu0 %v7265_v41  ;;  %1192 = vmatprep.mubr.f32.mxu0 %v8598_v1  ;;  %2354 = vst.msk [vmem:[#allocation3 + $0x29] sm:$0x1] %vm2344_vm5, %v9162_v9  ;;  %2355 = vst.msk [vmem:[#allocation3 + $0x39] sm:$0x1] %vm2344_vm5, %v9162_v9 }
 0x19a   : > { %7268 = vmatprep.subr.bf16.mxu0 %v7267_v42  ;;  %v7295_v42 = vpack.c.bf16 %v1425_v37, %v1423_v36  ;;  %2356 = vst.msk [vmem:[#allocation3 + $0x49] sm:$0x1] %vm2344_vm5, %v9162_v9  ;;  %2357 = vst.msk [vmem:[#allocation3 + $0x59] sm:$0x1] %vm2344_vm5, %v9162_v9 }
 0x19b   : > { %2358 = vst.msk [vmem:[#allocation3 + $0x69] sm:$0x1] %vm2344_vm5, %v9162_v9  ;;  %2359 = vst.msk [vmem:[#allocation3 + $0x79] sm:$0x1] %vm2344_vm5, %v9162_v9 }
 0x19c   : > { %1193 = vmatmul.mubr.f32.gmra.mrb[10].mxu0 %v9094_v39  ;;  %2360 = vst.msk [vmem:[#allocation3 + $0x89] sm:$0x1] %vm2344_vm5, %v9162_v9  ;;  %4252 = vst.msk [vmem:[#allocation4 + $0x10] sm:$0x1] %vm2344_vm5, %v9162_v9 }
 0x19d   : > { %7270 = vmatpush1.bf16.msra.mxu0 %v7269_v53  ;;  %1198 = vmatprep.mubr.f32.mxu0 %v8598_v1  ;;  %v7299_v53 = vpack.c.bf16 %v1429_v47, %v1427_v46  ;;  %4253 = vst.msk [vmem:[#allocation4 + $0x20] sm:$0x1] %vm2344_vm5, %v9162_v9  ;;  %4254 = vst.msk [vmem:[#allocation4 + $0x30] sm:$0x1] %vm2344_vm5, %v9162_v9 }
 0x19e   : > { %7272 = vmatprep.subr.bf16.mxu0 %v7271_v54  ;;  %v1426_v54 = vld [vmem:[#allocation9 + $0x5a0] sm:$0xff]  ;;  %4255 = vst.msk [vmem:[#allocation4 + $0x40] sm:$0x1] %vm2344_vm5, %v9162_v9  ;;  %4256 = vst.msk [vmem:[#allocation4 + $0x50] sm:$0x1] %vm2344_vm5, %v9162_v9 }
 0x19f   : > { %4257 = vst.msk [vmem:[#allocation4 + $0x60] sm:$0x1] %vm2344_vm5, %v9162_v9  ;;  %4258 = vst.msk [vmem:[#allocation4 + $0x70] sm:$0x1] %vm2344_vm5, %v9162_v9 }
 0x1a0   : > { %1199 = vmatmul.mubr.f32.gmra.mrb[12].mxu0 %v9098_v49  ;;  %4259 = vst.msk [vmem:[#allocation4 + $0x80] sm:$0x1] %vm2344_vm5, %v9162_v9  ;;  %4260 = vst.msk [vmem:[#allocation4 + $0x19] sm:$0x1] %vm2344_vm5, %v9162_v9 }
 0x1a1   : > { %7274 = vmatpush1.bf16.msra.mxu0 %v7273_v60  ;;  %1204 = vmatprep.mubr.f32.mxu0 %v8598_v1  ;;  %v1430_v60 = vld [vmem:[#allocation9 + $0x5c0] sm:$0xff]  ;;  %4261 = vst.msk [vmem:[#allocation4 + $0x29] sm:$0x1] %vm2344_vm5, %v9162_v9  ;;  %4262 = vst.msk [vmem:[#allocation4 + $0x39] sm:$0x1] %vm2344_vm5, %v9162_v9 }
 0x1a2   : > { %7276 = vmatprep.subr.bf16.mxu0 %v7275_v61  ;;  %v1435_v61 = vld [vmem:[#allocation9 + $0x5e8] sm:$0xff]  ;;  %4263 = vst.msk [vmem:[#allocation4 + $0x49] sm:$0x1] %vm2344_vm5, %v9162_v9  ;;  %4264 = vst.msk [vmem:[#allocation4 + $0x59] sm:$0x1] %vm2344_vm5, %v9162_v9 }
 0x1a3   : > { %v7307_v2 = vpack.c.bf16 %v1437_v62, %v1435_v61  ;;  %4265 = vst.msk [vmem:[#allocation4 + $0x69] sm:$0x1] %vm2344_vm5, %v9162_v9  ;;  %4266 = vst.msk [vmem:[#allocation4 + $0x79] sm:$0x1] %vm2344_vm5, %v9162_v9 }
 0x1a4   : > { %1205 = vmatmul.mubr.f32.gmra.mrb[14].mxu0 %v9145_v5  ;;  %4267 = vst.msk [vmem:[#allocation4 + $0x89] sm:$0x1] %vm2344_vm5, %v9162_v9 }
 0x1a5   : > { %7278 = vmatpush1.bf16.msra.mxu0 %v7277_v6  ;;  %1332 = vmatprep.mubr.f32.mxu0 %v8598_v1  ;;  %v1578_v6 = vld [vmem:[#allocation9 + $0x608] sm:$0xff] }
 0x1a6   : > { %7280 = vmatprep.subr.bf16.mxu0 %v7279_v7  ;;  %v1580_v7 = vld [vmem:[#allocation9 + $0x618] sm:$0xff] }
 0x1a8   : > { %1333 = vmatmul.mubr.f32.vlgmr.msra.gmra.mrb[0].mxu0 %v9026_v28  ;;  %v1420_v28 = vld [vmem:[#allocation9 + $0x570] sm:$0xff] }
 0x1a9   : > { %7282 = vmatpush1.bf16.msra.mxu0 %v7281_v14  ;;  %1338 = vmatprep.mubr.f32.mxu0 %v8598_v1  ;;  %v7293_v41 = vpack.c.bf16 %v1420_v28, %v1418_v33  ;;  %v1584_v14 = vld [vmem:[#allocation9 + $0x638] sm:$0xff]  ;;  %v1594_v33 = vld [vmem:[#allocation9 + $0x688] sm:$0xff] }
 0x1aa   : > { %7284 = vmatprep.subr.bf16.mxu0 %v7283_v16  ;;  %v7313_v16 = vpack.c.bf16 %v1579_v13, %v1577_v12  ;;  %v1596_v28 = vld [vmem:[#allocation9 + $0x698] sm:$0xff]  ;;  %v1749_v12 = vld [vmem:[#allocation9 + $0x710] sm:$0xff]  ;;  %v1752_v13 = vld [vmem:[#allocation9 + $0x728] sm:$0xff] }
 0x1ab   : > { %v7327_v37 = vpack.c.bf16 %v1596_v28, %v1594_v33 }
 0x1ac   : > { %1339 = vmatmul.mubr.f32.gmra.mrb[2].mxu0 %v9030_v34  ;;  %v1424_v34 = vld [vmem:[#allocation9 + $0x590] sm:$0xff] }
 0x1ad   : > { %7286 = vmatpush1.bf16.msra.mxu0 %v7285_v23  ;;  %1344 = vmatprep.mubr.f32.mxu0 %v8598_v1  ;;  %v7297_v48 = vpack.c.bf16 %v1424_v34, %v1422_v44  ;;  %v7317_v23 = vpack.c.bf16 %v1583_v18, %v1581_v17  ;;  %v1598_v44 = vld [vmem:[#allocation9 + $0x6a8] sm:$0xff]  ;;  %v1600_v34 = vld [vmem:[#allocation9 + $0x6b8] sm:$0xff]  ;;  %v1753_v17 = vld [vmem:[#allocation9 + $0x730] sm:$0xff] }
 0x1ae   : > { %7288 = vmatprep.subr.bf16.mxu0 %v7287_v24  ;;  %v7319_v24 = vpack.c.bf16 %v1588_v21, %v1586_v20  ;;  %v7331_v47 = vpack.c.bf16 %v1600_v34, %v1598_v44  ;;  %v1756_v18 = vld [vmem:[#allocation9 + $0x748] sm:$0xff]  ;;  %v1758_v20 = vld [vmem:[#allocation9 + $0x758] sm:$0xff]  ;;  %v1767_v34 = vld [vmem:[#allocation9 + $0x7a0] sm:$0xff] }
 0x1b0   : > { %1345 = vmatmul.mubr.f32.gmra.mrb[4].mxu0 %v9034_v35  ;;  %v1428_v35 = vld [vmem:[#allocation9 + $0x5b0] sm:$0xff] }
 0x1b1   : > { %7290 = vmatpush1.bf16.msra.mxu0 %v7289_v31  ;;  %1350 = vmatprep.mubr.f32.mxu0 %v8598_v1  ;;  %v7301_v57 = vpack.c.bf16 %v1428_v35, %v1426_v54  ;;  %v7323_v31 = vpack.c.bf16 %v1592_v26, %v1590_v25  ;;  %v1602_v54 = vld [vmem:[#allocation9 + $0x6c8] sm:$0xff]  ;;  %v1604_v35 = vld [vmem:[#allocation9 + $0x6d8] sm:$0xff] }
 0x1b2   : > { %7292 = vmatprep.subr.bf16.mxu0 %v7291_v32  ;;  %v1589_v32 = vld [vmem:[#allocation9 + $0x660] sm:$0xff]  ;;  %v7335_v56 = vpack.c.bf16 %v1604_v35, %v1602_v54  ;;  %v1762_v25 = vld [vmem:[#allocation9 + $0x778] sm:$0xff]  ;;  %v1776_v35 = vld [vmem:[#allocation9 + $0x7e8] sm:$0xff] }
 0x1b3   : > { %v1771_v54 = vld [vmem:[#allocation9 + $0x7c0] sm:$0xff] }
 0x1b4   : > { %1351 = vmatmul.mubr.f32.gmra.mrb[6].mxu0 %v9038_v40  ;;  %v1432_v40 = vld [vmem:[#allocation9 + $0x5d0] sm:$0xff] }
 0x1b5   : > { %7294 = vmatpush1.bf16.msra.mxu0 %v7293_v41  ;;  %1356 = vmatprep.mubr.f32.mxu0 %v8598_v1  ;;  %v7305_v63 = vpack.c.bf16 %v1432_v40, %v1430_v60  ;;  %v1593_v41 = vld [vmem:[#allocation9 + $0x680] sm:$0xff]  ;;  %v1606_v60 = vld [vmem:[#allocation9 + $0x6e8] sm:$0xff]  ;;  %v1608_v40 = vld [vmem:[#allocation9 + $0x6f8] sm:$0xff] }
 0x1b6   : > { %7296 = vmatprep.subr.bf16.mxu0 %v7295_v42  ;;  %v1595_v42 = vld [vmem:[#allocation9 + $0x690] sm:$0xff]  ;;  %v7339_v62 = vpack.c.bf16 %v1608_v40, %v1606_v60  ;;  %v1918_v60 = vld [vmem:[#allocation9 + $0x808] sm:$0xff]  ;;  %v1920_v40 = vld [vmem:[#allocation9 + $0x818] sm:$0xff] }
 0x1b7   : > { %v7329_v46 = vpack.c.bf16 %v1595_v42, %v1593_v41  ;;  %v1770_v41 = vld [vmem:[#allocation9 + $0x7b8] sm:$0xff] }
 0x1b8   : > { %1357 = vmatmul.mubr.f32.gmra.mrb[8].mxu0 %v9042_v43  ;;  %v1436_v43 = vld [vmem:[#allocation9 + $0x5f0] sm:$0xff] }
 0x1b9   : > { %7298 = vmatpush1.bf16.msra.mxu0 %v7297_v48  ;;  %1362 = vmatprep.mubr.f32.mxu0 %v8598_v1  ;;  %v7309_v10 = vpack.c.bf16 %v1436_v43, %v1434_v4  ;;  %v1597_v48 = vld [vmem:[#allocation9 + $0x6a0] sm:$0xff]  ;;  %v1748_v4 = vld [vmem:[#allocation9 + $0x708] sm:$0xff]  ;;  %v1750_v43 = vld [vmem:[#allocation9 + $0x718] sm:$0xff] }
 0x1ba   : > { %7300 = vmatprep.subr.bf16.mxu0 %v7299_v53  ;;  %v1599_v53 = vld [vmem:[#allocation9 + $0x6b0] sm:$0xff] }
 0x1bb   : > { %v7333_v55 = vpack.c.bf16 %v1599_v53, %v1597_v48 }
 0x1bc   : > { %1363 = vmatmul.mubr.f32.gmra.mrb[10].mxu0 %v9046_v45  ;;  %v7311_v45 = vpack.c.bf16 %v1580_v7, %v1578_v6  ;;  %v9181_v6 = vld [vmem:[#allocation2 + $0x82] sm:$0xff] }
 0x1bd   : > { %7302 = vmatpush1.bf16.msra.mxu0 %v7301_v57  ;;  %1368 = vmatprep.mubr.f32.mxu0 %v8598_v1  ;;  %v1582_v1 = vld [vmem:[#allocation9 + $0x628] sm:$0xff]  ;;  %v1601_v57 = vld [vmem:[#allocation9 + $0x6c0] sm:$0xff] }
 0x1be   : > { %7304 = vmatprep.subr.bf16.mxu0 %v7303_v58  ;;  %v1603_v58 = vld [vmem:[#allocation9 + $0x6d0] sm:$0xff] }
 0x1bf   : > { %v7337_v61 = vpack.c.bf16 %v1603_v58, %v1601_v57  ;;  %v1775_v58 = vld [vmem:[#allocation9 + $0x7e0] sm:$0xff] }
 0x1c0   : > { %1369 = vmatmul.mubr.f32.gmra.mrb[12].mxu0 %v9050_v51  ;;  %v7315_v51 = vpack.c.bf16 %v1584_v14, %v1582_v1  ;;  %v1754_v1 = vld [vmem:[#allocation9 + $0x738] sm:$0xff] }
 0x1c1   : > { %7306 = vmatpush1.bf16.msra.mxu0 %v7305_v63  ;;  %1374 = vmatprep.mubr.f32.mxu0 %v9162_v9  ;;  %v1605_v63 = vld [vmem:[#allocation9 + $0x6e0] sm:$0xff] }
 0x1c2   : > { %7308 = vmatprep.subr.bf16.mxu0 %v7307_v2  ;;  %v1607_v2 = vld [vmem:[#allocation9 + $0x6f0] sm:$0xff] }
 0x1c3   : > { %v7341_v7 = vpack.c.bf16 %v1607_v2, %v1605_v63  ;;  %v1917_v63 = vld [vmem:[#allocation9 + $0x800] sm:$0xff]  ;;  %v1922_v2 = vld [vmem:[#allocation9 + $0x828] sm:$0xff] }
 0x1c4   : > { %1375 = vmatmul.mubr.f32.gmra.mrb[14].mxu0 %v9066_v50  ;;  %v1587_v50 = vld [vmem:[#allocation9 + $0x650] sm:$0xff] }
 0x1c5   : > { %7310 = vmatpush1.bf16.msra.mxu0 %v7309_v10  ;;  %1502 = vmatprep.mubr.f32.mxu0 %v9162_v9  ;;  %v7321_v29 = vpack.c.bf16 %v1587_v50, %v1585_v0  ;;  %v7343_v10 = vpack.c.bf16 %v1750_v43, %v1748_v4  ;;  %v1757_v0 = vld [vmem:[#allocation9 + $0x750] sm:$0xff]  ;;  %v1760_v50 = vld [vmem:[#allocation9 + $0x768] sm:$0xff]  ;;  %v1924_v4 = vld [vmem:[#allocation9 + $0x838] sm:$0xff] }
 0x1c6   : > { %7312 = vmatprep.subr.bf16.mxu0 %v7311_v45  ;;  %v1747_v45 = vld [vmem:[#allocation9 + $0x700] sm:$0xff] }
 0x1c7   : > { %v7345_v14 = vpack.c.bf16 %v1749_v12, %v1747_v45  ;;  %v1738_v43 = vld [vmem:[#allocation2 + $0x21] sm:$0xff]  ;;  %v1923_v45 = vld [vmem:[#allocation9 + $0x830] sm:$0xff]  ;;  %v1926_v12 = vld [vmem:[#allocation9 + $0x848] sm:$0xff] }
 0x1c8   : > { %1503 = vmatmul.mubr.f32.vlgmr.msra.gmra.mrb[0].mxu0 %v9103_v3  ;;  %v1591_v3 = vld [vmem:[#allocation9 + $0x670] sm:$0xff] }
 0x1c9   : > { %7314 = vmatpush1.bf16.msra.mxu0 %v7313_v16  ;;  %1508 = vmatprep.mubr.f32.mxu0 %v9162_v9  ;;  %v7325_v36 = vpack.c.bf16 %v1591_v3, %v1589_v32  ;;  %v7347_v16 = vpack.c.bf16 %v1754_v1, %v1752_v13  ;;  %v1764_v32 = vld [vmem:[#allocation9 + $0x788] sm:$0xff]  ;;  %v1766_v3 = vld [vmem:[#allocation9 + $0x798] sm:$0xff]  ;;  %v1739_v1 = vld [vmem:[#allocation2 + $0x31] sm:$0xff] }
 0x1ca   : > { %7316 = vmatprep.subr.bf16.mxu0 %v7315_v51  ;;  %v1751_v51 = vld [vmem:[#allocation9 + $0x720] sm:$0xff]  ;;  %v7359_v28 = vpack.c.bf16 %v1766_v3, %v1764_v32  ;;  %v1928_v13 = vld [vmem:[#allocation9 + $0x858] sm:$0xff]  ;;  %v1935_v3 = vld [vmem:[#allocation9 + $0x890] sm:$0xff] }
 0x1cb   : > { %v7349_v21 = vpack.c.bf16 %v1753_v17, %v1751_v51  ;;  %v1925_v51 = vld [vmem:[#allocation9 + $0x840] sm:$0xff]  ;;  %v1927_v17 = vld [vmem:[#allocation9 + $0x850] sm:$0xff] }
 0x1cc   : > { %1509 = vmatmul.mubr.f32.gmra.mrb[2].mxu0 %v9107_v11  ;;  %v1933_v32 = vld [vmem:[#allocation9 + $0x880] sm:$0xff] }
 0x1cd   : > { %7318 = vmatpush1.bf16.msra.mxu0 %v7317_v23  ;;  %1514 = vmatprep.mubr.f32.mxu0 %v9162_v9  ;;  %v7351_v23 = vpack.c.bf16 %v1758_v20, %v1756_v18  ;;  %v1930_v18 = vld [vmem:[#allocation9 + $0x868] sm:$0xff]  ;;  %v1932_v20 = vld [vmem:[#allocation9 + $0x878] sm:$0xff] }
 0x1ce   : > { %7320 = vmatprep.subr.bf16.mxu0 %v7319_v24  ;;  %v1755_v24 = vld [vmem:[#allocation9 + $0x740] sm:$0xff] }
 0x1cf   : > { %v7353_v26 = vpack.c.bf16 %v1757_v0, %v1755_v24  ;;  %v7387_v24 = vpack.c.bf16 %v1932_v20, %v1930_v18  ;;  %v1929_v0 = vld [vmem:[#allocation9 + $0x860] sm:$0xff] }
 0x1d0   : > { %1515 = vmatmul.mubr.f32.gmra.mrb[4].mxu0 %v9111_v19 }
 0x1d1   : > { %7322 = vmatpush1.bf16.msra.mxu0 %v7321_v29  ;;  %1520 = vmatprep.mubr.f32.mxu0 %v9162_v9  ;;  %v7355_v29 = vpack.c.bf16 %v1762_v25, %v1760_v50  ;;  %v1931_v50 = vld [vmem:[#allocation9 + $0x870] sm:$0xff]  ;;  %v1934_v25 = vld [vmem:[#allocation9 + $0x888] sm:$0xff] }
 0x1d2   : > { %7324 = vmatprep.subr.bf16.mxu0 %v7323_v31  ;;  %v1759_v31 = vld [vmem:[#allocation9 + $0x760] sm:$0xff] }
 0x1d4   : > { %1521 = vmatmul.mubr.f32.gmra.mrb[6].mxu0 %v9115_v27 }
 0x1d5   : > { %7326 = vmatpush1.bf16.msra.mxu0 %v7325_v36  ;;  %1526 = vmatprep.mubr.f32.mxu0 %v9162_v9  ;;  %v1763_v36 = vld [vmem:[#allocation9 + $0x780] sm:$0xff] }
 0x1d6   : > { %7328 = vmatprep.subr.bf16.mxu0 %v7327_v37  ;;  %v1768_v37 = vld [vmem:[#allocation9 + $0x7a8] sm:$0xff] }
 0x1d7   : > { %v7363_v44 = vpack.c.bf16 %v1770_v41, %v1768_v37  ;;  %v1937_v41 = vld [vmem:[#allocation9 + $0x8a0] sm:$0xff] }
 0x1d8   : > { %1527 = vmatmul.mubr.f32.gmra.mrb[8].mxu0 %v9119_v38 }
 0x1d9   : > { %7330 = vmatpush1.bf16.msra.mxu0 %v7329_v46  ;;  %1532 = vmatprep.mubr.f32.mxu0 %v9162_v9  ;;  %v1772_v46 = vld [vmem:[#allocation9 + $0x7c8] sm:$0xff] }
 0x1da   : > { %7332 = vmatprep.subr.bf16.mxu0 %v7331_v47  ;;  %v1774_v47 = vld [vmem:[#allocation9 + $0x7d8] sm:$0xff] }
 0x1db   : > { %v7367_v53 = vpack.c.bf16 %v1774_v47, %v1772_v46 }
 0x1dc   : > { %1533 = vmatmul.mubr.f32.gmra.mrb[10].mxu0 %v9123_v52 }
 0x1dd   : > { %7334 = vmatpush1.bf16.msra.mxu0 %v7333_v55  ;;  %1538 = vmatprep.mubr.f32.mxu0 %v9162_v9  ;;  %v1778_v55 = vld [vmem:[#allocation9 + $0x7f8] sm:$0xff] }
 0x1de   : > { %7336 = vmatprep.subr.bf16.mxu0 %v7335_v56  ;;  %v7371_v57 = vpack.c.bf16 %v1778_v55, %v1776_v35 }
 0x1e0   : > { %1539 = vmatmul.mubr.f32.gmra.mrb[12].mxu0 %v9127_v59 }
 0x1e1   : > { %7338 = vmatpush1.bf16.msra.mxu0 %v7337_v61  ;;  %1544 = vmatprep.mubr.f32.mxu0 %v9162_v9 }
 0x1e2   : > { %7340 = vmatprep.subr.bf16.mxu0 %v7339_v62  ;;  %v7375_v62 = vpack.c.bf16 %v1920_v40, %v1918_v60 }
 0x1e4   : > { %1545 = vmatmul.mubr.f32.gmra.mrb[14].mxu0 %v9181_v6 }
 0x1e5   : > { %7342 = vmatpush1.bf16.msra.mxu0 %v7341_v7  ;;  %1673 = vmatprep.mubr.f32.mxu0 %v9162_v9 }
 0x1e6   : > { %7344 = vmatprep.subr.bf16.mxu0 %v7343_v10  ;;  %v7379_v10 = vpack.c.bf16 %v1924_v4, %v1922_v2  ;;  %v2138_v2 = vld [vmem:[%s10397_s6 + $0x38] sm:$0xff] }
 0x1e8   : > { %1674 = vmatmul.mubr.f32.vlgmr.msra.gmra.mrb[0].mxu0 %v9078_v8  ;;  %v1761_v8 = vld [vmem:[#allocation9 + $0x770] sm:$0xff] }
 0x1e9   : > { %7346 = vmatpush1.bf16.msra.mxu0 %v7345_v14  ;;  %1679 = vmatprep.mubr.f32.mxu0 %v9162_v9  ;;  %v7357_v33 = vpack.c.bf16 %v1761_v8, %v1759_v31  ;;  %v7389_v31 = vpack.c.bf16 %v1931_v50, %v1929_v0 }
 0x1ea   : > { %7348 = vmatprep.subr.bf16.mxu0 %v7347_v16  ;;  %v7383_v16 = vpack.c.bf16 %v1928_v13, %v1926_v12 }
 0x1ec   : > { %1680 = vmatmul.mubr.f32.gmra.mrb[2].mxu0 %v9082_v15  ;;  %v1765_v15 = vld [vmem:[#allocation9 + $0x790] sm:$0xff] }
 0x1ed   : > { %7350 = vmatpush1.bf16.msra.mxu0 %v7349_v21  ;;  %1685 = vmatprep.mubr.f32.mxu0 %v9162_v9  ;;  %v7361_v42 = vpack.c.bf16 %v1765_v15, %v1763_v36  ;;  %v1740_v21 = vld [vmem:[#allocation2 + $0x41] sm:$0xff]  ;;  %v7393_v15 = vpack.c.bf16 %v1935_v3, %v1933_v32 }
 0x1ee   : > { %7352 = vmatprep.subr.bf16.mxu0 %v7351_v23  ;;  %v7385_v23 = vpack.c.bf16 %v1927_v17, %v1925_v51  ;;  %v1742_v36 = vld [vmem:[#allocation2 + $0x61] sm:$0xff] }
 0x1f0   : > { %1686 = vmatmul.mubr.f32.gmra.mrb[4].mxu0 %v9086_v22  ;;  %v1769_v22 = vld [vmem:[#allocation9 + $0x7b0] sm:$0xff] }
 0x1f1   : > { %7354 = vmatpush1.bf16.msra.mxu0 %v7353_v26  ;;  %1691 = vmatprep.mubr.f32.mxu0 %v9162_v9  ;;  %v7365_v48 = vpack.c.bf16 %v1769_v22, %v1767_v34  ;;  %v1936_v26 = vld [vmem:[#allocation9 + $0x898] sm:$0xff]  ;;  %v1743_v22 = vld [vmem:[#allocation2 + $0x71] sm:$0xff] }
 0x1f2   : > { %7356 = vmatprep.subr.bf16.mxu0 %v7355_v29  ;;  %v1741_v29 = vld [vmem:[#allocation2 + $0x51] sm:$0xff]  ;;  %v7391_v8 = vpack.c.bf16 %v1936_v26, %v1934_v25  ;;  %v1944_v34 = vld [vmem:[#allocation9 + $0x8d8] sm:$0xff] }
 0x1f4   : > { %1692 = vmatmul.mubr.f32.gmra.mrb[6].mxu0 %v9090_v30  ;;  %v1773_v30 = vld [vmem:[#allocation9 + $0x7d0] sm:$0xff] }
 0x1f5   : > { %7358 = vmatpush1.bf16.msra.mxu0 %v7357_v33  ;;  %1697 = vmatprep.mubr.f32.mxu0 %v9162_v9  ;;  %v7369_v56 = vpack.c.bf16 %v1773_v30, %v1771_v54  ;;  %v1938_v33 = vld [vmem:[#allocation9 + $0x8a8] sm:$0xff]  ;;  %v1948_v30 = vld [vmem:[#allocation9 + $0x8f8] sm:$0xff] }
 0x1f6   : > { %7360 = vmatprep.subr.bf16.mxu0 %v7359_v28  ;;  %v1940_v28 = vld [vmem:[#allocation9 + $0x8b8] sm:$0xff]  ;;  %v1946_v54 = vld [vmem:[#allocation9 + $0x8e8] sm:$0xff] }
 0x1f7   : > { %v7395_v37 = vpack.c.bf16 %v1940_v28, %v1938_v33  ;;  %v7403_v55 = vpack.c.bf16 %v1948_v30, %v1946_v54 }
 0x1f8   : > { %1698 = vmatmul.mubr.f32.gmra.mrb[8].mxu0 %v9094_v39  ;;  %v1777_v39 = vld [vmem:[#allocation9 + $0x7f0] sm:$0xff] }
 0x1f9   : > { %7362 = vmatpush1.bf16.msra.mxu0 %v7361_v42  ;;  %1703 = vmatprep.mubr.f32.mxu0 %v9162_v9  ;;  %v7373_v61 = vpack.c.bf16 %v1777_v39, %v1775_v58  ;;  %v1939_v42 = vld [vmem:[#allocation9 + $0x8b0] sm:$0xff]  ;;  %v8243_v58 = vld [vmem:[#allocation2 + $0x81] sm:$0xff] }
 0x1fa   : > { %7364 = vmatprep.subr.bf16.mxu0 %v7363_v44  ;;  %v1942_v44 = vld [vmem:[#allocation9 + $0x8c8] sm:$0xff]  ;;  %v7397_v46 = vpack.c.bf16 %v1939_v42, %v1937_v41  ;;  %v1745_v39 = vld [vmem:[#allocation2 + $0x91] sm:$0xff] }
 0x1fb   : > { %v7399_v47 = vpack.c.bf16 %v1944_v34, %v1942_v44 }
 0x1fc   : > { %1704 = vmatmul.mubr.f32.gmra.mrb[10].mxu0 %v9098_v49  ;;  %v1919_v49 = vld [vmem:[#allocation9 + $0x810] sm:$0xff] }
 0x1fd   : > { %7366 = vmatpush1.bf16.msra.mxu0 %v7365_v48  ;;  %1709 = vmatprep.mubr.f32.mxu0 %v9162_v9  ;;  %v7377_v7 = vpack.c.bf16 %v1919_v49, %v1917_v63  ;;  %v1941_v48 = vld [vmem:[#allocation9 + $0x8c0] sm:$0xff]  ;;  %v2137_v49 = vld [vmem:[%s10397_s6 + $0x30] sm:$0xff] }
 0x1fe   : > { %7368 = vmatprep.subr.bf16.mxu0 %v7367_v53  ;;  %v1943_v53 = vld [vmem:[#allocation9 + $0x8d0] sm:$0xff]  ;;  %v7417_v4 = vpack.c.bf16 %v2138_v2, %v2137_v49 }
 0x1ff   : > { %v7401_v35 = vpack.c.bf16 %v1943_v53, %v1941_v48 }
 0x200   : > { %1710 = vmatmul.mubr.f32.gmra.mrb[12].mxu0 %v9145_v5  ;;  %v1921_v5 = vld [vmem:[#allocation9 + $0x820] sm:$0xff] }
 0x201   : > { %7370 = vmatpush1.bf16.msra.mxu0 %v7369_v56  ;;  %1715 = vmatprep.mubr.f32.mxu0 %v9162_v9  ;;  %v7381_v14 = vpack.c.bf16 %v1923_v45, %v1921_v5  ;;  %v1945_v56 = vld [vmem:[#allocation9 + $0x8e0] sm:$0xff] }
 0x202   : > { %7372 = vmatprep.subr.bf16.mxu0 %v7371_v57  ;;  %v1947_v57 = vld [vmem:[#allocation9 + $0x8f0] sm:$0xff] }
 0x203   : > { %v7405_v60 = vpack.c.bf16 %v1947_v57, %v1945_v56 }
 0x204   : > { %1716 = vmatmul.mubr.f32.gmra.mrb[14].mxu0 %v9162_v9 }
 0x205   : > { %7374 = vmatpush1.bf16.msra.mxu0 %v7373_v61  ;;  %1843 = vmatprep.mubr.f32.mxu0 %v9162_v9  ;;  %v2135_v61 = vld [vmem:[%s10397_s6 + $0x20] sm:$0xff] }
 0x206   : > { %7376 = vmatprep.subr.bf16.mxu0 %v7375_v62  ;;  %v2136_v62 = vld [vmem:[%s10397_s6 + $0x28] sm:$0xff] }
 0x207   : > { %v7414_v63 = vpack.c.bf16 %v2136_v62, %v2135_v61 }
 0x208   : > { %1844 = vmatmul.mubr.f32.vlgmr.msra.gmra.mrb[0].mxu0 %v1738_v43 }
 0x209   : > { %7378 = vmatpush1.bf16.msra.mxu0 %v7377_v7  ;;  %1849 = vmatprep.mubr.f32.mxu0 %v9162_v9 }
 0x20a   : > { %7380 = vmatprep.subr.bf16.mxu0 %v7379_v10 }
 0x20c   : > { %1850 = vmatmul.mubr.f32.gmra.mrb[2].mxu0 %v1739_v1 }
 0x20d   : > { %7382 = vmatpush1.bf16.msra.mxu0 %v7381_v14  ;;  %1855 = vmatprep.mubr.f32.mxu0 %v9162_v9 }
 0x20e   : > { %7384 = vmatprep.subr.bf16.mxu0 %v7383_v16 }
 0x210   : > { %1856 = vmatmul.mubr.f32.gmra.mrb[4].mxu0 %v1740_v21 }
 0x211   : > { %7386 = vmatpush1.bf16.msra.mxu0 %v7385_v23  ;;  %1861 = vmatprep.mubr.f32.mxu0 %v9162_v9 }
 0x212   : > { %7388 = vmatprep.subr.bf16.mxu0 %v7387_v24 }
 0x214   : > { %1862 = vmatmul.mubr.f32.gmra.mrb[6].mxu0 %v1741_v29 }
 0x215   : > { %7390 = vmatpush1.bf16.msra.mxu0 %v7389_v31  ;;  %1867 = vmatprep.mubr.f32.mxu0 %v9162_v9 }
 0x216   : > { %7392 = vmatprep.subr.bf16.mxu0 %v7391_v8 }
 0x218   : > { %1868 = vmatmul.mubr.f32.gmra.mrb[8].mxu0 %v1742_v36 }
 0x219   : > { %7394 = vmatpush1.bf16.msra.mxu0 %v7393_v15  ;;  %1873 = vmatprep.mubr.f32.mxu0 %v9162_v9 }
 0x21a   : > { %7396 = vmatprep.subr.bf16.mxu0 %v7395_v37 }
 0x21c   : > { %1874 = vmatmul.mubr.f32.gmra.mrb[10].mxu0 %v1743_v22 }
 0x21d   : > { %7398 = vmatpush1.bf16.msra.mxu0 %v7397_v46  ;;  %1879 = vmatprep.mubr.f32.mxu0 %v9162_v9 }
 0x21e   : > { %7400 = vmatprep.subr.bf16.mxu0 %v7399_v47 }
 0x220   : > { %1880 = vmatmul.mubr.f32.gmra.mrb[12].mxu0 %v8243_v58 }
 0x221   : > { %7402 = vmatpush1.bf16.msra.mxu0 %v7401_v35  ;;  %1885 = vmatprep.mubr.f32.mxu0 %v9162_v9 }
 0x222   : > { %7404 = vmatprep.subr.bf16.mxu0 %v7403_v55 }
 0x224   : > { %1886 = vmatmul.mubr.f32.gmra.mrb[14].mxu0 %v1745_v39 }
 0x225   : > { %7406 = vmatpush1.bf16.msra.mxu0 %v7405_v60  ;;  %2013 = vmatprep.mubr.f32.mxu0 %v9162_v9 }
 0x228   : > { %2014 = vmatmul.mubr.f32.vlgmr.msra.gmra.mrb[0].mxu0 %v9107_v11  ;;  %v1915_v11 = vld [vmem:[#allocation2 + $0x92] sm:$0xff] }
 0x229   : > { %2019 = vmatprep.mubr.f32.mxu0 %v9162_v9 }
 0x22c   : > { %2020 = vmatmul.mubr.f32.gmra.mrb[2].mxu0 %v9111_v19  ;;  %v2131_v19 = vld [vmem:[%s10397_s6] sm:$0xff] }
 0x22d   : > { %2025 = vmatprep.mubr.f32.mxu0 %v9162_v9 }
 0x230   : > { %2026 = vmatmul.mubr.f32.gmra.mrb[4].mxu0 %v9115_v27  ;;  %v2132_v27 = vld [vmem:[%s10397_s6 + $0x8] sm:$0xff] }
 0x231   : > { %2031 = vmatprep.mubr.f32.mxu0 %v9162_v9 }
 0x234   : > { %2032 = vmatmul.mubr.f32.gmra.mrb[6].mxu0 %v9119_v38  ;;  %v7408_v38 = vpack.c.bf16 %v2132_v27, %v2131_v19 }
 0x235   : > { %2037 = vmatprep.mubr.f32.mxu0 %v9162_v9 }
 0x238   : > { %2038 = vmatmul.mubr.f32.gmra.mrb[8].mxu0 %v9123_v52  ;;  %v8599_v52 = vmov 0.0|0.0  }
 0x239   : > { %2043 = vmatprep.mubr.f32.mxu0 %v9162_v9  ;;  %7407 = vmatprep.subr.bf16.mxu1 %v8599_v52 }
 0x23a   : > { %7409 = vmatpush3.bf16.msra.mxu1 %v7408_v38 }
 0x23b   : > { %7410 = vmatprep.subr.bf16.mxu1 %v8599_v52 }
 0x23c   : > { %2044 = vmatmul.mubr.f32.gmra.mrb[10].mxu0 %v9127_v59  ;;  %v2133_v59 = vld [vmem:[%s10397_s6 + $0x10] sm:$0xff] }
 0x23d   : > { %2049 = vmatprep.mubr.f32.mxu0 %v9162_v9 }
 0x240   : > { %2050 = vmatmul.mubr.f32.gmra.mrb[12].mxu0 %v9181_v6  ;;  %v2134_v6 = vld [vmem:[%s10397_s6 + $0x18] sm:$0xff] }
 0x241   : > { %2055 = vmatprep.mubr.f32.mxu0 %v9162_v9  ;;  %v7411_v40 = vpack.c.bf16 %v2134_v6, %v2133_v59 }
 0x243   : > { %7412 = vmatpush3.bf16.msra.mxu1 %v7411_v40 }
 0x244   : > { %2056 = vmatmul.mubr.f32.gmra.mrb[14].mxu0 %v1915_v11  ;;  %7413 = vmatprep.subr.bf16.mxu1 %v8599_v52 }
 0x245   : > { %2506 = vmatprep.mubr.f32.mxu0 %v9162_v9 }
 0x247   : > { %7415 = vmatpush3.bf16.msra.mxu1 %v7414_v63 }
 0x248   : > { %7416 = vmatprep.subr.bf16.mxu1 %v8599_v52 }
 0x24b   : > { %7418 = vmatpush3.bf16.msra.mxu1 %v7417_v4 }
 0x24c   : > { %6754 = vmatprep.subr.mxu1 %v9162_v9 }
 0x2fb   : > { %v9263_v43 = vpop.f32.mrb[0].mxu0 }
 0x2fc   : > { %v9265_v7 = vpop.f32.mrb[1].mxu0  ;;  %v2100_v10 = vmul.f32 %v9263_v43, %v9263_v43  ;;  %v2079_v45 = vsel %vm2078_vm0, %v9263_v43, 0.0 }
 0x2fe   : > { %v2108_v16 = vsel %vm2078_vm0, %v2100_v10, 0.0 }
 0x2ff   : > { %v9269_v5 = vpop.f32.mrb[2].mxu0 }
 0x300   : > { %v2080_v12 = vsel %vm2078_vm0, %v9269_v5, 0.0  ;;  %v2101_v13 = vmul.f32 %v9269_v5, %v9269_v5  ;;  %v9277_v1 = vpop.f32.mrb[3].mxu0 }
 0x301   : > { %v2081_v14 = vadd.f32 %v2080_v12, %v2079_v45 }
 0x302   : > { %v2109_v51 = vsel %vm2078_vm0, %v2101_v13, 0.0 }
 0x303   : > { %v2110_v17 = vadd.f32 %v2109_v51, %v2108_v16  ;;  %v9281_v18 = vpop.f32.mrb[4].mxu0  ;;  %v2230_v16 = vld [vmem:[#allocation14] sm:$0xff]  ;;  %v2403_v51 = vld [vmem:[#allocation11 + $0x88] sm:$0xff] }
 0x304   : > { %v2082_v20 = vsel %vm2078_vm0, %v9281_v18, 0.0  ;;  %v2102_v21 = vmul.f32 %v9281_v18, %v9281_v18  ;;  %v9287_v23 = vpop.f32.mrb[5].mxu0 }
 0x305   : > { %v2083_v24 = vadd.f32 %v2082_v20, %v2081_v14  ;;  %v2378_v20 = vld [vmem:[#allocation11 + $0x8] sm:$0xff] }
 0x306   : > { %v2111_v0 = vsel %vm2078_vm0, %v2102_v21, 0.0 }
 0x307   : > { %v2112_v50 = vadd.f32 %v2111_v0, %v2110_v17  ;;  %v9290_v25 = vpop.f32.mrb[6].mxu0  ;;  %v2405_v17 = vld [vmem:[#allocation11 + $0x98] sm:$0xff]  ;;  %v2402_v0 = vld [vmem:[#allocation11 + $0x80] sm:$0xff] }
 0x308   : > { %v2084_v26 = vsel %vm2078_vm0, %v9290_v25, 0.0  ;;  %v2103_v29 = vmul.f32 %v9290_v25, %v9290_v25  ;;  %v9296_v31 = vpop.f32.mrb[7].mxu0  ;;  %v7419_v21 = vpack.c.bf16 %v2405_v17, %v2403_v51  ;;  %v2385_v17 = vld [vmem:[#allocation11 + $0x40] sm:$0xff] }
 0x309   : > { %v2085_v8 = vadd.f32 %v2084_v26, %v2083_v24  ;;  %v2380_v24 = vld [vmem:[#allocation11 + $0x18] sm:$0xff] }
 0x30a   : > { %v2113_v32 = vsel %vm2078_vm0, %v2103_v29, 0.0  ;;  %v7435_v26 = vpack.c.bf16 %v2380_v24, %v2378_v20  ;;  %7420 = vmatprep.subr.bf16.mxu0 %v7419_v21  ;;  %v2387_v20 = vld [vmem:[#allocation11 + $0x50] sm:$0xff]  ;;  %v2415_v24 = vld [vmem:[#allocation11 + $0xe8] sm:$0xff] }
 0x30b   : > { %v2114_v3 = vadd.f32 %v2113_v32, %v2112_v50  ;;  %v9299_v33 = vpop.f32.mrb[8].mxu0  ;;  %v2404_v50 = vld [vmem:[#allocation11 + $0x90] sm:$0xff]  ;;  %v7445_v21 = vpack.c.bf16 %v2387_v20, %v2385_v17 }
 0x30c   : > { %v2086_v28 = vsel %vm2078_vm0, %v9299_v33, 0.0  ;;  %v2104_v36 = vmul.f32 %v9299_v33, %v9299_v33  ;;  %v9305_v15 = vpop.f32.mrb[9].mxu0  ;;  %v7421_v29 = vpack.c.bf16 %v2404_v50, %v2402_v0  ;;  %v2417_v0 = vld [vmem:[#allocation11 + $0xf8] sm:$0xff]  ;;  %v2390_v50 = vld [vmem:[#allocation11 + $0x68] sm:$0xff] }
 0x30d   : > { %v2087_v37 = vadd.f32 %v2086_v28, %v2085_v8 }
 0x30e   : > { %v2115_v41 = vsel %vm2078_vm0, %v2104_v36, 0.0  ;;  %7422 = vmatpush1.bf16.msra.mxu0 %v7421_v29  ;;  %v2392_v29 = vld [vmem:[#allocation11 + $0x78] sm:$0xff] }
 0x30f   : > { %v2116_v42 = vadd.f32 %v2115_v41, %v2114_v3  ;;  %v9308_v44 = vpop.f32.mrb[10].mxu0 }
 0x310   : > { %v2088_v34 = vsel %vm2078_vm0, %v9308_v44, 0.0  ;;  %v2105_v22 = vmul.f32 %v9308_v44, %v9308_v44  ;;  %v9314_v46 = vpop.f32.mrb[11].mxu0 }
 0x311   : > { %v2089_v47 = vadd.f32 %v2088_v34, %v2087_v37 }
 0x312   : > { %v2117_v48 = vsel %vm2078_vm0, %v2105_v22, 0.0 }
 0x313   : > { %v2118_v53 = vadd.f32 %v2117_v48, %v2116_v42  ;;  %v9317_v54 = vpop.f32.mrb[12].mxu0  ;;  %v2377_v48 = vld [vmem:[#allocation11] sm:$0xff] }
 0x314   : > { %v2090_v30 = vsel %vm2078_vm0, %v9317_v54, 0.0  ;;  %v2106_v35 = vmul.f32 %v9317_v54, %v9317_v54  ;;  %v9323_v55 = vpop.f32.mrb[13].mxu0 }
 0x315   : > { %v2091_v56 = vadd.f32 %v2090_v30, %v2089_v47 }
 0x316   : > { %v2119_v57 = vsel %vm2078_vm0, %v2106_v35, 0.0 }
 0x317   : > { %v2120_v58 = vadd.f32 %v2119_v57, %v2118_v53  ;;  %v9326_v39 = vpop.f32.mrb[14].mxu0  ;;  %v2379_v53 = vld [vmem:[#allocation11 + $0x10] sm:$0xff] }
 0x318   : > { %v2092_v60 = vsel %vm2078_vm0, %v9326_v39, 0.0  ;;  %v2107_v11 = vmul.f32 %v9326_v39, %v9326_v39  ;;  %v9332_v19 = vpop.f32.mrb[15].mxu0 }
 0x319   : > { %v2093_v27 = vadd.f32 %v2092_v60, %v2091_v56  ;;  %v7437_v56 = vpack.c.bf16 %v2379_v53, %v2377_v48  ;;  %v2409_v60 = vld [vmem:[#allocation11 + $0xb8] sm:$0xff]  ;;  %v2703_v48 = vld [vmem:[#allocation11 + $0x110] sm:$0xff] }
 0x31a   : > { %v2121_v38 = vsel %vm2078_vm0, %v2107_v11, 0.0  ;;  %v2382_v11 = vld [vmem:[#allocation11 + $0x28] sm:$0xff]  ;;  %v2369_v53 = vld [vmem:[#allocation3] sm:$0xff] }
 0x31b   : > { %v2094_v59 = vrot.slane %v2093_v27, 4  ;;  %v2122_v6 = vadd.f32 %v2121_v38, %v2120_v58  ;;  %v2407_v58 = vld [vmem:[#allocation11 + $0xa8] sm:$0xff]  ;;  %v2384_v38 = vld [vmem:[#allocation11 + $0x38] sm:$0xff] }
 0x31d   : > { %v2095_v40 = vadd.f32 %v2094_v59, %v2093_v27  ;;  %v2123_v61 = vrot.slane %v2122_v6, 4  ;;  %v7423_v27 = vpack.c.bf16 %v2409_v60, %v2407_v58  ;;  %v2406_v59 = vld [vmem:[#allocation11 + $0xa0] sm:$0xff] }
 0x31e   : > { %v2705_v58 = vld [vmem:[#allocation11 + $0x120] sm:$0xff] }
 0x31f   : > { %v2096_v62 = vrot.slane %v2095_v40, 2  ;;  %v2124_v63 = vadd.f32 %v2123_v61, %v2122_v6  ;;  %v2408_v6 = vld [vmem:[#allocation11 + $0xb0] sm:$0xff]  ;;  %7424 = vmatprep.subr.bf16.mxu0 %v7423_v27 }
 0x320   : > { %v7425_v61 = vpack.c.bf16 %v2408_v6, %v2406_v59  ;;  %v2712_v59 = vld [vmem:[#allocation11 + $0x158] sm:$0xff]  ;;  %v2709_v6 = vld [vmem:[#allocation11 + $0x140] sm:$0xff] }
 0x321   : > { %v2097_v49 = vadd.f32 %v2096_v62, %v2095_v40  ;;  %v2125_v2 = vrot.slane %v2124_v63, 2  ;;  %v7439_v40 = vpack.c.bf16 %v2384_v38, %v2382_v11  ;;  %v2381_v62 = vld [vmem:[#allocation11 + $0x20] sm:$0xff]  ;;  %v2707_v11 = vld [vmem:[#allocation11 + $0x130] sm:$0xff]  ;;  %v2710_v38 = vld [vmem:[#allocation11 + $0x148] sm:$0xff] }
 0x322   : > { %7426 = vmatpush1.bf16.msra.mxu0 %v7425_v61  ;;  %v7457_v27 = vpack.c.bf16 %v2707_v11, %v2705_v58  ;;  %v2711_v61 = vld [vmem:[#allocation11 + $0x150] sm:$0xff] }
 0x323   : > { %v2098_v4 = vrot.slane %v2097_v49, 1  ;;  %v2126_v10 = vadd.f32 %v2125_v2, %v2124_v63  ;;  %v2383_v63 = vld [vmem:[#allocation11 + $0x30] sm:$0xff]  ;;  %v2411_v2 = vld [vmem:[#allocation11 + $0xc8] sm:$0xff] }
 0x325   : > { %v2127_v45 = vrot.slane %v2126_v10, 1  ;;  %v2099_v12 = vadd.f32 %v2098_v4, %v2097_v49  ;;  %v7441_v49 = vpack.c.bf16 %v2383_v63, %v2381_v62  ;;  %v2413_v4 = vld [vmem:[#allocation11 + $0xd8] sm:$0xff]  ;;  %v7461_v62 = vpack.c.bf16 %v2711_v61, %v2709_v6  ;;  %v2714_v63 = vld [vmem:[#allocation11 + $0x168] sm:$0xff] }
 0x326   : > { %v9445_v6 = vld [vmem:[#allocation2] sm:$0xff] }
 0x327   : > { %v2128_v13 = vadd.f32 %v2127_v45, %v2126_v10  ;;  %v2386_v10 = vld [vmem:[#allocation11 + $0x48] sm:$0xff]  ;;  %v7427_v45 = vpack.c.bf16 %v2413_v4, %v2411_v2  ;;  %v2713_v2 = vld [vmem:[#allocation11 + $0x160] sm:$0xff]  ;;  %v2715_v4 = vld [vmem:[#allocation11 + $0x170] sm:$0xff] }
 0x329   : > { %v2130_v14 = vsel %vm2129_vm2, %v2099_v12, %v2128_v13  ;;  %v2388_v12 = vld [vmem:[#allocation11 + $0x58] sm:$0xff]  ;;  %v2410_v13 = vld [vmem:[#allocation11 + $0xc0] sm:$0xff]  ;;  %7428 = vmatprep.subr.bf16.mxu0 %v7427_v45  ;;  %v2880_v45 = vld [vmem:[#allocation11 + $0x188] sm:$0xff] }
 0x32a   : > { %6752 = vmatmul.mubr.msk.f32.vlgmr.msra.gmra.mrb[0].mxu1 %vm2078_vm0, %v2130_v14  ;;  %v2412_v14 = vld [vmem:[#allocation11 + $0xd0] sm:$0xff] }
 0x32b   : > { %6756 = vmatprep.mubr.msk.f32.mxu1 %vm8600_vm1, %v9162_v9  ;;  %6755 = vmatpush3.msra.mxu1 %v2230_v16  ;;  %v7443_v16 = vpack.c.bf16 %v2388_v12, %v2386_v10  ;;  %v7429_v51 = vpack.c.bf16 %v2412_v14, %v2410_v13  ;;  %v7465_v10 = vpack.c.bf16 %v2715_v4, %v2713_v2  ;;  %v2882_v12 = vld [vmem:[#allocation11 + $0x198] sm:$0xff]  ;;  %v2305_v14 = vlaneseq }
 0x32c   : > { %7436 = vmatprep.subr.bf16.mxu1 %v7435_v26  ;;  %v7431_v26 = vpack.c.bf16 %v2417_v0, %v2415_v24  ;;  %v7467_v13 = vpack.c.bf16 %v2882_v12, %v2880_v45  ;;  %v2879_v12 = vld [vmem:[#allocation11 + $0x180] sm:$0xff] }
 0x32d   : > { %7430 = vmatpush1.bf16.msra.mxu0 %v7429_v51 }
 0x32e   : > { %7432 = vmatprep.subr.bf16.mxu0 %v7431_v26 }
 0x3fd   : > { %v2208_v8 = vpop.f32.mrb[0].mxu1 }
 0x3fe   : > { %v2212_v32 = vmul.f32 0.001953125, %v2208_v8  ;;  %v6753_v3 = vpop.f32.mrb[1].mxu1  ;;  %v2414_v8 = vld [vmem:[#allocation11 + $0xe0] sm:$0xff] }
 0x3ff   : > { %v7447_v3 = vpack.c.bf16 %v2392_v29, %v2390_v50 }
 0x400   : > { %v2213_v28 = vmul.f32 %v2212_v32, %v2212_v32  ;;  %v2221_v22 = vsub.f32 0.0, %v2212_v32 }
 0x402   : > { %v2215_v36 = vrot.slane %v2213_v28, 7 }
 0x404   : > { %v2217_v37 = vsub.f32 %v2212_v32, %v2215_v36  ;;  %v2416_v32 = vld [vmem:[#allocation11 + $0xf0] sm:$0xff]  ;;  %v2389_v36 = vld [vmem:[#allocation11 + $0x60] sm:$0xff] }
 0x405   : > { %v7433_v28 = vpack.c.bf16 %v2416_v32, %v2414_v8 }
 0x406   : > { %v2218_v41 = vmax.f32 %v2217_v37, 0.0  ;;  %v2391_v37 = vld [vmem:[#allocation11 + $0x70] sm:$0xff] }
 0x407   : > { %7434 = vmatpush1.bf16.msra.mxu0 %v7433_v28 }
 0x408   : > { %v2219_v42 = vadd.f32 1e-05, %v2218_v41  ;;  %v7449_v41 = vpack.c.bf16 %v2391_v37, %v2389_v36  ;;  %7563 = vmatprep.subr.bf16.mxu0 %v8599_v52 }
 0x40a   : > { %8232 = vrsqrt.f32 %v2219_v42  ;;  %v2702_v42 = vld [vmem:[#allocation11 + $0x108] sm:$0xff] }
 0x414   : > { %v8233_v34 = vpop.eup %8232 }
 0x415   : > { %v2223_v47 = vrot.slane %v8233_v34, 1  ;;  %v2704_v34 = vld [vmem:[#allocation11 + $0x118] sm:$0xff] }
 0x417   : > { %v2225_v30 = vmul.f32 %v2223_v47, %v2221_v22  ;;  %v7451_v22 = vpack.c.bf16 %v2704_v34, %v2702_v42 }
 0x419   : > { %v2227_v35 = vrot.slane %v2225_v30, 7 }
 0x41b   : > { %v2229_v57 = vsel %vm2129_vm2, %v2223_v47, %v2227_v35  ;;  %v2701_v47 = vld [vmem:[#allocation11 + $0x100] sm:$0xff] }
 0x41c   : > { %6757 = vmatmul.mubr.msk.f32.vlgmr.msra.gmra.mrb[2].mxu1 %vm2231_vm3, %v2229_v57  ;;  %v7453_v30 = vpack.c.bf16 %v2703_v48, %v2701_v47  ;;  %v2393_v35 = vld [vmem:[#allocation3 + $0x1] sm:$0xff]  ;;  %v2708_v57 = vld [vmem:[#allocation11 + $0x138] sm:$0xff] }
 0x41d   : > { %7438 = vmatpush1.bf16.msra.mxu1 %v7437_v56  ;;  %2643 = vmatprep.mubr.f32.mxu1 %v9162_v9  ;;  %v2706_v56 = vld [vmem:[#allocation11 + $0x128] sm:$0xff] }
 0x41e   : > { %7440 = vmatprep.subr.bf16.mxu1 %v7439_v40  ;;  %6373 = vmatmul.mubr.msk.f32.vlgmr.msra.gmra.mrb[16].mxu0 %vm2078_vm0, %v2393_v35  ;;  %v7455_v60 = vpack.c.bf16 %v2708_v57, %v2706_v56  ;;  %v7459_v40 = vpack.c.bf16 %v2712_v59, %v2710_v38 }
 0x41f   : > { %2512 = vmatprep.mubr.f32.mxu0 %v9162_v9 }
 0x421   : > { %7442 = vmatpush1.bf16.msra.mxu1 %v7441_v49  ;;  %v2716_v49 = vld [vmem:[#allocation11 + $0x178] sm:$0xff] }
 0x422   : > { %7444 = vmatprep.subr.bf16.mxu1 %v7443_v16  ;;  %v2306_v16 = vshrl.u32 %v2305_v14, 7  ;;  %v2884_v14 = vld [vmem:[#allocation11 + $0x1a8] sm:$0xff] }
 0x424   : > { %v9415_v51 = vsub.s32 0, %v2306_v16  ;;  %v9417_v17 = vsub.s32 1, %v2306_v16 }
 0x425   : > { %7446 = vmatpush1.bf16.msra.mxu1 %v7445_v21 }
 0x426   : > { %7448 = vmatprep.subr.bf16.mxu1 %v7447_v3 }
 0x429   : > { %7450 = vmatpush1.bf16.msra.mxu1 %v7449_v41 }
 0x42a   : > { %7452 = vmatprep.subr.bf16.mxu1 %v7451_v22 }
 0x42c   : > { %6381 = vmatmul.mubr.msk.f32.vlgmr.msra.gmra.mrb[4].mxu1 %vm2078_vm0, %v2369_v53 }
 0x42d   : > { %7454 = vmatpush1.bf16.msra.mxu1 %v7453_v30  ;;  %2649 = vmatprep.mubr.f32.mxu1 %v9162_v9  ;;  %v7463_v9 = vpack.c.bf16 %v2716_v49, %v2714_v63 }
 0x42e   : > { %7456 = vmatprep.subr.bf16.mxu1 %v7455_v60 }
 0x431   : > { %7458 = vmatpush1.bf16.msra.mxu1 %v7457_v27 }
 0x432   : > { %7460 = vmatprep.subr.bf16.mxu1 %v7459_v40 }
 0x435   : > { %7462 = vmatpush1.bf16.msra.mxu1 %v7461_v62 }
 0x436   : > { %7464 = vmatprep.subr.bf16.mxu1 %v7463_v9 }
 0x439   : > { %7466 = vmatpush1.bf16.msra.mxu1 %v7465_v10 }
 0x43a   : > { %7468 = vmatprep.subr.bf16.mxu1 %v7467_v13  ;;  %v2881_v13 = vld [vmem:[#allocation11 + $0x190] sm:$0xff] }
 0x4ef   : > { %v2301_v20 = vpop.f32.mrb[2].mxu1 }
 0x4f0   : > { %v2308_v21 = vrot.slane %v2301_v20, %v9415_v51  ;;  %v6758_v24 = vpop.f32.mrb[3].mxu1  ;;  %v2320_v0 = vrot.slane %v2301_v20, %v9417_v17 }
 0x4f1   : > { %v2692_v24 = vld [vmem:[#allocation3 + $0x2] sm:$0xff] }
 0x4f2   : > { %v2309_v50 = vmul.f32 %v2308_v21, %v9263_v43  ;;  %v2310_v26 = vmul.f32 %v2308_v21, %v9269_v5  ;;  %v2311_v29 = vmul.f32 %v2308_v21, %v9281_v18  ;;  %v2312_v8 = vmul.f32 %v2308_v21, %v9290_v25 }
 0x4f3   : > { %v2313_v32 = vmul.f32 %v2308_v21, %v9299_v33  ;;  %v2314_v3 = vmul.f32 %v2308_v21, %v9308_v44  ;;  %v2315_v28 = vmul.f32 %v2308_v21, %v9317_v54  ;;  %v2316_v36 = vmul.f32 %v2308_v21, %v9326_v39  ;;  %v2886_v21 = vld [vmem:[#allocation11 + $0x1b8] sm:$0xff] }
 0x4f4   : > { %v2321_v37 = vadd.f32 %v2320_v0, %v2309_v50  ;;  %v2322_v41 = vadd.f32 %v2320_v0, %v2310_v26  ;;  %v2323_v42 = vadd.f32 %v2320_v0, %v2311_v29  ;;  %v2324_v34 = vadd.f32 %v2320_v0, %v2312_v8  ;;  %v2883_v26 = vld [vmem:[#allocation11 + $0x1a0] sm:$0xff]  ;;  %v2885_v29 = vld [vmem:[#allocation11 + $0x1b0] sm:$0xff]  ;;  %v2888_v8 = vld [vmem:[#allocation11 + $0x1c8] sm:$0xff] }
 0x4f5   : > { %v2325_v22 = vadd.f32 %v2320_v0, %v2313_v32  ;;  %v2326_v47 = vadd.f32 %v2320_v0, %v2314_v3  ;;  %v2327_v48 = vadd.f32 %v2320_v0, %v2315_v28  ;;  %v2328_v53 = vadd.f32 %v2320_v0, %v2316_v36  ;;  %v2890_v32 = vld [vmem:[#allocation11 + $0x1d8] sm:$0xff]  ;;  %v2887_v36 = vld [vmem:[#allocation11 + $0x1c0] sm:$0xff] }
 0x4f6   : > { %v2329_v30 = vmax.f32 %v2321_v37, 0.0  ;;  %v2330_v35 = vmax.f32 %v2322_v41, 0.0  ;;  %v2331_v56 = vmax.f32 %v2323_v42, 0.0  ;;  %v2332_v57 = vmax.f32 %v2324_v34, 0.0  ;;  %v2889_v37 = vld [vmem:[#allocation11 + $0x1d0] sm:$0xff]  ;;  %v2892_v42 = vld [vmem:[#allocation11 + $0x1e8] sm:$0xff] }
 0x4f7   : > { %v2333_v58 = vmax.f32 %v2325_v22, 0.0  ;;  %v2334_v60 = vmax.f32 %v2326_v47, 0.0  ;;  %v2335_v11 = vmax.f32 %v2327_v48, 0.0  ;;  %v2336_v27 = vmax.f32 %v2328_v53, 0.0  ;;  %v2894_v34 = vld [vmem:[#allocation11 + $0x1f8] sm:$0xff]  ;;  %v2891_v48 = vld [vmem:[#allocation11 + $0x1e0] sm:$0xff] }
 0x4f8   : > { %2361 = vst.msk [vmem:[#allocation3 + $0x11] sm:$0xff] %vm2078_vm0, %v2329_v30  ;;  %2362 = vst.msk [vmem:[#allocation3 + $0x21] sm:$0xff] %vm2078_vm0, %v2330_v35  ;;  %v7469_v0 = vpack.c.bf16 %v2881_v13, %v2879_v12  ;;  %v7471_v50 = vpack.c.bf16 %v2886_v21, %v2884_v14  ;;  %v7473_v3 = vpack.c.bf16 %v2885_v29, %v2883_v26  ;;  %v2893_v53 = vld [vmem:[#allocation11 + $0x1f0] sm:$0xff]  ;;  %v3058_v35 = vld [vmem:[#allocation11 + $0x208] sm:$0xff] }
 0x4f9   : > { %2363 = vst.msk [vmem:[#allocation3 + $0x31] sm:$0xff] %vm2078_vm0, %v2331_v56  ;;  %2364 = vst.msk [vmem:[#allocation3 + $0x41] sm:$0xff] %vm2078_vm0, %v2332_v57  ;;  %v7475_v28 = vpack.c.bf16 %v2890_v32, %v2888_v8  ;;  %v7477_v22 = vpack.c.bf16 %v2889_v37, %v2887_v36  ;;  %v7479_v47 = vpack.c.bf16 %v2894_v34, %v2892_v42  ;;  %v3060_v56 = vld [vmem:[#allocation11 + $0x218] sm:$0xff]  ;;  %v3057_v13 = vld [vmem:[#allocation11 + $0x200] sm:$0xff] }
 0x4fa   : > { %2365 = vst.msk [vmem:[#allocation3 + $0x51] sm:$0xff] %vm2078_vm0, %v2333_v58  ;;  %2366 = vst.msk [vmem:[#allocation3 + $0x61] sm:$0xff] %vm2078_vm0, %v2334_v60  ;;  %v7481_v57 = vpack.c.bf16 %v2893_v53, %v2891_v48  ;;  %v7483_v58 = vpack.c.bf16 %v3060_v56, %v3058_v35  ;;  %v3059_v14 = vld [vmem:[#allocation11 + $0x210] sm:$0xff]  ;;  %v3061_v29 = vld [vmem:[#allocation11 + $0x220] sm:$0xff] }
 0x4fb   : > { %2367 = vst.msk [vmem:[#allocation3 + $0x71] sm:$0xff] %vm2078_vm0, %v2335_v11  ;;  %2368 = vst.msk [vmem:[#allocation3 + $0x81] sm:$0xff] %vm2078_vm0, %v2336_v27  ;;  %v3063_v8 = vld [vmem:[#allocation11 + $0x230] sm:$0xff]  ;;  %v3066_v32 = vld [vmem:[#allocation11 + $0x248] sm:$0xff] }
 0x4fc   : > { %v3065_v37 = vld [vmem:[#allocation11 + $0x240] sm:$0xff]  ;;  %v3067_v42 = vld [vmem:[#allocation11 + $0x250] sm:$0xff]  ;;  %v3070_v34 = vld [vmem:[#allocation11 + $0x268] sm:$0xff] }
 0x4fd   : > { %v3071_v53 = vld [vmem:[#allocation11 + $0x270] sm:$0xff]  ;;  %v3236_v35 = vld [vmem:[#allocation11 + $0x288] sm:$0xff]  ;;  %v3238_v56 = vld [vmem:[#allocation11 + $0x298] sm:$0xff] }
 0x4ff   : > { %v9437_v38 = vld [vmem:[#allocation3 + $0x11] sm:$0xff]  ;;  %v9449_v40 = vld [vmem:[#allocation3 + $0x21] sm:$0xff] }
 0x500   : > { %v9439_v59 = vld [vmem:[#allocation3 + $0x10] sm:$0xff]  ;;  %6374 = vmatmul.mubr.msk.f32.gmra.mrb[18].mxu0 %vm2078_vm0, %v9437_v38  ;;  %v9451_v61 = vld [vmem:[#allocation3 + $0x20] sm:$0xff] }
 0x501   : > { %6382 = vmatmul.mubr.msk.f32.gmra.mrb[6].mxu1 %vm2078_vm0, %v9439_v59  ;;  %2518 = vmatprep.mubr.f32.mxu0 %v9445_v6  ;;  %v9459_v62 = vld [vmem:[#allocation3 + $0x31] sm:$0xff]  ;;  %v9469_v49 = vld [vmem:[#allocation3 + $0x41] sm:$0xff] }
 0x502   : > { %2655 = vmatprep.mubr.f32.mxu1 %v9445_v6  ;;  %v9461_v63 = vld [vmem:[#allocation3 + $0x30] sm:$0xff]  ;;  %v9471_v2 = vld [vmem:[#allocation3 + $0x40] sm:$0xff] }
 0x503   : > { %v9479_v9 = vld [vmem:[#allocation3 + $0x51] sm:$0xff]  ;;  %v9489_v10 = vld [vmem:[#allocation3 + $0x61] sm:$0xff] }
 0x504   : > { %6375 = vmatmul.mubr.msk.f32.gmra.mrb[20].mxu0 %vm2078_vm0, %v9449_v40  ;;  %v9481_v4 = vld [vmem:[#allocation3 + $0x50] sm:$0xff]  ;;  %v9491_v45 = vld [vmem:[#allocation3 + $0x60] sm:$0xff] }
 0x505   : > { %6383 = vmatmul.mubr.msk.f32.gmra.mrb[8].mxu1 %vm2078_vm0, %v9451_v61  ;;  %2524 = vmatprep.mubr.f32.mxu0 %v9445_v6  ;;  %v9499_v16 = vld [vmem:[#allocation3 + $0x71] sm:$0xff]  ;;  %v9517_v30 = vld [vmem:[#allocation3 + $0x22] sm:$0xff] }
 0x506   : > { %2661 = vmatprep.mubr.f32.mxu1 %v9445_v6  ;;  %v9501_v20 = vld [vmem:[#allocation3 + $0x70] sm:$0xff]  ;;  %v9527_v11 = vld [vmem:[#allocation3 + $0x42] sm:$0xff] }
 0x507   : > { %v9512_v41 = vld [vmem:[#allocation3 + $0x12] sm:$0xff]  ;;  %v9537_v12 = vld [vmem:[#allocation3 + $0x62] sm:$0xff] }
 0x508   : > { %6376 = vmatmul.mubr.msk.f32.gmra.mrb[22].mxu0 %vm2078_vm0, %v9459_v62  ;;  %v9522_v60 = vld [vmem:[#allocation3 + $0x32] sm:$0xff] }
 0x509   : > { %6384 = vmatmul.mubr.msk.f32.gmra.mrb[10].mxu1 %vm2078_vm0, %v9461_v63  ;;  %2530 = vmatprep.mubr.f32.mxu0 %v9445_v6  ;;  %v9532_v27 = vld [vmem:[#allocation3 + $0x52] sm:$0xff] }
 0x50a   : > { %2667 = vmatprep.mubr.f32.mxu1 %v9445_v6  ;;  %v9542_v21 = vld [vmem:[#allocation3 + $0x72] sm:$0xff] }
 0x50c   : > { %6377 = vmatmul.mubr.msk.f32.gmra.mrb[24].mxu0 %vm2078_vm0, %v9469_v49 }
 0x50d   : > { %6385 = vmatmul.mubr.msk.f32.gmra.mrb[12].mxu1 %vm2078_vm0, %v9471_v2  ;;  %2536 = vmatprep.mubr.f32.mxu0 %v9445_v6 }
 0x50e   : > { %2673 = vmatprep.mubr.f32.mxu1 %v9445_v6 }
 0x510   : > { %6378 = vmatmul.mubr.msk.f32.gmra.mrb[26].mxu0 %vm2078_vm0, %v9479_v9 }
 0x511   : > { %6386 = vmatmul.mubr.msk.f32.gmra.mrb[14].mxu1 %vm2078_vm0, %v9481_v4  ;;  %2542 = vmatprep.mubr.f32.mxu0 %v9445_v6 }
 0x512   : > { %2679 = vmatprep.mubr.f32.mxu1 %v9445_v6 }
 0x514   : > { %6379 = vmatmul.mubr.msk.f32.gmra.mrb[28].mxu0 %vm2078_vm0, %v9489_v10 }
 0x515   : > { %6387 = vmatmul.mubr.msk.f32.gmra.mrb[16].mxu1 %vm2078_vm0, %v9491_v45  ;;  %2548 = vmatprep.mubr.f32.mxu0 %v9445_v6 }
 0x516   : > { %2685 = vmatprep.mubr.f32.mxu1 %v9445_v6 }
 0x518   : > { %6380 = vmatmul.mubr.msk.f32.gmra.mrb[30].mxu0 %vm2078_vm0, %v9499_v16 }
 0x519   : > { %6388 = vmatmul.mubr.msk.f32.gmra.mrb[18].mxu1 %vm2078_vm0, %v9501_v20  ;;  %6775 = vmatprep.mubr.msk.f32.mxu0 %vm8600_vm1, %v9445_v6 }
 0x51a   : > { %2805 = vmatprep.mubr.f32.mxu1 %v9445_v6 }
 0x51d   : > { %6389 = vmatmul.mubr.msk.f32.vlgmr.msra.gmra.mrb[4].mxu1 %vm2078_vm0, %v2692_v24  ;;  %v3062_v24 = vld [vmem:[#allocation11 + $0x228] sm:$0xff] }
 0x51e   : > { %7470 = vmatpush1.bf16.msra.mxu1 %v7469_v0  ;;  %2811 = vmatprep.mubr.f32.mxu1 %v9445_v6  ;;  %v3064_v0 = vld [vmem:[#allocation11 + $0x238] sm:$0xff] }
 0x51f   : > { %7472 = vmatprep.subr.bf16.mxu1 %v7471_v50  ;;  %v7485_v50 = vpack.c.bf16 %v3059_v14, %v3057_v13  ;;  %v7487_v26 = vpack.c.bf16 %v3064_v0, %v3062_v24  ;;  %v9564_v13 = vpop.f32.mrb[16].mxu0  ;;  %v3235_v24 = vld [vmem:[#allocation11 + $0x280] sm:$0xff]  ;;  %v3237_v0 = vld [vmem:[#allocation11 + $0x290] sm:$0xff] }
 0x520   : > { %v9567_v14 = vpop.f32.mrb[17].mxu0 }
 0x521   : > { %6390 = vmatmul.mubr.msk.f32.gmra.mrb[6].mxu1 %vm2078_vm0, %v9512_v41 }
 0x522   : > { %2817 = vmatprep.mubr.f32.mxu1 %v9445_v6  ;;  %7474 = vmatpush1.bf16.msra.mxu1 %v7473_v3  ;;  %v3068_v3 = vld [vmem:[#allocation11 + $0x258] sm:$0xff] }
 0x523   : > { %7476 = vmatprep.subr.bf16.mxu1 %v7475_v28  ;;  %v7489_v28 = vpack.c.bf16 %v3063_v8, %v3061_v29  ;;  %v7491_v36 = vpack.c.bf16 %v3068_v3, %v3066_v32  ;;  %v3242_v29 = vld [vmem:[#allocation11 + $0x2b8] sm:$0xff]  ;;  %v7501_v8 = vpack.c.bf16 %v3237_v0, %v3235_v24  ;;  %v3239_v3 = vld [vmem:[#allocation11 + $0x2a0] sm:$0xff] }
 0x525   : > { %6391 = vmatmul.mubr.msk.f32.gmra.mrb[8].mxu1 %vm2078_vm0, %v9517_v30 }
 0x526   : > { %2823 = vmatprep.mubr.f32.mxu1 %v9445_v6  ;;  %7478 = vmatpush1.bf16.msra.mxu1 %v7477_v22  ;;  %v3072_v22 = vld [vmem:[#allocation11 + $0x278] sm:$0xff] }
 0x527   : > { %7480 = vmatprep.subr.bf16.mxu1 %v7479_v47  ;;  %v7493_v47 = vpack.c.bf16 %v3067_v42, %v3065_v37  ;;  %v7495_v48 = vpack.c.bf16 %v3072_v22, %v3070_v34  ;;  %v3246_v37 = vld [vmem:[#allocation11 + $0x2d8] sm:$0xff]  ;;  %v3243_v22 = vld [vmem:[#allocation11 + $0x2c0] sm:$0xff] }
 0x529   : > { %6392 = vmatmul.mubr.msk.f32.gmra.mrb[10].mxu1 %vm2078_vm0, %v9522_v60 }
 0x52a   : > { %2829 = vmatprep.mubr.f32.mxu1 %v9445_v6  ;;  %7482 = vmatpush1.bf16.msra.mxu1 %v7481_v57 }
 0x52b   : > { %7484 = vmatprep.subr.bf16.mxu1 %v7483_v58  ;;  %v7499_v58 = vpack.c.bf16 %v3238_v56, %v3236_v35  ;;  %v3249_v56 = vld [vmem:[#allocation11 + $0x2f0] sm:$0xff] }
 0x52d   : > { %6393 = vmatmul.mubr.msk.f32.gmra.mrb[12].mxu1 %vm2078_vm0, %v9527_v11 }
 0x52e   : > { %2835 = vmatprep.mubr.f32.mxu1 %v9445_v6 }
 0x531   : > { %6394 = vmatmul.mubr.msk.f32.gmra.mrb[14].mxu1 %vm2078_vm0, %v9532_v27 }
 0x532   : > { %2841 = vmatprep.mubr.f32.mxu1 %v9445_v6 }
 0x535   : > { %6395 = vmatmul.mubr.msk.f32.gmra.mrb[16].mxu1 %vm2078_vm0, %v9537_v12 }
 0x536   : > { %2847 = vmatprep.mubr.f32.mxu1 %v9445_v6 }
 0x539   : > { %6396 = vmatmul.mubr.msk.f32.gmra.mrb[18].mxu1 %vm2078_vm0, %v9542_v21 }
 0x53a   : > { %2983 = vmatprep.mubr.f32.mxu1 %v9445_v6 }
 0x53d   : > { %6397 = vmatmul.mubr.msk.f32.vlgmr.msra.gmra.mrb[4].mxu1 %vm2078_vm0, %v9439_v59  ;;  %v3069_v59 = vld [vmem:[#allocation11 + $0x260] sm:$0xff] }
 0x53e   : > { %7486 = vmatpush1.bf16.msra.mxu1 %v7485_v50  ;;  %2989 = vmatprep.mubr.f32.mxu1 %v9445_v6  ;;  %v7497_v57 = vpack.c.bf16 %v3071_v53, %v3069_v59  ;;  %v9572_v50 = vld [vmem:[#allocation3 + $0x80] sm:$0xff] }
 0x53f   : > { %7488 = vmatprep.subr.bf16.mxu1 %v7487_v26  ;;  %v3240_v26 = vld [vmem:[#allocation11 + $0x2a8] sm:$0xff]  ;;  %v3250_v59 = vld [vmem:[#allocation11 + $0x2f8] sm:$0xff] }
 0x540   : > { %v7503_v32 = vpack.c.bf16 %v3242_v29, %v3240_v26  ;;  %v3414_v26 = vld [vmem:[#allocation11 + $0x300] sm:$0xff]  ;;  %v3416_v29 = vld [vmem:[#allocation11 + $0x310] sm:$0xff] }
 0x541   : > { %6398 = vmatmul.mubr.msk.f32.gmra.mrb[6].mxu1 %vm2078_vm0, %v9451_v61 }
 0x542   : > { %2995 = vmatprep.mubr.f32.mxu1 %v9445_v6  ;;  %7490 = vmatpush1.bf16.msra.mxu1 %v7489_v28  ;;  %v3241_v28 = vld [vmem:[#allocation11 + $0x2b0] sm:$0xff] }
 0x543   : > { %7492 = vmatprep.subr.bf16.mxu1 %v7491_v36  ;;  %v3244_v36 = vld [vmem:[#allocation11 + $0x2c8] sm:$0xff]  ;;  %v7505_v42 = vpack.c.bf16 %v3241_v28, %v3239_v3  ;;  %v3421_v3 = vld [vmem:[#allocation11 + $0x338] sm:$0xff]  ;;  %v7517_v28 = vpack.c.bf16 %v3416_v29, %v3414_v26 }
 0x544   : > { %v7507_v34 = vpack.c.bf16 %v3246_v37, %v3244_v36  ;;  %v3418_v37 = vld [vmem:[#allocation11 + $0x320] sm:$0xff] }
 0x545   : > { %6399 = vmatmul.mubr.msk.f32.gmra.mrb[8].mxu1 %vm2078_vm0, %v9461_v63 }
 0x546   : > { %3001 = vmatprep.mubr.f32.mxu1 %v9445_v6  ;;  %7494 = vmatpush1.bf16.msra.mxu1 %v7493_v47  ;;  %v3245_v47 = vld [vmem:[#allocation11 + $0x2d0] sm:$0xff] }
 0x547   : > { %7496 = vmatprep.subr.bf16.mxu1 %v7495_v48  ;;  %v3248_v48 = vld [vmem:[#allocation11 + $0x2e8] sm:$0xff]  ;;  %v7509_v53 = vpack.c.bf16 %v3245_v47, %v3243_v22  ;;  %v3425_v22 = vld [vmem:[#allocation11 + $0x358] sm:$0xff] }
 0x548   : > { %v7511_v35 = vpack.c.bf16 %v3250_v59, %v3248_v48  ;;  %v3422_v59 = vld [vmem:[#allocation11 + $0x340] sm:$0xff] }
 0x549   : > { %6400 = vmatmul.mubr.msk.f32.gmra.mrb[10].mxu1 %vm2078_vm0, %v9471_v2 }
 0x54a   : > { %3007 = vmatprep.mubr.f32.mxu1 %v9445_v6  ;;  %7498 = vmatpush1.bf16.msra.mxu1 %v7497_v57  ;;  %v3415_v57 = vld [vmem:[#allocation11 + $0x308] sm:$0xff] }
 0x54b   : > { %7500 = vmatprep.subr.bf16.mxu1 %v7499_v58  ;;  %v3417_v58 = vld [vmem:[#allocation11 + $0x318] sm:$0xff] }
 0x54c   : > { %v7515_v0 = vpack.c.bf16 %v3417_v58, %v3415_v57  ;;  %v3428_v58 = vld [vmem:[#allocation11 + $0x370] sm:$0xff] }
 0x54d   : > { %6401 = vmatmul.mubr.msk.f32.gmra.mrb[12].mxu1 %vm2078_vm0, %v9481_v4 }
 0x54e   : > { %3013 = vmatprep.mubr.f32.mxu1 %v9445_v6 }
 0x551   : > { %6402 = vmatmul.mubr.msk.f32.gmra.mrb[14].mxu1 %vm2078_vm0, %v9491_v45 }
 0x552   : > { %3019 = vmatprep.mubr.f32.mxu1 %v9445_v6 }
 0x555   : > { %6403 = vmatmul.mubr.msk.f32.gmra.mrb[16].mxu1 %vm2078_vm0, %v9501_v20 }
 0x556   : > { %3025 = vmatprep.mubr.f32.mxu1 %v9445_v6 }
 0x559   : > { %6404 = vmatmul.mubr.msk.f32.gmra.mrb[18].mxu1 %vm2078_vm0, %v9572_v50 }
 0x55a   : > { %3161 = vmatprep.mubr.f32.mxu1 %v9445_v6 }
 0x55d   : > { %6405 = vmatmul.mubr.msk.f32.vlgmr.msra.gmra.mrb[4].mxu1 %vm2078_vm0, %v9437_v38  ;;  %v3247_v38 = vld [vmem:[#allocation11 + $0x2e0] sm:$0xff] }
 0x55e   : > { %7502 = vmatpush1.bf16.msra.mxu1 %v7501_v8  ;;  %3167 = vmatprep.mubr.f32.mxu1 %v9445_v6  ;;  %v7513_v24 = vpack.c.bf16 %v3249_v56, %v3247_v38  ;;  %v9598_v8 = vld [vmem:[#allocation3 + $0x81] sm:$0xff]  ;;  %v3429_v38 = vld [vmem:[#allocation11 + $0x378] sm:$0xff] }
 0x55f   : > { %7504 = vmatprep.subr.bf16.mxu1 %v7503_v32  ;;  %v3419_v32 = vld [vmem:[#allocation11 + $0x328] sm:$0xff] }
 0x560   : > { %v7519_v36 = vpack.c.bf16 %v3421_v3, %v3419_v32  ;;  %v3592_v32 = vld [vmem:[#allocation11 + $0x380] sm:$0xff]  ;;  %v3594_v3 = vld [vmem:[#allocation11 + $0x390] sm:$0xff] }
 0x561   : > { %6406 = vmatmul.mubr.msk.f32.gmra.mrb[6].mxu1 %vm2078_vm0, %v9449_v40 }
 0x562   : > { %3173 = vmatprep.mubr.f32.mxu1 %v9445_v6  ;;  %7506 = vmatpush1.bf16.msra.mxu1 %v7505_v42  ;;  %v3420_v42 = vld [vmem:[#allocation11 + $0x330] sm:$0xff] }
 0x563   : > { %7508 = vmatprep.subr.bf16.mxu1 %v7507_v34  ;;  %v3423_v34 = vld [vmem:[#allocation11 + $0x348] sm:$0xff]  ;;  %v7521_v47 = vpack.c.bf16 %v3420_v42, %v3418_v37  ;;  %v3599_v37 = vld [vmem:[#allocation11 + $0x3b8] sm:$0xff]  ;;  %v7533_v42 = vpack.c.bf16 %v3594_v3, %v3592_v32 }
 0x564   : > { %v7523_v48 = vpack.c.bf16 %v3425_v22, %v3423_v34  ;;  %v3596_v22 = vld [vmem:[#allocation11 + $0x3a0] sm:$0xff] }
 0x565   : > { %6407 = vmatmul.mubr.msk.f32.gmra.mrb[8].mxu1 %vm2078_vm0, %v9459_v62 }
 0x566   : > { %3179 = vmatprep.mubr.f32.mxu1 %v9445_v6  ;;  %7510 = vmatpush1.bf16.msra.mxu1 %v7509_v53  ;;  %v3424_v53 = vld [vmem:[#allocation11 + $0x350] sm:$0xff] }
 0x567   : > { %7512 = vmatprep.subr.bf16.mxu1 %v7511_v35  ;;  %v3427_v35 = vld [vmem:[#allocation11 + $0x368] sm:$0xff]  ;;  %v7525_v56 = vpack.c.bf16 %v3424_v53, %v3422_v59  ;;  %v3603_v59 = vld [vmem:[#allocation11 + $0x3d8] sm:$0xff] }
 0x568   : > { %v7527_v57 = vpack.c.bf16 %v3429_v38, %v3427_v35  ;;  %v3600_v38 = vld [vmem:[#allocation11 + $0x3c0] sm:$0xff] }
 0x569   : > { %6408 = vmatmul.mubr.msk.f32.gmra.mrb[10].mxu1 %vm2078_vm0, %v9469_v49 }
 0x56a   : > { %3185 = vmatprep.mubr.f32.mxu1 %v9445_v6  ;;  %7514 = vmatpush1.bf16.msra.mxu1 %v7513_v24  ;;  %v3593_v24 = vld [vmem:[#allocation11 + $0x388] sm:$0xff] }
 0x56b   : > { %7516 = vmatprep.subr.bf16.mxu1 %v7515_v0  ;;  %v3595_v0 = vld [vmem:[#allocation11 + $0x398] sm:$0xff] }
 0x56c   : > { %v7531_v29 = vpack.c.bf16 %v3595_v0, %v3593_v24  ;;  %v3606_v0 = vld [vmem:[#allocation11 + $0x3f0] sm:$0xff] }
 0x56d   : > { %6409 = vmatmul.mubr.msk.f32.gmra.mrb[12].mxu1 %vm2078_vm0, %v9479_v9 }
 0x56e   : > { %3191 = vmatprep.mubr.f32.mxu1 %v9445_v6 }
 0x571   : > { %6410 = vmatmul.mubr.msk.f32.gmra.mrb[14].mxu1 %vm2078_vm0, %v9489_v10 }
 0x572   : > { %3197 = vmatprep.mubr.f32.mxu1 %v9445_v6 }
 0x575   : > { %6411 = vmatmul.mubr.msk.f32.gmra.mrb[16].mxu1 %vm2078_vm0, %v9499_v16 }
 0x576   : > { %3203 = vmatprep.mubr.f32.mxu1 %v9445_v6 }
 0x579   : > { %6412 = vmatmul.mubr.msk.f32.gmra.mrb[18].mxu1 %vm2078_vm0, %v9598_v8 }
 0x57a   : > { %3339 = vmatprep.mubr.f32.mxu1 %v9445_v6 }
 0x57d   : > { %6413 = vmatmul.mubr.msk.f32.vlgmr.msra.gmra.mrb[4].mxu1 %vm2078_vm0, %v9512_v41  ;;  %v3426_v41 = vld [vmem:[#allocation11 + $0x360] sm:$0xff] }
 0x57e   : > { %7518 = vmatpush1.bf16.msra.mxu1 %v7517_v28  ;;  %3345 = vmatprep.mubr.f32.mxu1 %v9445_v6  ;;  %v7529_v26 = vpack.c.bf16 %v3428_v58, %v3426_v41  ;;  %v9624_v28 = vld [vmem:[#allocation3 + $0x82] sm:$0xff]  ;;  %v3607_v41 = vld [vmem:[#allocation11 + $0x3f8] sm:$0xff] }
 0x57f   : > { %7520 = vmatprep.subr.bf16.mxu1 %v7519_v36  ;;  %v3597_v36 = vld [vmem:[#allocation11 + $0x3a8] sm:$0xff] }
 0x580   : > { %v7535_v34 = vpack.c.bf16 %v3599_v37, %v3597_v36  ;;  %v3775_v36 = vld [vmem:[#allocation11 + $0x428] sm:$0xff]  ;;  %v3777_v37 = vld [vmem:[#allocation11 + $0x438] sm:$0xff] }
 0x581   : > { %6414 = vmatmul.mubr.msk.f32.gmra.mrb[6].mxu1 %vm2078_vm0, %v9517_v30 }
 0x582   : > { %3351 = vmatprep.mubr.f32.mxu1 %v9445_v6  ;;  %7522 = vmatpush1.bf16.msra.mxu1 %v7521_v47  ;;  %v3598_v47 = vld [vmem:[#allocation11 + $0x3b0] sm:$0xff] }
 0x583   : > { %7524 = vmatprep.subr.bf16.mxu1 %v7523_v48  ;;  %v3601_v48 = vld [vmem:[#allocation11 + $0x3c8] sm:$0xff]  ;;  %v7537_v53 = vpack.c.bf16 %v3598_v47, %v3596_v22  ;;  %v3781_v47 = vld [vmem:[#allocation11 + $0x458] sm:$0xff] }
 0x584   : > { %v7539_v35 = vpack.c.bf16 %v3603_v59, %v3601_v48  ;;  %v3779_v22 = vld [vmem:[#allocation11 + $0x448] sm:$0xff]  ;;  %v3778_v59 = vld [vmem:[#allocation11 + $0x440] sm:$0xff] }
 0x585   : > { %6415 = vmatmul.mubr.msk.f32.gmra.mrb[8].mxu1 %vm2078_vm0, %v9522_v60  ;;  %v7555_v48 = vpack.c.bf16 %v3781_v47, %v3779_v22 }
 0x586   : > { %3357 = vmatprep.mubr.f32.mxu1 %v9445_v6  ;;  %7526 = vmatpush1.bf16.msra.mxu1 %v7525_v56  ;;  %v3602_v56 = vld [vmem:[#allocation11 + $0x3d0] sm:$0xff] }
 0x587   : > { %7528 = vmatprep.subr.bf16.mxu1 %v7527_v57  ;;  %v3605_v57 = vld [vmem:[#allocation11 + $0x3e8] sm:$0xff]  ;;  %v7541_v58 = vpack.c.bf16 %v3602_v56, %v3600_v38  ;;  %v3785_v38 = vld [vmem:[#allocation11 + $0x478] sm:$0xff] }
 0x588   : > { %v7543_v24 = vpack.c.bf16 %v3607_v41, %v3605_v57  ;;  %v3784_v41 = vld [vmem:[#allocation11 + $0x470] sm:$0xff] }
 0x589   : > { %6416 = vmatmul.mubr.msk.f32.gmra.mrb[10].mxu1 %vm2078_vm0, %v9527_v11 }
 0x58a   : > { %3363 = vmatprep.mubr.f32.mxu1 %v9445_v6  ;;  %7530 = vmatpush1.bf16.msra.mxu1 %v7529_v26  ;;  %v3771_v26 = vld [vmem:[#allocation11 + $0x408] sm:$0xff] }
 0x58b   : > { %7532 = vmatprep.subr.bf16.mxu1 %v7531_v29  ;;  %v3773_v29 = vld [vmem:[#allocation11 + $0x418] sm:$0xff] }
 0x58c   : > { %v7547_v3 = vpack.c.bf16 %v3773_v29, %v3771_v26 }
 0x58d   : > { %6417 = vmatmul.mubr.msk.f32.gmra.mrb[12].mxu1 %vm2078_vm0, %v9532_v27 }
 0x58e   : > { %3369 = vmatprep.mubr.f32.mxu1 %v9445_v6 }
 0x591   : > { %6418 = vmatmul.mubr.msk.f32.gmra.mrb[14].mxu1 %vm2078_vm0, %v9537_v12 }
 0x592   : > { %3375 = vmatprep.mubr.f32.mxu1 %v9445_v6 }
 0x595   : > { %6419 = vmatmul.mubr.msk.f32.gmra.mrb[16].mxu1 %vm2078_vm0, %v9542_v21 }
 0x596   : > { %3381 = vmatprep.mubr.f32.mxu1 %v9445_v6 }
 0x599   : > { %6420 = vmatmul.mubr.msk.f32.gmra.mrb[18].mxu1 %vm2078_vm0, %v9624_v28 }
 0x59a   : > { %3518 = vmatprep.mubr.f32.mxu1 %v9445_v6 }
 0x59d   : > { %6421 = vmatmul.mubr.msk.f32.vlgmr.msra.gmra.mrb[4].mxu1 %vm2078_vm0, %v9451_v61  ;;  %v3604_v61 = vld [vmem:[#allocation11 + $0x3e0] sm:$0xff] }
 0x59e   : > { %7534 = vmatpush1.bf16.msra.mxu1 %v7533_v42  ;;  %3524 = vmatprep.mubr.f32.mxu1 %v9445_v6  ;;  %v7545_v32 = vpack.c.bf16 %v3606_v0, %v3604_v61  ;;  %v7551_v42 = vpack.c.bf16 %v3777_v37, %v3775_v36 }
 0x59f   : > { %7536 = vmatprep.subr.bf16.mxu1 %v7535_v34  ;;  %v3774_v34 = vld [vmem:[#allocation11 + $0x420] sm:$0xff] }
 0x5a1   : > { %6422 = vmatmul.mubr.msk.f32.gmra.mrb[6].mxu1 %vm2078_vm0, %v9461_v63  ;;  %v3412_v63 = vld [vmem:[#allocation3 + $0x90] sm:$0xff] }
 0x5a2   : > { %3530 = vmatprep.mubr.f32.mxu1 %v9445_v6  ;;  %7538 = vmatpush1.bf16.msra.mxu1 %v7537_v53  ;;  %v3780_v53 = vld [vmem:[#allocation11 + $0x450] sm:$0xff] }
 0x5a3   : > { %7540 = vmatprep.subr.bf16.mxu1 %v7539_v35  ;;  %v3783_v35 = vld [vmem:[#allocation11 + $0x468] sm:$0xff]  ;;  %v7557_v56 = vpack.c.bf16 %v3780_v53, %v3778_v59 }
 0x5a4   : > { %v7559_v57 = vpack.c.bf16 %v3785_v38, %v3783_v35 }
 0x5a5   : > { %6423 = vmatmul.mubr.msk.f32.gmra.mrb[8].mxu1 %vm2078_vm0, %v9471_v2  ;;  %v3770_v2 = vld [vmem:[#allocation11 + $0x400] sm:$0xff] }
 0x5a6   : > { %3536 = vmatprep.mubr.f32.mxu1 %v9445_v6  ;;  %7542 = vmatpush1.bf16.msra.mxu1 %v7541_v58 }
 0x5a7   : > { %7544 = vmatprep.subr.bf16.mxu1 %v7543_v24 }
 0x5a9   : > { %6424 = vmatmul.mubr.msk.f32.gmra.mrb[10].mxu1 %vm2078_vm0, %v9481_v4  ;;  %v3772_v4 = vld [vmem:[#allocation11 + $0x410] sm:$0xff] }
 0x5aa   : > { %3542 = vmatprep.mubr.f32.mxu1 %v9445_v6  ;;  %7546 = vmatpush1.bf16.msra.mxu1 %v7545_v32 }
 0x5ab   : > { %7548 = vmatprep.subr.bf16.mxu1 %v7547_v3 }
 0x5ad   : > { %6425 = vmatmul.mubr.msk.f32.gmra.mrb[12].mxu1 %vm2078_vm0, %v9491_v45  ;;  %v7549_v45 = vpack.c.bf16 %v3772_v4, %v3770_v2 }
 0x5ae   : > { %3548 = vmatprep.mubr.f32.mxu1 %v9445_v6 }
 0x5b1   : > { %6426 = vmatmul.mubr.msk.f32.gmra.mrb[14].mxu1 %vm2078_vm0, %v9501_v20  ;;  %v3776_v20 = vld [vmem:[#allocation11 + $0x430] sm:$0xff] }
 0x5b2   : > { %3554 = vmatprep.mubr.f32.mxu1 %v9445_v6 }
 0x5b5   : > { %6427 = vmatmul.mubr.msk.f32.gmra.mrb[16].mxu1 %vm2078_vm0, %v9572_v50  ;;  %v7553_v50 = vpack.c.bf16 %v3776_v20, %v3774_v34 }
 0x5b6   : > { %3560 = vmatprep.mubr.f32.mxu1 %v9445_v6 }
 0x5b9   : > { %6428 = vmatmul.mubr.msk.f32.gmra.mrb[18].mxu1 %vm2078_vm0, %v3412_v63 }
 0x5ba   : > { %3696 = vmatprep.mubr.f32.mxu1 %v9445_v6 }
 0x5bd   : > { %6429 = vmatmul.mubr.msk.f32.vlgmr.msra.gmra.mrb[4].mxu1 %vm2078_vm0, %v9449_v40  ;;  %v3782_v40 = vld [vmem:[#allocation11 + $0x460] sm:$0xff] }
 0x5be   : > { %7550 = vmatpush1.bf16.msra.mxu1 %v7549_v45  ;;  %3702 = vmatprep.mubr.f32.mxu1 %v9445_v6  ;;  %v7561_v58 = vpack.c.bf16 %v3784_v41, %v3782_v40 }
 0x5bf   : > { %7552 = vmatprep.subr.bf16.mxu1 %v7551_v42 }
 0x5c1   : > { %6430 = vmatmul.mubr.msk.f32.gmra.mrb[6].mxu1 %vm2078_vm0, %v9459_v62 }
 0x5c2   : > { %3708 = vmatprep.mubr.f32.mxu1 %v9445_v6  ;;  %7554 = vmatpush1.bf16.msra.mxu1 %v7553_v50 }
 0x5c3   : > { %7556 = vmatprep.subr.bf16.mxu1 %v7555_v48 }
 0x5c5   : > { %6431 = vmatmul.mubr.msk.f32.gmra.mrb[8].mxu1 %vm2078_vm0, %v9469_v49 }
 0x5c6   : > { %3714 = vmatprep.mubr.f32.mxu1 %v9445_v6  ;;  %7558 = vmatpush1.bf16.msra.mxu1 %v7557_v56 }
 0x5c7   : > { %7560 = vmatprep.subr.bf16.mxu1 %v7559_v57 }
 0x5c9   : > { %6432 = vmatmul.mubr.msk.f32.gmra.mrb[10].mxu1 %vm2078_vm0, %v9479_v9  ;;  %v3590_v9 = vld [vmem:[#allocation3 + $0x91] sm:$0xff] }
 0x5ca   : > { %3720 = vmatprep.mubr.f32.mxu1 %v9445_v6  ;;  %7562 = vmatpush1.bf16.msra.mxu1 %v7561_v58 }
 0x5cd   : > { %6433 = vmatmul.mubr.msk.f32.gmra.mrb[12].mxu1 %vm2078_vm0, %v9489_v10 }
 0x5ce   : > { %3726 = vmatprep.mubr.f32.mxu1 %v9445_v6 }
 0x5d1   : > { %6434 = vmatmul.mubr.msk.f32.gmra.mrb[14].mxu1 %vm2078_vm0, %v9499_v16 }
 0x5d2   : > { %3732 = vmatprep.mubr.f32.mxu1 %v9445_v6 }
 0x5d3   : > { %v2514_v62 = vpop.f32.mrb[18].mxu0 }
 0x5d4   : > { %v2516_v49 = vpop.f32.mrb[19].mxu0 }
 0x5d5   : > { %6435 = vmatmul.mubr.msk.f32.gmra.mrb[16].mxu1 %vm2078_vm0, %v9598_v8 }
 0x5d6   : > { %3738 = vmatprep.mubr.f32.mxu1 %v9445_v6 }
 0x5d7   : > { %v2520_v24 = vpop.f32.mrb[20].mxu0 }
 0x5d8   : > { %v2522_v61 = vpop.f32.mrb[21].mxu0 }
 0x5d9   : > { %6436 = vmatmul.mubr.msk.f32.gmra.mrb[18].mxu1 %vm2078_vm0, %v3590_v9 }
 0x5da   : > { %3874 = vmatprep.mubr.f32.mxu1 %v9445_v6 }
 0x5db   : > { %v2526_v10 = vpop.f32.mrb[22].mxu0 }
 0x5dc   : > { %v2528_v0 = vpop.f32.mrb[23].mxu0 }
 0x5dd   : > { %6437 = vmatmul.mubr.msk.f32.vlgmr.msra.gmra.mrb[4].mxu1 %vm2078_vm0, %v9517_v30 }
 0x5de   : > { %3880 = vmatprep.mubr.f32.mxu1 %v9445_v6 }
 0x5df   : > { %v2532_v16 = vpop.f32.mrb[24].mxu0 }
 0x5e0   : > { %v2534_v26 = vpop.f32.mrb[25].mxu0 }
 0x5e1   : > { %6438 = vmatmul.mubr.msk.f32.gmra.mrb[6].mxu1 %vm2078_vm0, %v9522_v60  ;;  %v3768_v60 = vld [vmem:[#allocation3 + $0x92] sm:$0xff] }
 0x5e2   : > { %3886 = vmatprep.mubr.f32.mxu1 %v9445_v6 }
 0x5e3   : > { %v2538_v8 = vpop.f32.mrb[26].mxu0 }
 0x5e4   : > { %v2540_v29 = vpop.f32.mrb[27].mxu0 }
 0x5e5   : > { %6439 = vmatmul.mubr.msk.f32.gmra.mrb[8].mxu1 %vm2078_vm0, %v9527_v11 }
 0x5e6   : > { %3892 = vmatprep.mubr.f32.mxu1 %v9445_v6 }
 0x5e7   : > { %v2544_v32 = vpop.f32.mrb[28].mxu0 }
 0x5e8   : > { %v2546_v3 = vpop.f32.mrb[29].mxu0 }
 0x5e9   : > { %6440 = vmatmul.mubr.msk.f32.gmra.mrb[10].mxu1 %vm2078_vm0, %v9532_v27 }
 0x5ea   : > { %3898 = vmatprep.mubr.f32.mxu1 %v9445_v6 }
 0x5eb   : > { %v2550_v30 = vpop.f32.mrb[30].mxu0 }
 0x5ec   : > { %v2552_v63 = vpop.f32.mrb[31].mxu0 }
 0x5ed   : > { %6441 = vmatmul.mubr.msk.f32.gmra.mrb[12].mxu1 %vm2078_vm0, %v9537_v12 }
 0x5ee   : > { %3904 = vmatprep.mubr.f32.mxu1 %v9445_v6 }
 0x5f1   : > { %6442 = vmatmul.mubr.msk.f32.gmra.mrb[14].mxu1 %vm2078_vm0, %v9542_v21 }
 0x5f2   : > { %3910 = vmatprep.mubr.f32.mxu1 %v9445_v6 }
 0x5f5   : > { %6443 = vmatmul.mubr.msk.f32.gmra.mrb[16].mxu1 %vm2078_vm0, %v9624_v28 }
 0x5f6   : > { %3916 = vmatprep.mubr.f32.mxu1 %v9445_v6 }
 0x5f9   : > { %6444 = vmatmul.mubr.msk.f32.gmra.mrb[18].mxu1 %vm2078_vm0, %v3768_v60 }
 0x6b0   : > { %v3876_v11 = vpop.f32.mrb[4].mxu1 }
 0x6b1   : > { %v7773_v27 = vadd.f32 %v3876_v11, %v9564_v13  ;;  %v3878_v2 = vpop.f32.mrb[5].mxu1 }
 0x6b2   : > { %v9699_v12 = vadd.f32 %v3878_v2, %v9567_v14 }
 0x6b3   : > { %3947 = vrot.lane.b32.xlu0 %v7773_v27, %s8601_s1 }
 0x6b4   : > { %v3882_v21 = vpop.f32.mrb[6].mxu1 }
 0x6b5   : > { %v7775_v4 = vadd.f32 %v3882_v21, %v2514_v62  ;;  %v3884_v36 = vpop.f32.mrb[7].mxu1 }
 0x6b6   : > { %v9702_v37 = vadd.f32 %v3884_v36, %v2516_v49 }
 0x6b7   : > { %3949 = vrot.lane.b32.xlu0 %v7775_v4, %s8601_s1 }
 0x6b8   : > { %v3888_v28 = vpop.f32.mrb[8].mxu1 }
 0x6b9   : > { %v7777_v45 = vadd.f32 %v3888_v28, %v2520_v24  ;;  %v3890_v42 = vpop.f32.mrb[9].mxu1 }
 0x6ba   : > { %v9705_v34 = vadd.f32 %v3890_v42, %v2522_v61  ;;  %v4031_v61 = vld [vmem:[%s10397_s6] sm:$0xff] }
 0x6bb   : > { %3951 = vrot.lane.b32.xlu1 %v7777_v45, %s8601_s1 }
 0x6bc   : > { %v3894_v13 = vpop.f32.mrb[10].mxu1 }
 0x6bd   : > { %v7779_v14 = vadd.f32 %v3894_v13, %v2526_v10  ;;  %v3896_v20 = vpop.f32.mrb[11].mxu1  ;;  %v4032_v10 = vld [vmem:[%s10397_s6 + $0x8] sm:$0xff] }
 0x6be   : > { %v9708_v22 = vadd.f32 %v3896_v20, %v2528_v0  ;;  %v4033_v0 = vld [vmem:[%s10397_s6 + $0x10] sm:$0xff] }
 0x6bf   : > { %3953 = vrot.lane.b32.xlu1 %v7779_v14, %s8601_s1 }
 0x6c0   : > { %v3900_v47 = vpop.f32.mrb[12].mxu1 }
 0x6c1   : > { %v7781_v50 = vadd.f32 %v3900_v47, %v2532_v16  ;;  %v3902_v48 = vpop.f32.mrb[13].mxu1  ;;  %v7564_v16 = vpack.c.bf16 %v4032_v10, %v4031_v61 }
 0x6c2   : > { %v9711_v59 = vadd.f32 %v3902_v48, %v2534_v26  ;;  %v4034_v26 = vld [vmem:[%s10397_s6 + $0x18] sm:$0xff] }
 0x6c3   : > { %3955 = vrot.lane.b32.xlu0 %v7781_v50, %s8601_s1  ;;  %7565 = vmatpush3.bf16.msra.mxu0 %v7564_v16 }
 0x6c4   : > { %v3906_v53 = vpop.f32.mrb[14].mxu1  ;;  %7566 = vmatprep.subr.bf16.mxu0 %v8599_v52 }
 0x6c5   : > { %v7783_v35 = vadd.f32 %v3906_v53, %v2538_v8  ;;  %v3908_v38 = vpop.f32.mrb[15].mxu1  ;;  %v7567_v8 = vpack.c.bf16 %v4034_v26, %v4033_v0 }
 0x6c6   : > { %v9714_v56 = vadd.f32 %v3908_v38, %v2540_v29  ;;  %v4035_v29 = vld [vmem:[%s10397_s6 + $0x20] sm:$0xff] }
 0x6c7   : > { %3957 = vrot.lane.b32.xlu1 %v7783_v35, %s8601_s1  ;;  %7568 = vmatpush3.bf16.msra.mxu0 %v7567_v8 }
 0x6c8   : > { %v3912_v57 = vpop.f32.mrb[16].mxu1  ;;  %7569 = vmatprep.subr.bf16.mxu0 %v8599_v52 }
 0x6c9   : > { %v7785_v40 = vadd.f32 %v3912_v57, %v2544_v32  ;;  %v3914_v41 = vpop.f32.mrb[17].mxu1  ;;  %v4036_v32 = vld [vmem:[%s10397_s6 + $0x28] sm:$0xff] }
 0x6ca   : > { %v9717_v58 = vadd.f32 %v3914_v41, %v2546_v3  ;;  %v7570_v3 = vpack.c.bf16 %v4036_v32, %v4035_v29 }
 0x6cb   : > { %3959 = vrot.lane.b32.xlu0 %v7785_v40, %s8601_s1 }
 0x6cc   : > { %v3918_v62 = vpop.f32.mrb[18].mxu1  ;;  %7571 = vmatpush3.bf16.msra.mxu0 %v7570_v3 }
 0x6cd   : > { %v7787_v49 = vadd.f32 %v3918_v62, %v2550_v30  ;;  %v3920_v9 = vpop.f32.mrb[19].mxu1  ;;  %v4037_v30 = vld [vmem:[%s10397_s6 + $0x30] sm:$0xff]  ;;  %7572 = vmatprep.subr.bf16.mxu0 %v8599_v52 }
 0x6ce   : > { %v9720_v24 = vadd.f32 %v3920_v9, %v2552_v63  ;;  %v4038_v63 = vld [vmem:[%s10397_s6 + $0x38] sm:$0xff] }
 0x6cf   : > { %3961 = vrot.lane.b32.xlu1 %v7787_v49, %s8601_s1  ;;  %v7573_v60 = vpack.c.bf16 %v4038_v63, %v4037_v30 }
 0x6d1   : > { %7574 = vmatpush3.bf16.msra.mxu0 %v7573_v60 }
 0x6d2   : > { %6778 = vmatprep.subr.mxu0 %v9445_v6 }
 0x725   : > { %v9751_v11 = vpop.permute.xlu0 %3947 }
 0x726   : > { %v9763_v4 = vadd.f32 %v9751_v11, %v9263_v43 }
 0x729   : > { %v9753_v27 = vpop.permute.xlu0 %3949 }
 0x72a   : > { %v9759_v21 = vadd.f32 %v9753_v27, %v9269_v5  ;;  %v4001_v5 = vmul.f32 %v9763_v4, %v9763_v4 }
 0x72c   : > { %v4002_v45 = vmul.f32 %v9759_v21, %v9759_v21  ;;  %v3981_v43 = vsel %vm3979_vm6, %v9759_v21, 0.0  ;;  %v4009_v48 = vsel %vm3979_vm6, %v4001_v5, 0.0 }
 0x72d   : > { %v9755_v2 = vpop.permute.xlu1 %3951 }
 0x72e   : > { %v9769_v28 = vadd.f32 %v9755_v2, %v9281_v18  ;;  %v4010_v20 = vsel %vm3979_vm6, %v4002_v45, 0.0 }
 0x72f   : > { %v4011_v41 = vadd.f32 %v4010_v20, %v4009_v48 }
 0x730   : > { %v4003_v18 = vmul.f32 %v9769_v28, %v9769_v28  ;;  %v3983_v47 = vsel %vm3979_vm6, %v9769_v28, 0.0 }
 0x731   : > { %v9765_v36 = vpop.permute.xlu1 %3953 }
 0x732   : > { %v9775_v42 = vadd.f32 %v9765_v36, %v9290_v25  ;;  %v3980_v25 = vsel %vm3979_vm6, %v9763_v4, 0.0  ;;  %v4012_v38 = vsel %vm3979_vm6, %v4003_v18, 0.0 }
 0x733   : > { %v3982_v53 = vadd.f32 %v3981_v43, %v3980_v25  ;;  %v4013_v10 = vadd.f32 %v4012_v38, %v4011_v41 }
 0x734   : > { %v4004_v50 = vmul.f32 %v9775_v42, %v9775_v42 }
 0x735   : > { %v9779_v13 = vpop.permute.xlu0 %3955  ;;  %v3984_v62 = vadd.f32 %v3983_v47, %v3982_v53 }
 0x736   : > { %v9787_v14 = vadd.f32 %v9779_v13, %v9299_v33  ;;  %v3985_v33 = vsel %vm3979_vm6, %v9775_v42, 0.0  ;;  %v4014_v49 = vsel %vm3979_vm6, %v4004_v50, 0.0 }
 0x737   : > { %v3986_v0 = vadd.f32 %v3985_v33, %v3984_v62  ;;  %v4015_v29 = vadd.f32 %v4014_v49, %v4013_v10 }
 0x738   : > { %v4005_v57 = vmul.f32 %v9787_v14, %v9787_v14  ;;  %v3987_v9 = vsel %vm3979_vm6, %v9787_v14, 0.0 }
 0x739   : > { %v9797_v35 = vpop.permute.xlu1 %3957  ;;  %v3988_v32 = vadd.f32 %v3987_v9, %v3986_v0 }
 0x73a   : > { %v9806_v40 = vadd.f32 %v9797_v35, %v9308_v44  ;;  %v4016_v26 = vsel %vm3979_vm6, %v4005_v57, 0.0 }
 0x73b   : > { %v4017_v60 = vadd.f32 %v4016_v26, %v4015_v29 }
 0x73c   : > { %v4006_v61 = vmul.f32 %v9806_v40, %v9806_v40  ;;  %v3989_v44 = vsel %vm3979_vm6, %v9806_v40, 0.0 }
 0x73d   : > { %v9813_v16 = vpop.permute.xlu0 %3959  ;;  %v3990_v45 = vadd.f32 %v3989_v44, %v3988_v32 }
 0x73e   : > { %v9820_v8 = vadd.f32 %v9813_v16, %v9317_v54  ;;  %v4018_v3 = vsel %vm3979_vm6, %v4006_v61, 0.0 }
 0x73f   : > { %v4019_v18 = vadd.f32 %v4018_v3, %v4017_v60  ;;  %v4132_v3 = vld [vmem:[#allocation14] sm:$0xff] }
 0x740   : > { %v3991_v30 = vsel %vm3979_vm6, %v9820_v8, 0.0  ;;  %v4007_v63 = vmul.f32 %v9820_v8, %v9820_v8 }
 0x741   : > { %v9827_v5 = vpop.permute.xlu1 %3961  ;;  %v3992_v25 = vadd.f32 %v3991_v30, %v3990_v45 }
 0x742   : > { %v4020_v43 = vsel %vm3979_vm6, %v4007_v63, 0.0  ;;  %v9832_v54 = vadd.f32 %v9827_v5, %v9326_v39 }
 0x743   : > { %v4021_v50 = vadd.f32 %v4020_v43, %v4019_v18 }
 0x744   : > { %v3993_v20 = vsel %vm3979_vm6, %v9832_v54, 0.0  ;;  %v4008_v47 = vmul.f32 %v9832_v54, %v9832_v54 }
 0x745   : > { %v3994_v48 = vadd.f32 %v3993_v20, %v3992_v25 }
 0x746   : > { %v4022_v53 = vsel %vm3979_vm6, %v4008_v47, 0.0 }
 0x747   : > { %v3995_v38 = vrot.slane %v3994_v48, 4  ;;  %v4023_v33 = vadd.f32 %v4022_v53, %v4021_v50 }
 0x749   : > { %v3996_v57 = vadd.f32 %v3995_v38, %v3994_v48  ;;  %v4024_v41 = vrot.slane %v4023_v33, 4 }
 0x74b   : > { %v3997_v62 = vrot.slane %v3996_v57, 2  ;;  %v4025_v49 = vadd.f32 %v4024_v41, %v4023_v33  ;;  %v9847_v33 = vld [vmem:[#allocation2] sm:$0xff] }
 0x74d   : > { %v3998_v39 = vadd.f32 %v3997_v62, %v3996_v57  ;;  %v4026_v9 = vrot.slane %v4025_v49, 2 }
 0x74f   : > { %v3999_v61 = vrot.slane %v3998_v39, 1  ;;  %v4027_v10 = vadd.f32 %v4026_v9, %v4025_v49  ;;  %v4334_v9 = vld [vmem:[#allocation12 + $0x48] sm:$0xff] }
 0x751   : > { %v4028_v0 = vrot.slane %v4027_v10, 1  ;;  %v4000_v26 = vadd.f32 %v3999_v61, %v3998_v39  ;;  %v4333_v39 = vld [vmem:[#allocation12 + $0x40] sm:$0xff]  ;;  %v4335_v61 = vld [vmem:[#allocation12 + $0x50] sm:$0xff] }
 0x753   : > { %v4029_v44 = vadd.f32 %v4028_v0, %v4027_v10  ;;  %v7575_v10 = vpack.c.bf16 %v4334_v9, %v4333_v39  ;;  %v4336_v0 = vld [vmem:[#allocation12 + $0x58] sm:$0xff] }
 0x755   : > { %v4030_v29 = vsel %vm2129_vm2, %v4000_v26, %v4029_v44  ;;  %v7579_v26 = vpack.c.bf16 %v4336_v0, %v4335_v61  ;;  %v4337_v44 = vld [vmem:[#allocation12 + $0x60] sm:$0xff]  ;;  %7576 = vmatprep.subr.bf16.mxu1 %v7575_v10 }
 0x756   : > { %4040 = vrot.lane.b32.xlu0 %v4030_v29, %s8601_s1  ;;  %v4338_v29 = vld [vmem:[#allocation12 + $0x68] sm:$0xff]  ;;  %7578 = vmatpush3.bf16.msra.mxu1 %v7575_v10 }
 0x757   : > { %7580 = vmatprep.subr.bf16.mxu1 %v7579_v26 }
 0x75a   : > { %7582 = vmatpush3.bf16.msra.mxu1 %v7579_v26 }
 0x7c8   : > { %v4041_v32 = vpop.permute.xlu0 %4040 }
 0x7c9   : > { %6776 = vmatmul.mubr.msk.f32.vlgmr.msra.gmra.mrb[32].mxu0 %vm2078_vm0, %v4041_v32  ;;  %v7583_v32 = vpack.c.bf16 %v4338_v29, %v4337_v44  ;;  %v4319_v29 = vld [vmem:[#allocation12 + $0x18] sm:$0xff] }
 0x7ca   : > { %6780 = vmatprep.mubr.msk.f32.mxu0 %vm8600_vm1, %v9445_v6  ;;  %6779 = vmatpush3.msra.mxu0 %v4132_v3  ;;  %v4339_v3 = vld [vmem:[#allocation12 + $0x70] sm:$0xff] }
 0x7cb   : > { %7719 = vmatprep.subr.bf16.mxu0 %v8599_v52  ;;  %7584 = vmatprep.subr.bf16.mxu1 %v7583_v32 }
 0x7cc   : > { %7586 = vmatpush3.bf16.msra.mxu1 %v7583_v32 }
 0x89c   : > { %v4110_v30 = vpop.f32.mrb[32].mxu0 }
 0x89d   : > { %v4114_v63 = vmul.f32 0.001953125, %v4110_v30  ;;  %v6777_v60 = vpop.f32.mrb[33].mxu0  ;;  %v4340_v30 = vld [vmem:[#allocation12 + $0x78] sm:$0xff] }
 0x89e   : > { %v4324_v60 = vld [vmem:[#allocation4 + $0x1] sm:$0xff] }
 0x89f   : > { %v4115_v45 = vmul.f32 %v4114_v63, %v4114_v63  ;;  %v4123_v50 = vsub.f32 0.0, %v4114_v63  ;;  %6799 = vmatprep.mubr.msk.f32.mxu1 %vm2078_vm0, %v4324_v60  ;;  %v4322_v60 = vld [vmem:[#allocation12 + $0x30] sm:$0xff] }
 0x8a1   : > { %v4117_v43 = vrot.slane %v4115_v45, 7 }
 0x8a3   : > { %v4119_v18 = vsub.f32 %v4114_v63, %v4117_v43  ;;  %v7587_v63 = vpack.c.bf16 %v4340_v30, %v4339_v3  ;;  %v4321_v30 = vld [vmem:[#allocation12 + $0x28] sm:$0xff] }
 0x8a5   : > { %v4120_v25 = vmax.f32 %v4119_v18, 0.0  ;;  %7588 = vmatprep.subr.bf16.mxu1 %v7587_v63 }
 0x8a6   : > { %7590 = vmatpush3.bf16.msra.mxu1 %v7587_v63 }
 0x8a7   : > { %v4121_v20 = vadd.f32 1e-05, %v4120_v25 }
 0x8a9   : > { %8234 = vrsqrt.f32 %v4121_v20 }
 0x8b3   : > { %v8235_v47 = vpop.eup %8234 }
 0x8b4   : > { %v4125_v48 = vrot.slane %v8235_v47, 1 }
 0x8b6   : > { %v4127_v53 = vmul.f32 %v4125_v48, %v4123_v50 }
 0x8b8   : > { %v4129_v38 = vrot.slane %v4127_v53, 7 }
 0x8ba   : > { %v4131_v6 = vsel %vm2129_vm2, %v4125_v48, %v4129_v38 }
 0x8bb   : > { %6781 = vmatmul.mubr.msk.f32.vlgmr.msra.gmra.mrb[34].mxu0 %vm2231_vm3, %v4131_v6  ;;  %v4316_v6 = vld [vmem:[#allocation12] sm:$0xff] }
 0x8bc   : > { %7067 = vmatprep.mubr.msk.f32.mxu0 %vm8600_vm1, %v9847_v33 }
 0x98e   : > { %v4202_v57 = vpop.f32.mrb[34].mxu0 }
 0x98f   : > { %v4209_v41 = vrot.slane %v4202_v57, %v9415_v51  ;;  %v4225_v62 = vrot.slane %v4202_v57, %v9417_v17  ;;  %v6782_v49 = vpop.f32.mrb[35].mxu0  ;;  %v4317_v57 = vld [vmem:[#allocation12 + $0x8] sm:$0xff] }
 0x991   : > { %4227 = vrot.lane.b32.xlu0 %v4225_v62, %s8601_s1  ;;  %4211 = vrot.lane.b32.xlu1 %v4209_v41, %s8601_s1 }
 0xa03   : > { %v4212_v45 = vpop.permute.xlu1 %4211  ;;  %v4228_v47 = vpop.permute.xlu0 %4227 }
 0xa04   : > { %v4215_v43 = vmul.f32 %v4212_v45, %v9759_v21  ;;  %v4214_v18 = vmul.f32 %v4212_v45, %v9763_v4  ;;  %v4217_v25 = vmul.f32 %v4212_v45, %v9775_v42  ;;  %v4216_v20 = vmul.f32 %v4212_v45, %v9769_v28 }
 0xa05   : > { %v4219_v53 = vmul.f32 %v4212_v45, %v9806_v40  ;;  %v4218_v38 = vmul.f32 %v4212_v45, %v9787_v14  ;;  %v7591_v21 = vpack.c.bf16 %v4317_v57, %v4316_v6  ;;  %v4221_v4 = vmul.f32 %v4212_v45, %v9832_v54  ;;  %v4308_v6 = vld [vmem:[#allocation4] sm:$0xff] }
 0xa06   : > { %v4231_v50 = vadd.f32 %v4228_v47, %v4215_v43  ;;  %v4230_v48 = vadd.f32 %v4228_v47, %v4214_v18  ;;  %v4233_v49 = vadd.f32 %v4228_v47, %v4217_v25  ;;  %v4232_v39 = vadd.f32 %v4228_v47, %v4216_v20  ;;  %v4323_v20 = vld [vmem:[#allocation12 + $0x38] sm:$0xff] }
 0xa07   : > { %v4220_v28 = vmul.f32 %v4212_v45, %v9820_v8  ;;  %v4235_v40 = vadd.f32 %v4228_v47, %v4219_v53  ;;  %v4234_v61 = vadd.f32 %v4228_v47, %v4218_v38  ;;  %7592 = vmatprep.subr.bf16.mxu1 %v7591_v21  ;;  %v4237_v0 = vadd.f32 %v4228_v47, %v4221_v4  ;;  %v4318_v8 = vld [vmem:[#allocation12 + $0x10] sm:$0xff]  ;;  %v4609_v38 = vld [vmem:[#allocation12 + $0x88] sm:$0xff]  ;;  %v4612_v4 = vld [vmem:[#allocation12 + $0xa0] sm:$0xff] }
 0xa08   : > { %v4239_v41 = vmax.f32 %v4231_v50, 0.0  ;;  %v4238_v62 = vmax.f32 %v4230_v48, 0.0  ;;  %v4241_v42 = vmax.f32 %v4233_v49, 0.0  ;;  %v4240_v9 = vmax.f32 %v4232_v39, 0.0  ;;  %v4608_v50 = vld [vmem:[#allocation12 + $0x80] sm:$0xff]  ;;  %v4611_v49 = vld [vmem:[#allocation12 + $0x98] sm:$0xff] }
 0xa09   : > { %v4243_v14 = vmax.f32 %v4235_v40, 0.0  ;;  %v4242_v10 = vmax.f32 %v4234_v61, 0.0  ;;  %v4236_v26 = vadd.f32 %v4228_v47, %v4220_v28  ;;  %v4245_v54 = vmax.f32 %v4237_v0, 0.0  ;;  %v4613_v28 = vld [vmem:[#allocation12 + $0xa8] sm:$0xff]  ;;  %v4614_v61 = vld [vmem:[#allocation12 + $0xb0] sm:$0xff] }
 0xa0a   : > { %4278 = vrot.lane.b32.xlu0 %v4239_v41, %s8601_s1  ;;  %4276 = vrot.lane.b32.xlu1 %v4238_v62, %s8601_s1  ;;  %v7603_v47 = vpack.c.bf16 %v4323_v20, %v4322_v60  ;;  %v7607_v57 = vpack.c.bf16 %v4609_v38, %v4608_v50  ;;  %v4610_v62 = vld [vmem:[#allocation12 + $0x90] sm:$0xff]  ;;  %v4916_v38 = vld [vmem:[#allocation12 + $0x100] sm:$0xff] }
 0xa0b   : > { %v4244_v44 = vmax.f32 %v4236_v26, 0.0  ;;  %v7611_v39 = vpack.c.bf16 %v4611_v49, %v4610_v62 }
 0xa0e   : > { %4282 = vrot.lane.b32.xlu0 %v4241_v42, %s8601_s1  ;;  %4280 = vrot.lane.b32.xlu1 %v4240_v9, %s8601_s1  ;;  %v7615_v9 = vpack.c.bf16 %v4613_v28, %v4612_v4  ;;  %v4919_v4 = vld [vmem:[#allocation12 + $0x118] sm:$0xff] }
 0xa12   : > { %4286 = vrot.lane.b32.xlu0 %v4243_v14, %s8601_s1  ;;  %4284 = vrot.lane.b32.xlu1 %v4242_v10, %s8601_s1  ;;  %v4615_v14 = vld [vmem:[#allocation12 + $0xb8] sm:$0xff] }
 0xa13   : > { %v7619_v0 = vpack.c.bf16 %v4615_v14, %v4614_v61  ;;  %v4921_v61 = vld [vmem:[#allocation12 + $0x128] sm:$0xff] }
 0xa16   : > { %4290 = vrot.lane.b32.xlu0 %v4245_v54, %s8601_s1  ;;  %4288 = vrot.lane.b32.xlu1 %v4244_v44, %s8601_s1  ;;  %v4762_v54 = vld [vmem:[#allocation12 + $0xc0] sm:$0xff]  ;;  %v4763_v44 = vld [vmem:[#allocation12 + $0xc8] sm:$0xff] }
 0xa1a   : > { %5688 = vrot.lane.b32.xlu0 %v9702_v37, %s8601_s1  ;;  %5686 = vrot.lane.b32.xlu1 %v9699_v12, %s8601_s1 }
 0xa1e   : > { %5692 = vrot.lane.b32.xlu0 %v9708_v22, %s8601_s1  ;;  %5690 = vrot.lane.b32.xlu1 %v9705_v34, %s8601_s1 }
 0xa22   : > { %5696 = vrot.lane.b32.xlu0 %v9714_v56, %s8601_s1  ;;  %5694 = vrot.lane.b32.xlu1 %v9711_v59, %s8601_s1  ;;  %v7595_v59 = vpack.c.bf16 %v4319_v29, %v4318_v8  ;;  %v4320_v56 = vld [vmem:[#allocation12 + $0x20] sm:$0xff]  ;;  %v4764_v8 = vld [vmem:[#allocation12 + $0xd0] sm:$0xff]  ;;  %v4765_v29 = vld [vmem:[#allocation12 + $0xd8] sm:$0xff] }
 0xa23   : > { %v7599_v63 = vpack.c.bf16 %v4321_v30, %v4320_v56 }
 0xa26   : > { %5698 = vrot.lane.b32.xlu1 %v9717_v58, %s8601_s1  ;;  %5700 = vrot.lane.b32.xlu0 %v9720_v24, %s8601_s1  ;;  %s8505_s1 = sshll.u32 %s8603_s29, 4  ;;  %s8506_s1 = int_to_ptr.vmem [resolvable:$false] %s8505_s1 }
 0xa27   : > { %s8507_s12 = scalar_lea.vmem %s8506_s1, 2048  ;;  %p8508_p13 = scmp.lt.s32.totalorder %s10303_s30, %s8506_s1 }
 0xa28   : > { %p8509_p8 = scmp.lt.s32.totalorder %s8507_s12, %s8501_s15 }
 0xa2a   : > { %p8510_p7 = por %p8509_p8, %p8508_p13 }
 0xa2c   : > { %p8511_p9 = pnand %p8510_p7, %p8504_p12 }
 0xa7c   : > { %v4279_v37 = vpop.permute.xlu0 %4278  ;;  %v4277_v12 = vpop.permute.xlu1 %4276 }
 0xa7d   : > { %4301 = vst.msk [vmem:[#allocation4 + $0x21] sm:$0xff] %vm2078_vm0, %v4279_v37  ;;  %4300 = vst.msk [vmem:[#allocation4 + $0x11] sm:$0xff] %vm2078_vm0, %v4277_v12  ;;  %v4599_v12 = vld [vmem:[#allocation4 + $0x2] sm:$0xff] }
 0xa80   : > { %v4283_v22 = vpop.permute.xlu0 %4282  ;;  %v4281_v34 = vpop.permute.xlu1 %4280 }
 0xa81   : > { %4303 = vst.msk [vmem:[#allocation4 + $0x41] sm:$0xff] %vm2078_vm0, %v4283_v22  ;;  %4302 = vst.msk [vmem:[#allocation4 + $0x31] sm:$0xff] %vm2078_vm0, %v4281_v34  ;;  %v7623_v22 = vpack.c.bf16 %v4763_v44, %v4762_v54  ;;  %v4923_v54 = vld [vmem:[#allocation12 + $0x138] sm:$0xff]  ;;  %v5070_v44 = vld [vmem:[#allocation12 + $0x140] sm:$0xff] }
 0xa84   : > { %v4287_v58 = vpop.permute.xlu0 %4286  ;;  %v4285_v32 = vpop.permute.xlu1 %4284  ;;  %v9892_v3 = vld [vmem:[#allocation4 + $0x11] sm:$0xff]  ;;  %v9894_v24 = vld [vmem:[#allocation4 + $0x21] sm:$0xff] }
 0xa85   : > { %4305 = vst.msk [vmem:[#allocation4 + $0x61] sm:$0xff] %vm2078_vm0, %v4287_v58  ;;  %4304 = vst.msk [vmem:[#allocation4 + $0x51] sm:$0xff] %vm2078_vm0, %v4285_v32  ;;  %6800 = vmatmul.mubr.msk.f32.vlgmr.msra.gmra.mrb[20].mxu1 %vm2078_vm0, %v9892_v3  ;;  %v9929_v42 = vld [vmem:[#allocation4 + $0x20] sm:$0xff]  ;;  %v9954_v56 = vld [vmem:[#allocation4 + $0x12] sm:$0xff] }
 0xa86   : > { %6802 = vmatprep.mubr.msk.f32.mxu1 %vm2078_vm0, %v9894_v24  ;;  %7594 = vmatpush3.bf16.msra.mxu1 %v7591_v21  ;;  %v9925_v21 = vld [vmem:[#allocation4 + $0x10] sm:$0xff]  ;;  %v4766_v58 = vld [vmem:[#allocation12 + $0xe0] sm:$0xff] }
 0xa87   : > { %7596 = vmatprep.subr.bf16.mxu1 %v7595_v59  ;;  %v4767_v32 = vld [vmem:[#allocation12 + $0xe8] sm:$0xff] }
 0xa88   : > { %v4291_v45 = vpop.permute.xlu0 %4290  ;;  %v4289_v43 = vpop.permute.xlu1 %4288  ;;  %v9902_v18 = vld [vmem:[#allocation4 + $0x31] sm:$0xff]  ;;  %v9904_v25 = vld [vmem:[#allocation4 + $0x41] sm:$0xff] }
 0xa89   : > { %4307 = vst.msk [vmem:[#allocation4 + $0x81] sm:$0xff] %vm2078_vm0, %v4291_v45  ;;  %4306 = vst.msk [vmem:[#allocation4 + $0x71] sm:$0xff] %vm2078_vm0, %v4289_v43  ;;  %6803 = vmatmul.mubr.msk.f32.gmra.mrb[22].mxu1 %vm2078_vm0, %v9902_v18  ;;  %v9933_v40 = vld [vmem:[#allocation4 + $0x30] sm:$0xff]  ;;  %v9937_v10 = vld [vmem:[#allocation4 + $0x40] sm:$0xff] }
 0xa8a   : > { %6805 = vmatprep.mubr.msk.f32.mxu1 %vm2078_vm0, %v9904_v25  ;;  %7598 = vmatpush3.bf16.msra.mxu1 %v7595_v59  ;;  %v7627_v59 = vpack.c.bf16 %v4765_v29, %v4764_v8  ;;  %v9958_v30 = vld [vmem:[#allocation4 + $0x22] sm:$0xff]  ;;  %v9962_v60 = vld [vmem:[#allocation4 + $0x32] sm:$0xff] }
 0xa8b   : > { %7600 = vmatprep.subr.bf16.mxu1 %v7599_v63  ;;  %v4768_v45 = vld [vmem:[#allocation12 + $0xf0] sm:$0xff]  ;;  %v4769_v43 = vld [vmem:[#allocation12 + $0xf8] sm:$0xff]  ;;  %v9966_v20 = vld [vmem:[#allocation4 + $0x42] sm:$0xff] }
 0xa8c   : > { %v9912_v48 = vld [vmem:[#allocation4 + $0x51] sm:$0xff]  ;;  %v9914_v53 = vld [vmem:[#allocation4 + $0x61] sm:$0xff] }
 0xa8d   : > { %6806 = vmatmul.mubr.msk.f32.gmra.mrb[24].mxu1 %vm2078_vm0, %v9912_v48  ;;  %v9941_v26 = vld [vmem:[#allocation4 + $0x50] sm:$0xff]  ;;  %v9945_v37 = vld [vmem:[#allocation4 + $0x60] sm:$0xff] }
 0xa8e   : > { %6808 = vmatprep.mubr.msk.f32.mxu1 %vm2078_vm0, %v9914_v53  ;;  %7602 = vmatpush3.bf16.msra.mxu1 %v7599_v63  ;;  %v7631_v63 = vpack.c.bf16 %v4767_v32, %v4766_v58  ;;  %v9970_v50 = vld [vmem:[#allocation4 + $0x52] sm:$0xff]  ;;  %v5074_v32 = vld [vmem:[#allocation12 + $0x160] sm:$0xff] }
 0xa8f   : > { %7604 = vmatprep.subr.bf16.mxu1 %v7603_v47  ;;  %v5072_v29 = vld [vmem:[#allocation12 + $0x150] sm:$0xff] }
 0xa90   : > { %v9920_v41 = vld [vmem:[#allocation4 + $0x71] sm:$0xff]  ;;  %v9996_v8 = vld [vmem:[#allocation4 + $0x80] sm:$0xff] }
 0xa91   : > { %6809 = vmatmul.mubr.msk.f32.gmra.mrb[26].mxu1 %vm2078_vm0, %v9920_v41  ;;  %v9949_v34 = vld [vmem:[#allocation4 + $0x70] sm:$0xff] }
 0xa92   : > { %7606 = vmatpush3.bf16.msra.mxu1 %v7603_v47  ;;  %6827 = vmatprep.mubr.msk.f32.mxu1 %vm2078_vm0, %v4308_v6  ;;  %v7635_v47 = vpack.c.bf16 %v4769_v43, %v4768_v45  ;;  %v4917_v6 = vld [vmem:[#allocation12 + $0x108] sm:$0xff]  ;;  %v9978_v49 = vld [vmem:[#allocation4 + $0x72] sm:$0xff] }
 0xa93   : > { %7608 = vmatprep.subr.bf16.mxu1 %v7607_v57  ;;  %v7639_v62 = vpack.c.bf16 %v4917_v6, %v4916_v38  ;;  %v5076_v43 = vld [vmem:[#allocation12 + $0x170] sm:$0xff]  ;;  %v5225_v38 = vld [vmem:[#allocation12 + $0x180] sm:$0xff]  ;;  %v5226_v6 = vld [vmem:[#allocation12 + $0x188] sm:$0xff] }
 0xa95   : > { %6828 = vmatmul.mubr.msk.f32.vlgmr.msra.gmra.mrb[20].mxu1 %vm2078_vm0, %v9925_v21 }
 0xa96   : > { %6830 = vmatprep.mubr.msk.f32.mxu1 %vm2078_vm0, %v9929_v42  ;;  %7610 = vmatpush3.bf16.msra.mxu1 %v7607_v57  ;;  %v9974_v57 = vld [vmem:[#allocation4 + $0x62] sm:$0xff] }
 0xa97   : > { %7612 = vmatprep.subr.bf16.mxu1 %v7611_v39 }
 0xa99   : > { %6831 = vmatmul.mubr.msk.f32.gmra.mrb[22].mxu1 %vm2078_vm0, %v9933_v40 }
 0xa9a   : > { %6833 = vmatprep.mubr.msk.f32.mxu1 %vm2078_vm0, %v9937_v10  ;;  %7614 = vmatpush3.bf16.msra.mxu1 %v7611_v39  ;;  %v4918_v39 = vld [vmem:[#allocation12 + $0x110] sm:$0xff] }
 0xa9b   : > { %7616 = vmatprep.subr.bf16.mxu1 %v7615_v9  ;;  %v7643_v28 = vpack.c.bf16 %v4919_v4, %v4918_v39  ;;  %v10014_v39 = vld [vmem:[#allocation4 + $0x81] sm:$0xff]  ;;  %v5227_v4 = vld [vmem:[#allocation12 + $0x190] sm:$0xff] }
 0xa9d   : > { %6834 = vmatmul.mubr.msk.f32.gmra.mrb[24].mxu1 %vm2078_vm0, %v9941_v26 }
 0xa9e   : > { %6836 = vmatprep.mubr.msk.f32.mxu1 %vm2078_vm0, %v9945_v37  ;;  %7618 = vmatpush3.bf16.msra.mxu1 %v7615_v9  ;;  %v4920_v9 = vld [vmem:[#allocation12 + $0x120] sm:$0xff] }
 0xa9f   : > { %7620 = vmatprep.subr.bf16.mxu1 %v7619_v0  ;;  %v7647_v14 = vpack.c.bf16 %v4921_v61, %v4920_v9  ;;  %v5229_v61 = vld [vmem:[#allocation12 + $0x1a0] sm:$0xff] }
 0xaa1   : > { %6837 = vmatmul.mubr.msk.f32.gmra.mrb[26].mxu1 %vm2078_vm0, %v9949_v34 }
 0xaa2   : > { %7622 = vmatpush3.bf16.msra.mxu1 %v7619_v0  ;;  %6855 = vmatprep.mubr.msk.f32.mxu1 %vm2078_vm0, %v4599_v12  ;;  %v4922_v0 = vld [vmem:[#allocation12 + $0x130] sm:$0xff]  ;;  %v5071_v12 = vld [vmem:[#allocation12 + $0x148] sm:$0xff] }
 0xaa3   : > { %7624 = vmatprep.subr.bf16.mxu1 %v7623_v22 }
 0xaa5   : > { %6856 = vmatmul.mubr.msk.f32.vlgmr.msra.gmra.mrb[20].mxu1 %vm2078_vm0, %v9954_v56 }
 0xaa6   : > { %6858 = vmatprep.mubr.msk.f32.mxu1 %vm2078_vm0, %v9958_v30  ;;  %7626 = vmatpush3.bf16.msra.mxu1 %v7623_v22  ;;  %v7655_v22 = vpack.c.bf16 %v5071_v12, %v5070_v44  ;;  %v5379_v44 = vld [vmem:[#allocation12 + $0x1c0] sm:$0xff]  ;;  %v5380_v12 = vld [vmem:[#allocation12 + $0x1c8] sm:$0xff] }
 0xaa7   : > { %7628 = vmatprep.subr.bf16.mxu1 %v7627_v59 }
 0xaa9   : > { %6859 = vmatmul.mubr.msk.f32.gmra.mrb[22].mxu1 %vm2078_vm0, %v9962_v60 }
 0xaaa   : > { %6861 = vmatprep.mubr.msk.f32.mxu1 %vm2078_vm0, %v9966_v20  ;;  %7630 = vmatpush3.bf16.msra.mxu1 %v7627_v59  ;;  %v5073_v59 = vld [vmem:[#allocation12 + $0x158] sm:$0xff] }
 0xaab   : > { %7632 = vmatprep.subr.bf16.mxu1 %v7631_v63  ;;  %v7659_v58 = vpack.c.bf16 %v5073_v59, %v5072_v29  ;;  %v10032_v29 = vld [vmem:[#allocation4 + $0x82] sm:$0xff]  ;;  %v5381_v59 = vld [vmem:[#allocation12 + $0x1d0] sm:$0xff] }
 0xaad   : > { %6862 = vmatmul.mubr.msk.f32.gmra.mrb[24].mxu1 %vm2078_vm0, %v9970_v50 }
 0xaae   : > { %6864 = vmatprep.mubr.msk.f32.mxu1 %vm2078_vm0, %v9974_v57  ;;  %7634 = vmatpush3.bf16.msra.mxu1 %v7631_v63  ;;  %v5075_v63 = vld [vmem:[#allocation12 + $0x168] sm:$0xff] }
 0xaaf   : > { %7636 = vmatprep.subr.bf16.mxu1 %v7635_v47  ;;  %v7663_v45 = vpack.c.bf16 %v5075_v63, %v5074_v32  ;;  %v5383_v63 = vld [vmem:[#allocation12 + $0x1e0] sm:$0xff] }
 0xab1   : > { %6865 = vmatmul.mubr.msk.f32.gmra.mrb[26].mxu1 %vm2078_vm0, %v9978_v49 }
 0xab2   : > { %7638 = vmatpush3.bf16.msra.mxu1 %v7635_v47  ;;  %6883 = vmatprep.mubr.msk.f32.mxu1 %vm2078_vm0, %v9925_v21  ;;  %v7651_v21 = vpack.c.bf16 %v4923_v54, %v4922_v0  ;;  %v5077_v47 = vld [vmem:[#allocation12 + $0x178] sm:$0xff]  ;;  %v5231_v54 = vld [vmem:[#allocation12 + $0x1b0] sm:$0xff] }
 0xab3   : > { %7640 = vmatprep.subr.bf16.mxu1 %v7639_v62 }
 0xab5   : > { %6884 = vmatmul.mubr.msk.f32.vlgmr.msra.gmra.mrb[20].mxu1 %vm2078_vm0, %v9929_v42 }
 0xab6   : > { %6886 = vmatprep.mubr.msk.f32.mxu1 %vm2078_vm0, %v9933_v40  ;;  %7642 = vmatpush3.bf16.msra.mxu1 %v7639_v62  ;;  %v7671_v62 = vpack.c.bf16 %v5226_v6, %v5225_v38  ;;  %v5533_v38 = vld [vmem:[#allocation12 + $0x200] sm:$0xff]  ;;  %v5534_v6 = vld [vmem:[#allocation12 + $0x208] sm:$0xff] }
 0xab7   : > { %7644 = vmatprep.subr.bf16.mxu1 %v7643_v28 }
 0xab9   : > { %6887 = vmatmul.mubr.msk.f32.gmra.mrb[22].mxu1 %vm2078_vm0, %v9937_v10 }
 0xaba   : > { %6889 = vmatprep.mubr.msk.f32.mxu1 %vm2078_vm0, %v9941_v26  ;;  %7646 = vmatpush3.bf16.msra.mxu1 %v7643_v28  ;;  %v5228_v28 = vld [vmem:[#allocation12 + $0x198] sm:$0xff] }
 0xabb   : > { %7648 = vmatprep.subr.bf16.mxu1 %v7647_v14  ;;  %v7675_v9 = vpack.c.bf16 %v5228_v28, %v5227_v4  ;;  %v5537_v4 = vld [vmem:[#allocation12 + $0x220] sm:$0xff]  ;;  %v5538_v28 = vld [vmem:[#allocation12 + $0x228] sm:$0xff] }
 0xabd   : > { %6890 = vmatmul.mubr.msk.f32.gmra.mrb[24].mxu1 %vm2078_vm0, %v9945_v37 }
 0xabe   : > { %6892 = vmatprep.mubr.msk.f32.mxu1 %vm2078_vm0, %v9949_v34  ;;  %7650 = vmatpush3.bf16.msra.mxu1 %v7647_v14  ;;  %v5230_v14 = vld [vmem:[#allocation12 + $0x1a8] sm:$0xff] }
 0xabf   : > { %7652 = vmatprep.subr.bf16.mxu1 %v7651_v21  ;;  %v7679_v0 = vpack.c.bf16 %v5230_v14, %v5229_v61  ;;  %v5776_v61 = vld [vmem:[%s10398_s21 + $0x38] sm:$0xff] }
 0xac1   : > { %6893 = vmatmul.mubr.msk.f32.gmra.mrb[26].mxu1 %vm2078_vm0, %v9996_v8 }
 0xac2   : > { %7654 = vmatpush3.bf16.msra.mxu1 %v7651_v21  ;;  %6911 = vmatprep.mubr.msk.f32.mxu1 %vm2078_vm0, %v9892_v3  ;;  %v7667_v3 = vpack.c.bf16 %v5077_v47, %v5076_v43  ;;  %v5232_v21 = vld [vmem:[#allocation12 + $0x1b8] sm:$0xff]  ;;  %v5385_v47 = vld [vmem:[#allocation12 + $0x1f0] sm:$0xff] }
 0xac3   : > { %7656 = vmatprep.subr.bf16.mxu1 %v7655_v22 }
 0xac5   : > { %6912 = vmatmul.mubr.msk.f32.vlgmr.msra.gmra.mrb[20].mxu1 %vm2078_vm0, %v9894_v24 }
 0xac6   : > { %6914 = vmatprep.mubr.msk.f32.mxu1 %vm2078_vm0, %v9902_v18  ;;  %7658 = vmatpush3.bf16.msra.mxu1 %v7655_v22  ;;  %v7687_v22 = vpack.c.bf16 %v5380_v12, %v5379_v44  ;;  %v5780_v44 = vld [vmem:[%s10398_s21 + $0x58] sm:$0xff] }
 0xac7   : > { %7660 = vmatprep.subr.bf16.mxu1 %v7659_v58 }
 0xac9   : > { %6915 = vmatmul.mubr.msk.f32.gmra.mrb[22].mxu1 %vm2078_vm0, %v9904_v25 }
 0xaca   : > { %6917 = vmatprep.mubr.msk.f32.mxu1 %vm2078_vm0, %v9912_v48  ;;  %7662 = vmatpush3.bf16.msra.mxu1 %v7659_v58  ;;  %v5382_v58 = vld [vmem:[#allocation12 + $0x1d8] sm:$0xff] }
 0xacb   : > { %7664 = vmatprep.subr.bf16.mxu1 %v7663_v45  ;;  %v7691_v32 = vpack.c.bf16 %v5382_v58, %v5381_v59  ;;  %v5783_v58 = vld [vmem:[%s10398_s21 + $0x70] sm:$0xff] }
 0xacd   : > { %6918 = vmatmul.mubr.msk.f32.gmra.mrb[24].mxu1 %vm2078_vm0, %v9914_v53 }
 0xace   : > { %6920 = vmatprep.mubr.msk.f32.mxu1 %vm2078_vm0, %v9920_v41  ;;  %7666 = vmatpush3.bf16.msra.mxu1 %v7663_v45  ;;  %v5384_v45 = vld [vmem:[#allocation12 + $0x1e8] sm:$0xff] }
 0xacf   : > { %7668 = vmatprep.subr.bf16.mxu1 %v7667_v3  ;;  %v7695_v43 = vpack.c.bf16 %v5384_v45, %v5383_v63  ;;  %v5689_v45 = vpop.permute.xlu0 %5688 }
 0xad1   : > { %6921 = vmatmul.mubr.msk.f32.gmra.mrb[26].mxu1 %vm2078_vm0, %v10014_v39 }
 0xad2   : > { %7670 = vmatpush3.bf16.msra.mxu1 %v7667_v3  ;;  %6939 = vmatprep.mubr.msk.f32.mxu1 %vm2078_vm0, %v9954_v56  ;;  %v7683_v56 = vpack.c.bf16 %v5232_v21, %v5231_v54  ;;  %v5386_v3 = vld [vmem:[#allocation12 + $0x1f8] sm:$0xff]  ;;  %v5778_v54 = vld [vmem:[%s10398_s21 + $0x48] sm:$0xff] }
 0xad3   : > { %7672 = vmatprep.subr.bf16.mxu1 %v7671_v62 }
 0xad5   : > { %6940 = vmatmul.mubr.msk.f32.vlgmr.msra.gmra.mrb[20].mxu1 %vm2078_vm0, %v9958_v30 }
 0xad6   : > { %6942 = vmatprep.mubr.msk.f32.mxu1 %vm2078_vm0, %v9962_v60  ;;  %7674 = vmatpush3.bf16.msra.mxu1 %v7671_v62  ;;  %v5535_v62 = vld [vmem:[#allocation12 + $0x210] sm:$0xff] }
 0xad7   : > { %7676 = vmatprep.subr.bf16.mxu1 %v7675_v9 }
 0xad9   : > { %6943 = vmatmul.mubr.msk.f32.gmra.mrb[22].mxu1 %vm2078_vm0, %v9966_v20 }
 0xada   : > { %6945 = vmatprep.mubr.msk.f32.mxu1 %vm2078_vm0, %v9970_v50  ;;  %7678 = vmatpush3.bf16.msra.mxu1 %v7675_v9  ;;  %v5540_v9 = vld [vmem:[#allocation12 + $0x238] sm:$0xff] }
 0xadb   : > { %7680 = vmatprep.subr.bf16.mxu1 %v7679_v0 }
 0xadd   : > { %6946 = vmatmul.mubr.msk.f32.gmra.mrb[24].mxu1 %vm2078_vm0, %v9974_v57 }
 0xade   : > { %6948 = vmatprep.mubr.msk.f32.mxu1 %vm2078_vm0, %v9978_v49  ;;  %7682 = vmatpush3.bf16.msra.mxu1 %v7679_v0  ;;  %v5777_v0 = vld [vmem:[%s10398_s21 + $0x40] sm:$0xff] }
 0xadf   : > { %7684 = vmatprep.subr.bf16.mxu1 %v7683_v56  ;;  %v10126_v21 = vpack.c.bf16 %v5778_v54, %v5777_v0 }
 0xae1   : > { %6949 = vmatmul.mubr.msk.f32.gmra.mrb[26].mxu1 %vm2078_vm0, %v10032_v29 }
 0xae2   : > { %7686 = vmatpush3.bf16.msra.mxu1 %v7683_v56  ;;  %6967 = vmatprep.mubr.msk.f32.mxu1 %vm2078_vm0, %v9929_v42  ;;  %v7699_v42 = vpack.c.bf16 %v5386_v3, %v5385_v47  ;;  %v5779_v56 = vld [vmem:[%s10398_s21 + $0x50] sm:$0xff]  ;;  %v5693_v47 = vpop.permute.xlu0 %5692 }
 0xae3   : > { %7688 = vmatprep.subr.bf16.mxu1 %v7687_v22  ;;  %v10136_v12 = vpack.c.bf16 %v5780_v44, %v5779_v56 }
 0xae5   : > { %6968 = vmatmul.mubr.msk.f32.vlgmr.msra.gmra.mrb[20].mxu1 %vm2078_vm0, %v9933_v40  ;;  %v5223_v40 = vld [vmem:[#allocation4 + $0x90] sm:$0xff] }
 0xae6   : > { %6970 = vmatprep.mubr.msk.f32.mxu1 %vm2078_vm0, %v9937_v10  ;;  %7690 = vmatpush3.bf16.msra.mxu1 %v7687_v22  ;;  %v7703_v10 = vpack.c.bf16 %v5534_v6, %v5533_v38  ;;  %v5781_v22 = vld [vmem:[%s10398_s21 + $0x60] sm:$0xff]  ;;  %v5697_v6 = vpop.permute.xlu0 %5696 }
 0xae7   : > { %7692 = vmatprep.subr.bf16.mxu1 %v7691_v32 }
 0xae9   : > { %6971 = vmatmul.mubr.msk.f32.gmra.mrb[22].mxu1 %vm2078_vm0, %v9941_v26  ;;  %v5536_v26 = vld [vmem:[#allocation12 + $0x218] sm:$0xff] }
 0xaea   : > { %6973 = vmatprep.mubr.msk.f32.mxu1 %vm2078_vm0, %v9945_v37  ;;  %7694 = vmatpush3.bf16.msra.mxu1 %v7691_v32  ;;  %v7707_v37 = vpack.c.bf16 %v5536_v26, %v5535_v62  ;;  %v5784_v32 = vld [vmem:[%s10398_s21 + $0x78] sm:$0xff] }
 0xaeb   : > { %7696 = vmatprep.subr.bf16.mxu1 %v7695_v43  ;;  %v10156_v63 = vpack.c.bf16 %v5784_v32, %v5783_v58 }
 0xaed   : > { %6974 = vmatmul.mubr.msk.f32.gmra.mrb[24].mxu1 %vm2078_vm0, %v9949_v34  ;;  %v7711_v34 = vpack.c.bf16 %v5538_v28, %v5537_v4 }
 0xaee   : > { %6976 = vmatprep.mubr.msk.f32.mxu1 %vm2078_vm0, %v9996_v8  ;;  %7698 = vmatpush3.bf16.msra.mxu1 %v7695_v43  ;;  %v5539_v8 = vld [vmem:[#allocation12 + $0x230] sm:$0xff]  ;;  %v5687_v43 = vpop.permute.xlu1 %5686 }
 0xaef   : > { %7700 = vmatprep.subr.bf16.mxu1 %v7699_v42  ;;  %v5702_v38 = vsel %vm2078_vm0, %v9751_v11, %v5687_v43 }
 0xaf0   : > { %v5718_v4 = vadd.f32 %v5702_v38, %v9265_v7 }
 0xaf1   : > { %6977 = vmatmul.mubr.msk.f32.gmra.mrb[26].mxu1 %vm2078_vm0, %v5223_v40 }
 0xaf2   : > { %7702 = vmatpush3.bf16.msra.mxu1 %v7699_v42  ;;  %6995 = vmatprep.mubr.msk.f32.mxu1 %vm2078_vm0, %v9894_v24  ;;  %v7715_v24 = vpack.c.bf16 %v5540_v9, %v5539_v8  ;;  %v5691_v3 = vpop.permute.xlu1 %5690  ;;  %v5703_v42 = vsel %vm2078_vm0, %v9753_v27, %v5689_v45 }
 0xaf3   : > { %7704 = vmatprep.subr.bf16.mxu1 %v7703_v10  ;;  %v5719_v40 = vadd.f32 %v5703_v42, %v9277_v1  ;;  %v5704_v62 = vsel %vm2078_vm0, %v9755_v2, %v5691_v3  ;;  %v5707_v1 = vsel %vm2078_vm0, %v9797_v35, %v5697_v6 }
 0xaf4   : > { %v5720_v8 = vadd.f32 %v5704_v62, %v9287_v23  ;;  %v5723_v35 = vadd.f32 %v5707_v1, %v9314_v46 }
 0xaf5   : > { %6996 = vmatmul.mubr.msk.f32.vlgmr.msra.gmra.mrb[20].mxu1 %vm2078_vm0, %v9902_v18  ;;  %v5377_v18 = vld [vmem:[#allocation4 + $0x91] sm:$0xff] }
 0xaf6   : > { %6998 = vmatprep.mubr.msk.f32.mxu1 %vm2078_vm0, %v9904_v25  ;;  %7706 = vmatpush3.bf16.msra.mxu1 %v7703_v10  ;;  %v5531_v25 = vld [vmem:[#allocation4 + $0x92] sm:$0xff]  ;;  %v5705_v10 = vsel %vm2078_vm0, %v9765_v36, %v5693_v47  ;;  %v5695_v26 = vpop.permute.xlu1 %5694 }
 0xaf7   : > { %7708 = vmatprep.subr.bf16.mxu1 %v7707_v37  ;;  %v5721_v11 = vadd.f32 %v5705_v10, %v9296_v31  ;;  %v5706_v36 = vsel %vm2078_vm0, %v9779_v13, %v5695_v26 }
 0xaf8   : > { %v5722_v13 = vadd.f32 %v5706_v36, %v9305_v15 }
 0xaf9   : > { %6999 = vmatmul.mubr.msk.f32.gmra.mrb[22].mxu1 %vm2078_vm0, %v9912_v48  ;;  %v5769_v48 = vld [vmem:[%s10398_s21] sm:$0xff] }
 0xafa   : > { %7001 = vmatprep.mubr.msk.f32.mxu1 %vm2078_vm0, %v9914_v53  ;;  %7710 = vmatpush3.bf16.msra.mxu1 %v7707_v37  ;;  %v5770_v53 = vld [vmem:[%s10398_s21 + $0x8] sm:$0xff]  ;;  %v5699_v31 = vpop.permute.xlu1 %5698 }
 0xafb   : > { %7712 = vmatprep.subr.bf16.mxu1 %v7711_v34 }
 0xafd   : > { %7002 = vmatmul.mubr.msk.f32.gmra.mrb[24].mxu1 %vm2078_vm0, %v9920_v41  ;;  %v10087_v41 = vpack.c.bf16 %v5770_v53, %v5769_v48 }
 0xafe   : > { %7004 = vmatprep.mubr.msk.f32.mxu1 %vm2078_vm0, %v10014_v39  ;;  %7714 = vmatpush3.bf16.msra.mxu1 %v7711_v34  ;;  %v5775_v39 = vld [vmem:[%s10398_s21 + $0x30] sm:$0xff] }
 0xaff   : > { %7716 = vmatprep.subr.bf16.mxu1 %v7715_v24  ;;  %7721 = vmatpush3.bf16.msra.mxu0 %v10087_v41  ;;  %v10117_v14 = vpack.c.bf16 %v5776_v61, %v5775_v39  ;;  %v5708_v39 = vsel %vm2078_vm0, %v9813_v16, %v5699_v31  ;;  %v5873_v31 = vld [vmem:[#allocation15] sm:$0xff] }
 0xb00   : > { %7722 = vmatprep.subr.bf16.mxu0 %v8599_v52  ;;  %v5724_v58 = vadd.f32 %v5708_v39, %v9323_v55 }
 0xb01   : > { %7005 = vmatmul.mubr.msk.f32.gmra.mrb[26].mxu1 %vm2078_vm0, %v5377_v18 }
 0xb02   : > { %7718 = vmatpush3.bf16.msra.mxu1 %v7715_v24  ;;  %7023 = vmatprep.mubr.msk.f32.mxu1 %vm2078_vm0, %v9958_v30  ;;  %v5771_v30 = vld [vmem:[%s10398_s21 + $0x10] sm:$0xff]  ;;  %v5701_v24 = vpop.permute.xlu0 %5700 }
 0xb03   : > { %v5709_v53 = vsel %vm2078_vm0, %v9827_v5, %v5701_v24 }
 0xb04   : > { %v5725_v56 = vadd.f32 %v5709_v53, %v9332_v19 }
 0xb05   : > { %7024 = vmatmul.mubr.msk.f32.vlgmr.msra.gmra.mrb[20].mxu1 %vm2078_vm0, %v9962_v60  ;;  %v5772_v60 = vld [vmem:[%s10398_s21 + $0x18] sm:$0xff] }
 0xb06   : > { %7026 = vmatprep.mubr.msk.f32.mxu1 %vm2078_vm0, %v9966_v20  ;;  %v10097_v20 = vpack.c.bf16 %v5772_v60, %v5771_v30 }
 0xb08   : > { %7724 = vmatpush3.bf16.msra.mxu0 %v10097_v20 }
 0xb09   : > { %7027 = vmatmul.mubr.msk.f32.gmra.mrb[22].mxu1 %vm2078_vm0, %v9970_v50  ;;  %7725 = vmatprep.subr.bf16.mxu0 %v8599_v52  ;;  %v5773_v50 = vld [vmem:[%s10398_s21 + $0x20] sm:$0xff] }
 0xb0a   : > { %7029 = vmatprep.mubr.msk.f32.mxu1 %vm2078_vm0, %v9974_v57  ;;  %v5774_v57 = vld [vmem:[%s10398_s21 + $0x28] sm:$0xff] }
 0xb0d   : > { %7030 = vmatmul.mubr.msk.f32.gmra.mrb[24].mxu1 %vm2078_vm0, %v9978_v49  ;;  %v10107_v49 = vpack.c.bf16 %v5774_v57, %v5773_v50 }
 0xb0e   : > { %7032 = vmatprep.mubr.msk.f32.mxu1 %vm2078_vm0, %v10032_v29  ;;  %v5782_v29 = vld [vmem:[%s10398_s21 + $0x68] sm:$0xff] }
 0xb0f   : > { %7727 = vmatpush3.bf16.msra.mxu0 %v10107_v49  ;;  %v10146_v59 = vpack.c.bf16 %v5782_v29, %v5781_v22 }
 0xb10   : > { %7728 = vmatprep.subr.bf16.mxu0 %v8599_v52 }
 0xb11   : > { %7033 = vmatmul.mubr.msk.f32.gmra.mrb[26].mxu1 %vm2078_vm0, %v5531_v25 }
 0xb13   : > { %7730 = vmatpush3.bf16.msra.mxu0 %v10117_v14 }
 0xb14   : > { %7731 = vmatprep.subr.bf16.mxu0 %v8599_v52 }
 0xb17   : > { %7733 = vmatpush3.bf16.msra.mxu0 %v10126_v21 }
 0xb18   : > { %7734 = vmatprep.subr.bf16.mxu0 %v8599_v52 }
 0xb1b   : > { %7736 = vmatpush3.bf16.msra.mxu0 %v10136_v12 }
 0xb1c   : > { %7737 = vmatprep.subr.bf16.mxu0 %v8599_v52 }
 0xb1f   : > { %7739 = vmatpush3.bf16.msra.mxu0 %v10146_v59 }
 0xb20   : > { %7740 = vmatprep.subr.bf16.mxu0 %v8599_v52 }
 0xb23   : > { %7742 = vmatpush3.bf16.msra.mxu0 %v10156_v63 }
 0xb24   : > { %7743 = vmatprep.subr.bf16.mxu0 %v8599_v52 }
 0xbd8   : > { %v7025_v37 = vpop.f32.mrb[20].mxu1 }
 0xbd9   : > { %v10171_v28 = vadd.f32 %v7025_v37, %v5719_v40  ;;  %v5631_v34 = vpop.f32.mrb[21].mxu1 }
 0xbda   : > { %v10173_v27 = vadd.f32 %v5718_v4, %v5631_v34 }
 0xbdb   : > { %v5748_v2 = vmul.f32 %v10171_v28, %v10171_v28 }
 0xbdc   : > { %v5747_v7 = vmul.f32 %v10173_v27, %v10173_v27  ;;  %v7028_v9 = vpop.f32.mrb[22].mxu1  ;;  %v5734_v23 = vadd.f32 %v10171_v28, %v10173_v27 }
 0xbdd   : > { %v10185_v18 = vadd.f32 %v7028_v9, %v5721_v11  ;;  %v5641_v25 = vpop.f32.mrb[23].mxu1 }
 0xbde   : > { %v10189_v48 = vadd.f32 %v5720_v8, %v5641_v25  ;;  %v5755_v30 = vadd.f32 %v5748_v2, %v5747_v7 }
 0xbdf   : > { %v5750_v46 = vmul.f32 %v10185_v18, %v10185_v18 }
 0xbe0   : > { %v5735_v60 = vadd.f32 %v5734_v23, %v10189_v48  ;;  %v5749_v50 = vmul.f32 %v10189_v48, %v10189_v48  ;;  %v7031_v57 = vpop.f32.mrb[24].mxu1  ;;  %v5874_v23 = vld [vmem:[#allocation15 + $0x8] sm:$0xff] }
 0xbe1   : > { %v10200_v61 = vadd.f32 %v7031_v57, %v5723_v35  ;;  %v5651_v0 = vpop.f32.mrb[25].mxu1  ;;  %v10228_v35 = vpack.c.bf16 %v5874_v23, %v5873_v31 }
 0xbe2   : > { %v5756_v15 = vadd.f32 %v5755_v30, %v5749_v50  ;;  %v10204_v54 = vadd.f32 %v5722_v13, %v5651_v0  ;;  %v5736_v5 = vadd.f32 %v5735_v60, %v10185_v18 }
 0xbe3   : > { %v5752_v43 = vmul.f32 %v10200_v61, %v10200_v61 }
 0xbe4   : > { %v5737_v44 = vadd.f32 %v5736_v5, %v10204_v54  ;;  %v5751_v22 = vmul.f32 %v10204_v54, %v10204_v54  ;;  %v5757_v29 = vadd.f32 %v5756_v15, %v5750_v46  ;;  %v7034_v16 = vpop.f32.mrb[26].mxu1 }
 0xbe5   : > { %v10212_v32 = vadd.f32 %v7034_v16, %v5725_v56  ;;  %v5661_v45 = vpop.f32.mrb[27].mxu1 }
 0xbe6   : > { %v5758_v47 = vadd.f32 %v5757_v29, %v5751_v22  ;;  %v10216_v3 = vadd.f32 %v5724_v58, %v5661_v45  ;;  %v5738_v19 = vadd.f32 %v5737_v44, %v10200_v61 }
 0xbe7   : > { %v5754_v55 = vmul.f32 %v10212_v32, %v10212_v32 }
 0xbe8   : > { %v5739_v42 = vadd.f32 %v5738_v19, %v10216_v3  ;;  %v5753_v38 = vmul.f32 %v10216_v3, %v10216_v3  ;;  %v5759_v6 = vadd.f32 %v5758_v47, %v5752_v43 }
 0xbea   : > { %v5740_v40 = vadd.f32 %v5739_v42, %v10212_v32  ;;  %v5760_v10 = vadd.f32 %v5759_v6, %v5753_v38 }
 0xbec   : > { %v5741_v62 = vrot.slane %v5740_v40, 4  ;;  %v5761_v26 = vadd.f32 %v5760_v10, %v5754_v55 }
 0xbee   : > { %v5742_v37 = vadd.f32 %v5741_v62, %v5740_v40  ;;  %v5762_v4 = vrot.slane %v5761_v26, 4 }
 0xbf0   : > { %v5743_v34 = vrot.slane %v5742_v37, 2  ;;  %v5763_v11 = vadd.f32 %v5762_v4, %v5761_v26 }
 0xbf2   : > { %v5744_v8 = vadd.f32 %v5743_v34, %v5742_v37  ;;  %v5764_v1 = vrot.slane %v5763_v11, 2 }
 0xbf4   : > { %v5745_v36 = vrot.slane %v5744_v8, 1  ;;  %v5765_v2 = vadd.f32 %v5764_v1, %v5763_v11 }
 0xbf6   : > { %v5766_v7 = vrot.slane %v5765_v2, 1  ;;  %v5746_v9 = vadd.f32 %v5745_v36, %v5744_v8 }
 0xbf8   : > { %v5767_v24 = vadd.f32 %v5766_v7, %v5765_v2  ;;  %v8246_v2 = vld [vmem:[#allocation2] sm:$0xff] }
 0xbfa   : > { %v5768_v25 = vsel %vm2129_vm2, %v5746_v9, %v5767_v24  ;;  %v6065_v9 = vld [vmem:[#allocation17] sm:$0x1] }
 0xbfb   : > { %7068 = vmatmul.mubr.f32.vlgmr.msra.gmra.mrb[36].mxu0 %v5768_v25 }
 0xbfc   : > { %7074 = vmatprep.mubr.msk.f32.mxu0 %vm8600_vm1, %v9847_v33  ;;  %7745 = vmatpush3.bf16.msra.mxu0 %v10228_v35 }
 0xbfd   : > { %7746 = vmatprep.subr.bf16.mxu0 %v8599_v52 }
 0xcce   : > { %v5851_v13 = vpop.f32.mrb[36].mxu0 }
 0xccf   : > { %v5855_v53 = vmul.f32 0.001953125, %v5851_v13  ;;  %v7069_v30 = vpop.f32.mrb[37].mxu0  ;;  %v8602_v13 = vmov 0  }
 0xcd0   : > { %8231 = vset.pattern.permute.xlu0 %v8602_v13 }
 0xcd1   : > { %v5856_v60 = vmul.f32 %v5855_v53, %v5855_v53  ;;  %v5864_v15 = vsub.f32 0.0, %v5855_v53 }
 0xcd3   : > { %v5858_v50 = vrot.slane %v5856_v60, 7 }
 0xcd5   : > { %v5860_v57 = vsub.f32 %v5855_v53, %v5858_v50  ;;  %v6071_v53 = vld [vmem:[#allocation5] sm:$0x1] }
 0xcd7   : > { %v5861_v39 = vmax.f32 %v5860_v57, 0.0  ;;  %v6082_v57 = vld [vmem:[#allocation20] sm:$0x1] }
 0xcd9   : > { %v5862_v0 = vadd.f32 1e-05, %v5861_v39 }
 0xcdb   : > { %8236 = vrsqrt.f32 %v5862_v0 }
 0xce5   : > { %v8237_v46 = vpop.eup %8236 }
 0xce6   : > { %v5866_v5 = vrot.slane %v8237_v46, 1 }
 0xce8   : > { %v5868_v56 = vmul.f32 %v5866_v5, %v5864_v15 }
 0xcea   : > { %v5870_v44 = vrot.slane %v5868_v56, 7 }
 0xcec   : > { %v5872_v22 = vsel %vm2129_vm2, %v5866_v5, %v5870_v44 }
 0xced   : > { %7075 = vmatmul.mubr.msk.f32.vlgmr.msra.gmra.mrb[38].mxu0 %vm5875_vm7, %v5872_v22 }
 0xcee   : > { %7748 = vmatpush3.bf16.msra.mxu0 %v10087_v41  ;;  %7109 = vmatprep.mubr.msk.f32.mxu0 %vm8600_vm1, %v9847_v33 }
 0xcef   : > { %7749 = vmatprep.subr.bf16.mxu0 %v8599_v52 }
 0xcf2   : > { %7751 = vmatpush3.bf16.msra.mxu0 %v10097_v20 }
 0xcf3   : > { %7752 = vmatprep.subr.bf16.mxu0 %v8599_v52 }
 0xcf6   : > { %7754 = vmatpush3.bf16.msra.mxu0 %v10107_v49 }
 0xcf7   : > { %7755 = vmatprep.subr.bf16.mxu0 %v8599_v52 }
 0xcfa   : > { %7757 = vmatpush3.bf16.msra.mxu0 %v10117_v14 }
 0xcfb   : > { %7758 = vmatprep.subr.bf16.mxu0 %v8599_v52 }
 0xcfe   : > { %7760 = vmatpush3.bf16.msra.mxu0 %v10126_v21 }
 0xcff   : > { %7761 = vmatprep.subr.bf16.mxu0 %v8599_v52 }
 0xd02   : > { %7763 = vmatpush3.bf16.msra.mxu0 %v10136_v12 }
 0xd03   : > { %7764 = vmatprep.subr.bf16.mxu0 %v8599_v52 }
 0xd06   : > { %7766 = vmatpush3.bf16.msra.mxu0 %v10146_v59 }
 0xd07   : > { %7767 = vmatprep.subr.bf16.mxu0 %v8599_v52 }
 0xd0a   : > { %7769 = vmatpush3.bf16.msra.mxu0 %v10156_v63 }
 0xd0b   : > { %7770 = vmatprep.subr.bf16.mxu0 %v8599_v52 }
 0xdc0   : > { %v5945_v33 = vpop.f32.mrb[38].mxu0 }
 0xdc1   : > { %v5952_v41 = vrot.slane %v5945_v33, %v9415_v51  ;;  %v7076_v20 = vpop.f32.mrb[39].mxu0  ;;  %v5964_v49 = vrot.slane %v5945_v33, %v9417_v17 }
 0xdc3   : > { %v5953_v14 = vmul.f32 %v5952_v41, %v10173_v27  ;;  %v5954_v21 = vmul.f32 %v5952_v41, %v10171_v28  ;;  %v5955_v12 = vmul.f32 %v5952_v41, %v10189_v48  ;;  %v5956_v59 = vmul.f32 %v5952_v41, %v10185_v18 }
 0xdc4   : > { %v5957_v29 = vmul.f32 %v5952_v41, %v10204_v54  ;;  %v5958_v58 = vmul.f32 %v5952_v41, %v10200_v61  ;;  %v5959_v27 = vmul.f32 %v5952_v41, %v10216_v3  ;;  %v5960_v43 = vmul.f32 %v5952_v41, %v10212_v32 }
 0xdc5   : > { %v10259_v16 = vadd.f32 %v5964_v49, %v5953_v14  ;;  %v10261_v63 = vadd.f32 %v5964_v49, %v5954_v21  ;;  %v10263_v52 = vadd.f32 %v5964_v49, %v5955_v12  ;;  %v10266_v45 = vadd.f32 %v5964_v49, %v5956_v59 }
 0xdc6   : > { %v10271_v48 = vadd.f32 %v5964_v49, %v5957_v29  ;;  %v10279_v61 = vadd.f32 %v5964_v49, %v5958_v58  ;;  %v10282_v42 = vadd.f32 %v5964_v49, %v5959_v27  ;;  %v5972_v6 = vadd.f32 %v5964_v49, %v5960_v43 }
 0xdc7   : > { %v5973_v17 = vmax.f32 %v10259_v16, 0.0  ;;  %v5974_v28 = vmax.f32 %v10261_v63, 0.0  ;;  %v5975_v18 = vmax.f32 %v10263_v52, 0.0  ;;  %v5976_v47 = vmax.f32 %v10266_v45, 0.0 }
 0xdc8   : > { %v5977_v3 = vmax.f32 %v10271_v48, 0.0  ;;  %v5978_v55 = vmax.f32 %v10279_v61, 0.0  ;;  %v5979_v10 = vmax.f32 %v10282_v42, 0.0  ;;  %v5980_v26 = vmax.f32 %v5972_v6, 0.0 }
 0xdc9   : > { %v5981_v54 = vadd.f32 %v5974_v28, %v5973_v17 }
 0xdcb   : > { %v5982_v19 = vadd.f32 %v5981_v54, %v5975_v18 }
 0xdcd   : > { %v5983_v38 = vadd.f32 %v5982_v19, %v5976_v47 }
 0xdcf   : > { %v5984_v40 = vadd.f32 %v5983_v38, %v5977_v3 }
 0xdd1   : > { %v5985_v62 = vadd.f32 %v5984_v40, %v5978_v55 }
 0xdd3   : > { %v5986_v37 = vadd.f32 %v5985_v62, %v5979_v10 }
 0xdd5   : > { %v5987_v32 = vadd.f32 %v5986_v37, %v5980_v26 }
 0xdd7   : > { %v5988_v4 = vrot.slane %v5987_v32, 4 }
 0xdd9   : > { %v5989_v34 = vadd.f32 %v5988_v4, %v5987_v32 }
 0xddb   : > { %v5990_v11 = vrot.slane %v5989_v34, 2 }
 0xddd   : > { %v5991_v8 = vadd.f32 %v5990_v11, %v5989_v34 }
 0xddf   : > { %v5992_v1 = vrot.slane %v5991_v8, 1 }
 0xde1   : > { %v5993_v36 = vadd.f32 %v5992_v1, %v5991_v8 }
 0xde3   : > { %7110 = vmatmul.mubr.f32.vlgmr.msra.gmra.mrb[40].mxu0 %v5993_v36 }
 0xde4   : > { %7772 = vmatpush3.bf16.msra.mxu0 %v10228_v35  ;;  %7116 = vmatprep.mubr.msk.f32.mxu0 %vm8600_vm1, %v8246_v2  ;;  %v6074_v35 = vld [vmem:[#allocation18] sm:$0x1] }
 0xeb6   : > { %v6060_v7 = vpop.f32.mrb[40].mxu0 }
 0xeb7   : > { %v6064_v24 = vmul.f32 0.001953125, %v6060_v7  ;;  %v7111_v25 = vpop.f32.mrb[41].mxu0 }
 0xeb9   : > { %v6066_v31 = vmul.f32 %v6065_v9, %v6064_v24 }
 0xebb   : > { %v6068_v23 = vsel %vm6067_vm8, %v6066_v31, 0.0 }
 0xebc   : > { %6069 = vadd.xlane.f32.xlu1 %v6068_v23 }
 0xf49   : > { %v6070_v30 = vpop.xlane.xlu1 %6069 }
 0xf4a   : > { %v6072_v60 = vadd.f32 %v6071_v53, %v6070_v30 }
 0xf4c   : > { %v6073_v50 = vmax.f32 %v6072_v60, 0.0 }
 0xf4e   : > { %6077 = vperm.xlu0 %8231, %v6073_v50  }
 0xfcd   : > { %v6078_v39 = vpop.permute.xlu0 %6077 }
 0xfce   : > { %v6080_v0 = vmul.f32 %v6078_v39, %v6074_v35 }
 0xfd0   : > { %v6083_v46 = vadd.f32 %v6082_v57, %v6080_v0 }
 0xfd2   : > { %v6520_v15 = vmul.f32 -1.442695, %v6083_v46 }
 0xfd4   : > { %8238 = vpow2.f32 %v6520_v15 }
 0xfde   : > { %v8239_v5 = vpop.eup %8238 }
 0xfdf   : > { %v6087_v56 = vadd.f32 1.0, %v8239_v5 }
 0xfe1   : > { %8240 = vrcp.f32 %v6087_v56 }
 0xfeb   : > { %v8241_v44 = vpop.eup %8240 }
 0xfec   : > { %7117 = vmatmul.mubr.msk.f32.vlgmr.msra.gmra.mrb[42].mxu0 %vm5875_vm7, %v8241_v44 }
0x10bf   : > { %v6159_v22 = vpop.f32.mrb[42].mxu0 }
0x10c0   : > { %v6166_v33 = vrot.slane %v6159_v22, %v9415_v51  ;;  %v7118_v41 = vpop.f32.mrb[43].mxu0 }
0x10c2   : > { %v6167_v20 = vmul.f32 %v6166_v33, %v5973_v17  ;;  %v6168_v49 = vmul.f32 %v6166_v33, %v5974_v28  ;;  %v6169_v14 = vmul.f32 %v6166_v33, %v5975_v18  ;;  %v6170_v21 = vmul.f32 %v6166_v33, %v5976_v47 }
0x10c3   : > { %v6171_v51 = vmul.f32 %v6166_v33, %v5977_v3  ;;  %v6172_v12 = vmul.f32 %v6166_v33, %v5978_v55  ;;  %v6173_v59 = vmul.f32 %v6166_v33, %v5979_v10  ;;  %v6174_v29 = vmul.f32 %v6166_v33, %v5980_v26 }
0x10c4   : > { %6175 = vst [vmem:[%s541_s13] sm:$0xff] %v6167_v20  ;;  %6176 = vst [vmem:[%s541_s13 + $0x8] sm:$0xff] %v6168_v49 }
0x10c5   : > { %6177 = vst [vmem:[%s541_s13 + $0x10] sm:$0xff] %v6169_v14  ;;  %6178 = vst [vmem:[%s541_s13 + $0x18] sm:$0xff] %v6170_v21 }
0x10c6   : > { %6179 = vst [vmem:[%s541_s13 + $0x20] sm:$0xff] %v6171_v51  ;;  %6180 = vst [vmem:[%s541_s13 + $0x28] sm:$0xff] %v6172_v12 }
0x10c7   : > { %6181 = vst [vmem:[%s541_s13 + $0x30] sm:$0xff] %v6173_v59  ;;  %6182 = vst [vmem:[%s541_s13 + $0x38] sm:$0xff] %v6174_v29 }
0x10c8   : > { %8514 = shalt.err (!%p8511_p9)
}
0x10c9   : > { %s8515_s16 = scalar_lea.hbm %s10301_s22, 1024  ;;  %s8519_s20 = scalar_lea.hbm %s10399_s4, 2048 }
0x10ca   : > { %p8516_p4 = scmp.ne.s32.totalorder %s10301_s22, %s8515_s16  ;;  %p8520_p2 = scmp.lt.u32.totalorder %s10301_s22, %s10399_s4 }
0x10cb   : > { %p8521_p6 = scmp.lt.u32.totalorder %s8519_s20, %s8515_s16  ;;  %p8523_p10 = scmp.lt.u32.totalorder %s8515_s16, %s10301_s22 }
0x10cc   : > { %p8517_p3 = pnand %p8516_p4, %p10400_p1 }
0x10cd   : > { %p8522_p5 = por %p8521_p6, %p8520_p2 }
0x10ce   : > { %p8518_p0 = pneg %p8517_p3 }
0x10cf   : > { %p8524_p11 = por %p8523_p10, %p8522_p5 }
0x10d1   : > { %p8525_p12 = pnand %p8524_p11, %p8518_p0 }
0x10d3   : > { %8528 = shalt.err (!%p8525_p12)
}
0x10d4   : > { %s8604_s15 = smov 128   ;;  %s8605_s12 = smov 8  }
0x10d5   : > { %8127 = dma.vmem_to_hbm [thread:$0]  (%p10400_p1), %s10303_s30, 1024, %s10301_s22, %s6184_s28, %s8604_s15, %s8604_s15, %s8605_s12  }
0x10d6 PF: > { %s6212_s13 = sand.u32 1, %s8571_s23   ;;  %p10401_p13 = scmp.ne.s32.totalorder %s10384_s19, 0 }
0x10d7   : > { %p10402_p8 = scmp.ge.s32.totalorder %s8583_s26, 2  ;;  %s6213_s16 = scalar_lea.sflag [#allocation8], %s6212_s13 }
0x10d9   : > { %p8159_p7 = pnand %p10402_p8, %p10401_p13 }
0x10db   : > { %8566 = dma.done.wait (!%p8159_p7), %s6213_s16, 1024  }
0x10dc   : > { %8568 = vsyncadd (!%p8159_p7), %s6213_s16, 4294966272  ;;  %p31_p9 = scmp.ge.s32.totalorder %s8894_s14, 4   ;;  %s10403_s23 = smov %s8575_s24 }
0x10dd   : > { %s10404_s24 = smov %s8579_s25  ;;  %s10405_s25 = smov %s8905_s9 }
0x10de   : > { %s10406_s26 = smov %s8894_s14  ;;  %33 = sbr.rel (!%p31_p9) target bundleno = 14 (0xe), region = 178 }
0x10e5   :  { %6218 = vsyncpa [#allocation7], 1 }
0x10e6   :  { %6220 = vsyncpa [#allocation7 + $0x1], 1 }
0x10e7   :  { %6221 = vsyncpa [#allocation10], 1 }
0x10e8   :  { %6222 = vsyncpa [#allocation13], 1 }
0x10e9   :  { %6223 = vsyncpa [#allocation16], 1 }
0x10ea   :  { %6224 = vsyncpa [#allocation19], 1 }
0x10eb   :  { %6225 = vsyncpa [#allocation8], 1 }
0x10ec   :  { %6227 = vsyncpa [#allocation8 + $0x1], 1 }

</bundles_post_ra>
